<compile_context>
chip_gen: v7x
topology: tpu7x:2x2x1
jax: 0.10.0
libtpu: 0.0.40
codegen_flags: <defaults>
</compile_context>

<pallas_src>
import functools

import jax
import jax.numpy as jnp
from jax import lax
from jax.experimental import pallas as pl
from jax.experimental.pallas import tpu as pltpu

P_DROP = 0.1
_LANES = 1024        # lane-dense last dim (multiple of 128)
_BLOCK_ROWS = 256    # 256 x 1024 x 4B = 1 MiB per f32 tile


def _i32(v):
    """Python int -> int32 constant with uint32 wraparound semantics."""
    v &= 0xFFFFFFFF
    return jnp.int32(v - (1 << 32) if v >= (1 << 31) else v)


def _relu_dropout_kernel(seed_ref, x_ref, o_ref, *, keep_threshold, scale,
                         block_rows, lanes):
    """One (block_rows, lanes) tile: ReLU, then inverted dropout.

    The keep/drop decision is a pure function of (seed, global element index)
    via a splitmix32-style integer mixer, so every element gets an independent
    draw and the mask does not depend on tiling or core assignment.  All hash
    math is vanilla signed-int32 (logical shifts emulated with arithmetic
    shift + mask), so it lowers on Mosaic and on the interpret fallback alike.
    """
    i = pl.program_id(0)
    shape = (block_rows, lanes)

    # Scalar part (tile base offset + seed mix) computed once, then broadcast.
    base = i * (block_rows * lanes) + seed_ref[0] * _i32(0x9E3779B9)
    h = (lax.broadcasted_iota(jnp.int32, shape, 0) * jnp.int32(lanes)
         + lax.broadcasted_iota(jnp.int32, shape, 1)
         + base)

    # splitmix32-style mixer ("lowbias32").
    h = (h ^ ((h >> 16) & jnp.int32(0xFFFF))) * _i32(0x7FEB352D)
    h = (h ^ ((h >> 15) & jnp.int32(0x1FFFF))) * _i32(0x846CA68B)
    h = h ^ ((h >> 16) & jnp.int32(0xFFFF))

    # 24 uniform bits; keep with probability (1 - p).
    u = h & jnp.int32(0x00FFFFFF)
    keep = u >= jnp.int32(keep_threshold)

    x = x_ref[...]
    y = jnp.maximum(x, jnp.zeros_like(x))                      # ReLU
    scale_c = jnp.asarray(scale, dtype=x.dtype)
    o_ref[...] = jnp.where(keep, y * scale_c,
                           jnp.zeros_like(y)).astype(o_ref.dtype)


def relu_dropout(x, seed, p_drop=P_DROP, training=True):
    """ReLU followed by Dropout(p_drop), matching torch training semantics."""
    if not training or p_drop == 0.0:
        # Dropout is identity in eval mode; plain ReLU — XLA already emits a
        # roofline-optimal fused elementwise op, no kernel launch needed.
        return jnp.maximum(x, jnp.zeros((), dtype=x.dtype))

    orig_shape = x.shape
    flat = x.reshape(-1)
    total = flat.shape[0]

    # Lane-dense slab: pad the flat array to a multiple of _LANES.
    pad = (-total) % _LANES
    if pad:
        flat = jnp.pad(flat, (0, pad))
    rows = (total + pad) // _LANES
    x2d = flat.reshape(rows, _LANES)

    # Row tile: 256 rows (1 MiB f32) for big activations; whole slab if small.
    bm = _BLOCK_ROWS if rows > _BLOCK_ROWS else rows
    grid_m = pl.cdiv(rows, bm)

    seed_arr = jnp.asarray([seed], dtype=jnp.int32)
    keep_threshold = int(round(p_drop * (1 << 24)))
    scale = 1.0 / (1.0 - p_drop)

    kernel = functools.partial(
        _relu_dropout_kernel,
        keep_threshold=keep_threshold,
        scale=scale,
        block_rows=bm,
        lanes=_LANES,
    )

    out2d = pl.pallas_call(
        kernel,
        out_shape=jax.ShapeDtypeStruct((rows, _LANES), x.dtype),
        grid_spec=pltpu.PrefetchScalarGridSpec(
            num_scalar_prefetch=1,
            grid=(grid_m,),
            in_specs=[pl.BlockSpec((bm, _LANES), lambda i, seed: (i, 0))],
            out_specs=pl.BlockSpec((bm, _LANES), lambda i, seed: (i, 0)),
        ),
        compiler_params=pltpu.CompilerParams(
            dimension_semantics=("parallel",),   # tiles independent -> megacore
        ),
    )(seed_arr, x2d)

    out_flat = out2d.reshape(-1)
    if pad:
        out_flat = out_flat[:total]
    return out_flat.reshape(orig_shape)


if __name__ == "__main__":
    key = jax.random.PRNGKey(0)
    # The module's actual activation shape (1, 256, 28, 28) — still small.
    x = jax.random.normal(key, (1, 256, 28, 28), dtype=jnp.float32)

    out = relu_dropout(x, seed=0, p_drop=P_DROP, training=True)
    out = jax.block_until_ready(out)

    assert out.shape == x.shape

    relu_scaled = jnp.maximum(x, 0.0) / (1.0 - P_DROP)
    kept = out != 0.0
    # Every kept element equals relu(x) / (1 - p).
    assert bool(jnp.all(jnp.where(kept, jnp.abs(out - relu_scaled) < 1e-4, True)))
    # Non-positive inputs always map to zero (ReLU).
    assert bool(jnp.all(jnp.where(x <= 0.0, out == 0.0, True)))
    # Empirical drop rate among strictly positive inputs is ~p.
    pos = x > 0.0
    dropped_pos = jnp.sum(jnp.logical_and(pos, out == 0.0))
    frac = float(dropped_pos / jnp.maximum(jnp.sum(pos), 1))
    assert 0.05 < frac < 0.15, frac

    print("KERNEL_OK")
</pallas_src>

<mosaic_0001>
module attributes {stable_mosaic.version = 11 : i64} {
  func.func @_relu_dropout_kernel(%arg0: i32, %arg1: memref<1xi32, #tpu.memory_space<smem>>, %arg2: memref<196x1024xf32, #tpu.memory_space<vmem>>, %arg3: memref<196x1024xf32, #tpu.memory_space<vmem>>) attributes {dimension_semantics = [#tpu.dimension_semantics<parallel>], iteration_bounds = array<i64: 1>, scalar_prefetch = 1 : i64, scratch_operands = 0 : i64, tpu.core_type = #tpu.core_type<tc>, window_params = [{transform_indices = @transform_0, window_bounds = array<i64: 196, 1024>}, {transform_indices = @transform_1, window_bounds = array<i64: 196, 1024>}]} {
    %c200704_i32 = arith.constant 200704 : i32
    %0 = arith.muli %arg0, %c200704_i32 : i32
    %c0 = arith.constant 0 : index
    %1 = memref.load %arg1[%c0] : memref<1xi32, #tpu.memory_space<smem>>
    %c-1640531527_i32 = arith.constant -1640531527 : i32
    %2 = arith.muli %1, %c-1640531527_i32 : i32
    %3 = arith.addi %0, %2 : i32
    %4 = tpu.iota {dimensions = array<i32: 0>} : vector<196x1024xi32>
    %c1024_i32 = arith.constant 1024 : i32
    %5 = vector.broadcast %c1024_i32 : i32 to vector<196x1024xi32>
    %6 = arith.muli %4, %5 : vector<196x1024xi32>
    %7 = tpu.iota {dimensions = array<i32: 1>} : vector<196x1024xi32>
    %8 = arith.addi %6, %7 : vector<196x1024xi32>
    %9 = vector.broadcast %3 : i32 to vector<196x1024xi32>
    %10 = arith.addi %8, %9 : vector<196x1024xi32>
    %c16_i32 = arith.constant 16 : i32
    %11 = vector.broadcast %c16_i32 : i32 to vector<196x1024xi32>
    %12 = arith.shrsi %10, %11 : vector<196x1024xi32>
    %c65535_i32 = arith.constant 65535 : i32
    %13 = vector.broadcast %c65535_i32 : i32 to vector<196x1024xi32>
    %14 = arith.andi %12, %13 : vector<196x1024xi32>
    %15 = arith.xori %10, %14 : vector<196x1024xi32>
    %c2146121005_i32 = arith.constant 2146121005 : i32
    %16 = vector.broadcast %c2146121005_i32 : i32 to vector<196x1024xi32>
    %17 = arith.muli %15, %16 : vector<196x1024xi32>
    %c15_i32 = arith.constant 15 : i32
    %18 = vector.broadcast %c15_i32 : i32 to vector<196x1024xi32>
    %19 = arith.shrsi %17, %18 : vector<196x1024xi32>
    %c131071_i32 = arith.constant 131071 : i32
    %20 = vector.broadcast %c131071_i32 : i32 to vector<196x1024xi32>
    %21 = arith.andi %19, %20 : vector<196x1024xi32>
    %22 = arith.xori %17, %21 : vector<196x1024xi32>
    %c-2073254261_i32 = arith.constant -2073254261 : i32
    %23 = vector.broadcast %c-2073254261_i32 : i32 to vector<196x1024xi32>
    %24 = arith.muli %22, %23 : vector<196x1024xi32>
    %c16_i32_0 = arith.constant 16 : i32
    %25 = vector.broadcast %c16_i32_0 : i32 to vector<196x1024xi32>
    %26 = arith.shrsi %24, %25 : vector<196x1024xi32>
    %c65535_i32_1 = arith.constant 65535 : i32
    %27 = vector.broadcast %c65535_i32_1 : i32 to vector<196x1024xi32>
    %28 = arith.andi %26, %27 : vector<196x1024xi32>
    %29 = arith.xori %24, %28 : vector<196x1024xi32>
    %c16777215_i32 = arith.constant 16777215 : i32
    %30 = vector.broadcast %c16777215_i32 : i32 to vector<196x1024xi32>
    %31 = arith.andi %29, %30 : vector<196x1024xi32>
    %c1677722_i32 = arith.constant 1677722 : i32
    %32 = vector.broadcast %c1677722_i32 : i32 to vector<196x1024xi32>
    %33 = arith.cmpi sge, %31, %32 : vector<196x1024xi32>
    %c0_2 = arith.constant 0 : index
    %c0_3 = arith.constant 0 : index
    %34 = vector.load %arg2[%c0_2, %c0_3] : memref<196x1024xf32, #tpu.memory_space<vmem>>, vector<196x1024xf32>
    %cst = arith.constant 0.000000e+00 : f32
    %35 = vector.broadcast %cst : f32 to vector<196x1024xf32>
    %36 = arith.maximumf %34, %35 : vector<196x1024xf32>
    %cst_4 = arith.constant 1.11111116 : f32
    %37 = vector.broadcast %cst_4 : f32 to vector<196x1024xf32>
    %38 = arith.mulf %36, %37 : vector<196x1024xf32>
    %cst_5 = arith.constant 0.000000e+00 : f32
    %39 = vector.broadcast %cst_5 : f32 to vector<196x1024xf32>
    %40 = arith.select %33, %38, %39 : vector<196x1024xi1>, vector<196x1024xf32>
    %c0_6 = arith.constant 0 : index
    %c0_7 = arith.constant 0 : index
    %41 = vector.load %arg3[%c0_6, %c0_7] : memref<196x1024xf32, #tpu.memory_space<vmem>>, vector<196x1024xf32>
    tpu.vector_store %arg3[%c0_6, %c0_7], %40 {strides = array<i32>} : memref<196x1024xf32, #tpu.memory_space<vmem>>, vector<196x1024xf32>,
    return
  }
  func.func @transform_0(%arg0: i32, %arg1: memref<1xi32, #tpu.memory_space<smem>>) -> (i32, i32) {
    %c0_i32 = arith.constant 0 : i32
    %c0_i32_0 = arith.constant 0 : i32
    return %arg0, %c0_i32 : i32, i32
  }
  func.func @transform_1(%arg0: i32, %arg1: memref<1xi32, #tpu.memory_space<smem>>) -> (i32, i32) {
    %c0_i32 = arith.constant 0 : i32
    %c0_i32_0 = arith.constant 0 : i32
    return %arg0, %c0_i32 : i32, i32
  }
}

</mosaic_0001>

<bundles_post_ra>
// kernel: tpu_custom_call.1
= control target key start
LH: loop header
LB: loop body
LE: loop exit
PB: predicated region body
PF: predicated region fallthrough
CT: control target
= control target key end

     0   :  { %8 = vsyncpa [#allocation5], 0  ;;  %s6022_s0 = inlined_call_operand.<no memory space> [shape: s32[1], index: 0, kind: input, shape index: {}]   ;;  %s6023_s1 = inlined_call_operand.hbm [shape: f32[196,1024], index: 1, kind: input, shape index: {}]   ;;  %s6024_s2 = inlined_call_operand.hbm [shape: f32[196,1024], index: 2, kind: output, shape index: {}]  }
   0x1   :  { %9 = vsyncpa [#allocation6], 0  ;;  %s4759_s9 = smov [#allocation4]   ;;  %s4711_s13 = scalar_lea.hbm %s6023_s1, 25600 }
   0x2   :  { %s15_s10 = sshll.u32 %s4759_s9, 4  ;;  %p4712_p0 = scmp.ne.s32.totalorder %s6023_s1, %s4711_s13  ;;  %s16_s10 = int_to_ptr.vmem [resolvable:$true] %s15_s10 }
   0x3   :  { %p4715_p1 = scmp.lt.u32.totalorder %s4711_s13, %s6023_s1 }
   0x5   :  { %p4717_p2 = pnand %p4715_p1, %p4712_p0 }
   0x7   :  { %4720 = shalt.err (!%p4717_p2)
}
   0x8   :  { %s4721_s18 = scalar_lea.vmem %s16_s10, 25600  ;;  %p4726_p4 = scmp.lt.s32.totalorder %s16_s10, %s16_s10 }
   0x9   :  { %p4722_p3 = scmp.ne.s32.totalorder %s16_s10, %s4721_s18  ;;  %p4727_p5 = scmp.lt.s32.totalorder %s4721_s18, %s4721_s18 }
   0xb   :  { %p4728_p6 = por %p4727_p5, %p4726_p4 }
   0xd   :  { %p4729_p7 = pnand %p4728_p6, %p4722_p3 }
   0xf   :  { %4732 = shalt.err (!%p4729_p7)
}
  0x10   :  { %s4760_s19 = smov 1024   ;;  %s4761_s20 = smov 64  }
  0x11   :  { %21 = dma.hbm_to_vmem [thread:$0]  %s6023_s1, 25600, %s16_s10, [#allocation5], %s4760_s19, %s4760_s19, %s4761_s20  }
  0x12   :  { %4755 = dma.done.wait [#allocation5], 25600  }
  0x13   :  { %4756 = vsyncadd [#allocation5], 4294941696  ;;  %s27_s25 = smul.u32 2654435769, %s6022_s0  ;;  %v29_v0 = vlaneseq  ;;  %v3090_v16 = vld [vmem:[#allocation4] sm:$0xff]  ;;  %v3091_v17 = vld [vmem:[#allocation4 + $0x8] sm:$0xff] }
  0x14   :  { %v3092_v18 = vld [vmem:[#allocation4 + $0x10] sm:$0xff]  ;;  %v3290_v24 = vmax.f32 %v3090_v16, 0.0  ;;  %v3291_v26 = vmax.f32 %v3091_v17, 0.0  ;;  %v3093_v27 = vld [vmem:[#allocation4 + $0x18] sm:$0xff]  ;;  %v3094_v32 = vld [vmem:[#allocation4 + $0x20] sm:$0xff]  ;;  %s4762_s0 = smov [#allocation7]  }
  0x15   :  { %v4796_v1 = vshrl.u32 %v29_v0, 7  ;;  %v4798_v2 = vand.u32 127, %v29_v0  ;;  %v4800_v3 = vstv %s27_s25  ;;  %v3292_v29 = vmax.f32 %v3092_v18, 0.0  ;;  %v3095_v33 = vld [vmem:[#allocation4 + $0x28] sm:$0xff]  ;;  %v3096_v62 = vld [vmem:[#allocation4 + $0x30] sm:$0xff]  ;;  %s4095_s1 = sshll.u32 %s4762_s0, 4  ;;  %s4096_s1 = int_to_ptr.vmem [resolvable:$true] %s4095_s1 }
  0x16   :  { %v3293_v31 = vmax.f32 %v3093_v27, 0.0  ;;  %v4836_v35 = vmul.f32 1.1111112, %v3290_v24  ;;  %v4838_v37 = vmul.f32 1.1111112, %v3291_v26  ;;  %v3294_v45 = vmax.f32 %v3094_v32, 0.0  ;;  %p4738_p9 = scmp.lt.s32.totalorder %s4096_s1, %s4096_s1 }
  0x17   :  { %v55_v4 = vmul.u32 1024, %v4796_v1  ;;  %v4804_v5 = vadd.s32 128, %v4798_v2  ;;  %v4807_v6 = vadd.s32 256, %v4798_v2  ;;  %v4810_v7 = vadd.s32 384, %v4798_v2  ;;  %s4733_s26 = scalar_lea.vmem %s4096_s1, 25600 }
  0x18   :  { %v4813_v8 = vadd.s32 512, %v4798_v2  ;;  %v4816_v9 = vadd.s32 640, %v4798_v2  ;;  %v4819_v10 = vadd.s32 768, %v4798_v2  ;;  %v4822_v11 = vadd.s32 896, %v4798_v2  ;;  %p4734_p8 = scmp.ne.s32.totalorder %s4096_s1, %s4733_s26  ;;  %p4739_p10 = scmp.lt.s32.totalorder %s4733_s26, %s4733_s26 }
  0x19   :  { %v89_v12 = vadd.s32 %v4798_v2, %v55_v4  ;;  %v90_v13 = vadd.s32 %v4804_v5, %v55_v4  ;;  %v91_v14 = vadd.s32 %v4807_v6, %v55_v4  ;;  %v92_v15 = vadd.s32 %v4810_v7, %v55_v4 }
  0x1a   :  { %v93_v19 = vadd.s32 %v4813_v8, %v55_v4  ;;  %v94_v20 = vadd.s32 %v4816_v9, %v55_v4  ;;  %v95_v21 = vadd.s32 %v4819_v10, %v55_v4  ;;  %v96_v22 = vadd.s32 %v4822_v11, %v55_v4  ;;  %p4740_p11 = por %p4739_p10, %p4738_p9 }
  0x1b   :  { %v290_v23 = vadd.s32 %v4800_v3, %v89_v12  ;;  %v291_v25 = vadd.s32 %v4800_v3, %v90_v13  ;;  %v292_v28 = vadd.s32 %v4800_v3, %v91_v14  ;;  %v293_v30 = vadd.s32 %v4800_v3, %v92_v15 }
  0x1c   :  { %v4840_v39 = vmul.f32 1.1111112, %v3292_v29  ;;  %v4842_v41 = vmul.f32 1.1111112, %v3293_v31  ;;  %v294_v44 = vadd.s32 %v4800_v3, %v93_v19  ;;  %v295_v48 = vadd.s32 %v4800_v3, %v94_v20  ;;  %p4741_p12 = pnand %p4740_p11, %p4734_p8 }
  0x1d   :  { %v4107_v34 = vshrl.u32 %v290_v23, 16  ;;  %v4108_v36 = vshrl.u32 %v291_v25, 16  ;;  %v4109_v38 = vshrl.u32 %v292_v28, 16  ;;  %v4110_v40 = vshrl.u32 %v293_v30, 16 }
  0x1e   :  { %v3295_v49 = vmax.f32 %v3095_v33, 0.0  ;;  %v4111_v52 = vshrl.u32 %v294_v44, 16  ;;  %v296_v53 = vadd.s32 %v4800_v3, %v95_v21  ;;  %v4847_v56 = vmul.f32 1.1111112, %v3294_v45 }
  0x1f   :  { %v890_v42 = vxor.u32 %v4107_v34, %v290_v23  ;;  %v891_v43 = vxor.u32 %v4108_v36, %v291_v25  ;;  %v892_v46 = vxor.u32 %v4109_v38, %v292_v28  ;;  %v893_v47 = vxor.u32 %v4110_v40, %v293_v30 }
  0x20   :  { %v297_v57 = vadd.s32 %v4800_v3, %v96_v22  ;;  %v894_v60 = vxor.u32 %v4111_v52, %v294_v44  ;;  %v4112_v61 = vshrl.u32 %v295_v48, 16  ;;  %v4850_v4 = vmul.f32 1.1111112, %v3295_v49  ;;  %v3097_v52 = vld [vmem:[#allocation4 + $0x38] sm:$0xff] }
  0x21   :  { %v1090_v50 = vmul.u32 2146121005, %v890_v42  ;;  %v1091_v51 = vmul.u32 2146121005, %v891_v43  ;;  %v4113_v12 = vshrl.u32 %v296_v53, 16  ;;  %v3296_v20 = vmax.f32 %v3096_v62, 0.0 }
  0x22   :  { %v1092_v54 = vmul.u32 2146121005, %v892_v46  ;;  %v1093_v55 = vmul.u32 2146121005, %v893_v47  ;;  %v895_v16 = vxor.u32 %v4112_v61, %v295_v48  ;;  %v4114_v24 = vshrl.u32 %v297_v57, 16 }
  0x23   :  { %v4307_v58 = vshrl.u32 %v1090_v50, 15  ;;  %v4308_v59 = vshrl.u32 %v1091_v51, 15  ;;  %v1094_v15 = vmul.u32 2146121005, %v894_v60  ;;  %v896_v19 = vxor.u32 %v4113_v12, %v296_v53  ;;  %v3099_v60 = vld [vmem:[#allocation4 + $0x48] sm:$0xff] }
  0x24   :  { %v4309_v63 = vshrl.u32 %v1092_v54, 15  ;;  %v4310_v0 = vshrl.u32 %v1093_v55, 15  ;;  %v4852_v27 = vmul.f32 1.1111112, %v3296_v20  ;;  %v1095_v31 = vmul.u32 2146121005, %v895_v16 }
  0x25   :  { %v1690_v13 = vxor.u32 %v4307_v58, %v1090_v50  ;;  %v1691_v14 = vxor.u32 %v4308_v59, %v1091_v51  ;;  %v4311_v23 = vshrl.u32 %v1094_v15, 15  ;;  %v1096_v34 = vmul.u32 2146121005, %v896_v19  ;;  %v3098_v59 = vld [vmem:[#allocation4 + $0x40] sm:$0xff] }
  0x26   :  { %v1692_v17 = vxor.u32 %v4309_v63, %v1092_v54  ;;  %v1693_v18 = vxor.u32 %v4310_v0, %v1093_v55  ;;  %v897_v36 = vxor.u32 %v4114_v24, %v297_v57  ;;  %v4312_v43 = vshrl.u32 %v1095_v31, 15 }
  0x27   :  { %v1890_v21 = vmul.u32 2221713035, %v1690_v13  ;;  %v1891_v22 = vmul.u32 2221713035, %v1691_v14  ;;  %v1694_v30 = vxor.u32 %v4311_v23, %v1094_v15  ;;  %v4313_v46 = vshrl.u32 %v1096_v34, 15 }
  0x28   :  { %v1892_v25 = vmul.u32 2221713035, %v1692_v17  ;;  %v1893_v26 = vmul.u32 2221713035, %v1693_v18  ;;  %v1695_v51 = vxor.u32 %v4312_v43, %v1095_v31  ;;  %v3297_v17 = vmax.f32 %v3097_v52, 0.0 }
  0x29   :  { %v4507_v28 = vshrl.u32 %v1890_v21, 16  ;;  %v4508_v29 = vshrl.u32 %v1891_v22, 16  ;;  %v1894_v42 = vmul.u32 2221713035, %v1694_v30  ;;  %v1097_v47 = vmul.u32 2146121005, %v897_v36 }
  0x2a   :  { %v4509_v32 = vshrl.u32 %v1892_v25, 16  ;;  %v4510_v33 = vshrl.u32 %v1893_v26, 16  ;;  %v1696_v55 = vxor.u32 %v4313_v46, %v1096_v34  ;;  %v1895_v61 = vmul.u32 2221713035, %v1695_v51 }
  0x2b   :  { %v2490_v38 = vxor.u32 %v4507_v28, %v1890_v21  ;;  %v2491_v40 = vxor.u32 %v4508_v29, %v1891_v22  ;;  %v4511_v50 = vshrl.u32 %v1894_v42, 16  ;;  %v4314_v58 = vshrl.u32 %v1097_v47, 15  ;;  %v3101_v21 = vld [vmem:[#allocation4 + $0x58] sm:$0xff] }
  0x2c   :  { %v2492_v44 = vxor.u32 %v4509_v32, %v1892_v25  ;;  %v2493_v45 = vxor.u32 %v4510_v33, %v1893_v26  ;;  %v4512_v14 = vshrl.u32 %v1895_v61, 16  ;;  %v1896_v15 = vmul.u32 2221713035, %v1696_v55 }
  0x2d   :  { %v2690_v48 = vand.u32 16777215, %v2490_v38  ;;  %v2691_v49 = vand.u32 16777215, %v2491_v40  ;;  %v2494_v57 = vxor.u32 %v4511_v50, %v1894_v42  ;;  %v1697_v16 = vxor.u32 %v4314_v58, %v1097_v47  ;;  %v3102_v47 = vld [vmem:[#allocation4 + $0x60] sm:$0xff] }
  0x2e   :  { %v2692_v53 = vand.u32 16777215, %v2492_v44  ;;  %v2693_v54 = vand.u32 16777215, %v2493_v45  ;;  %v31_v18 = vadd.s32 8, %v4796_v1  ;;  %v3298_v19 = vmax.f32 %v3098_v59, 0.0 }
  0x2f   :  { %vm2890_vm0 = vcmp.ge.s32.totalorder %v2690_v48, 1677722  ;;  %vm2891_vm1 = vcmp.ge.s32.totalorder %v2691_v49, 1677722  ;;  %v2694_v13 = vand.u32 16777215, %v2494_v57 }
  0x30   :  { %v3690_v62 = vsel %vm2890_vm0, %v4836_v35, 0.0  ;;  %v3691_v63 = vsel %vm2891_vm1, %v4838_v37, 0.0  ;;  %vm2892_vm2 = vcmp.ge.s32.totalorder %v2692_v53, 1677722  ;;  %vm2893_vm3 = vcmp.ge.s32.totalorder %v2693_v54, 1677722 }
  0x31   :  { %3890 = vst [vmem:[#allocation7] sm:$0xff] %v3690_v62  ;;  %3891 = vst [vmem:[#allocation7 + $0x8] sm:$0xff] %v3691_v63  ;;  %v3692_v0 = vsel %vm2892_vm2, %v4840_v39, 0.0  ;;  %v3693_v12 = vsel %vm2893_vm3, %v4842_v41, 0.0  ;;  %v3100_v35 = vld [vmem:[#allocation4 + $0x50] sm:$0xff]  ;;  %v2495_v37 = vxor.u32 %v4512_v14, %v1895_v61  ;;  %v3299_v20 = vmax.f32 %v3099_v60, 0.0 }
  0x32   :  { %3892 = vst [vmem:[#allocation7 + $0x10] sm:$0xff] %v3692_v0  ;;  %3893 = vst [vmem:[#allocation7 + $0x18] sm:$0xff] %v3693_v12  ;;  %vm2894_vm4 = vcmp.ge.s32.totalorder %v2694_v13, 1677722  ;;  %v4513_v39 = vshrl.u32 %v1896_v15, 16  ;;  %v4860_v25 = vmul.u32 1024, %v31_v18 }
  0x33   :  { %v3694_v22 = vsel %vm2894_vm4, %v4847_v56, 0.0  ;;  %v1897_v23 = vmul.u32 2221713035, %v1697_v16  ;;  %v3497_v41 = vmul.f32 1.1111112, %v3297_v17  ;;  %v3300_v28 = vmax.f32 %v3100_v35, 0.0 }
  0x34   :  { %3894 = vst [vmem:[#allocation7 + $0x20] sm:$0xff] %v3694_v22  ;;  %v2695_v24 = vand.u32 16777215, %v2495_v37  ;;  %v4862_v26 = vmul.f32 1.1111112, %v3298_v19  ;;  %v2496_v29 = vxor.u32 %v4513_v39, %v1896_v15  ;;  %v3301_v32 = vmax.f32 %v3101_v21, 0.0 }
  0x35   :  { %v4514_v30 = vshrl.u32 %v1897_v23, 16  ;;  %v4864_v31 = vmul.f32 1.1111112, %v3299_v20  ;;  %v97_v33 = vadd.s32 %v4798_v2, %v4860_v25  ;;  %v98_v56 = vadd.s32 %v4804_v5, %v4860_v25  ;;  %v3103_v59 = vld [vmem:[#allocation4 + $0x68] sm:$0xff]  ;;  %v3104_v19 = vld [vmem:[#allocation4 + $0x70] sm:$0xff] }
  0x36   :  { %vm2895_vm5 = vcmp.ge.s32.totalorder %v2695_v24, 1677722  ;;  %v99_v34 = vadd.s32 %v4807_v6, %v4860_v25  ;;  %v2696_v38 = vand.u32 16777215, %v2496_v29  ;;  %v4873_v42 = vmul.f32 1.1111112, %v3300_v28 }
  0x37   :  { %v3695_v36 = vsel %vm2895_vm5, %v4850_v4, 0.0  ;;  %v2497_v40 = vxor.u32 %v4514_v30, %v1897_v23  ;;  %v298_v43 = vadd.s32 %v4800_v3, %v97_v33  ;;  %v299_v44 = vadd.s32 %v4800_v3, %v98_v56 }
  0x38   :  { %3895 = vst [vmem:[#allocation7 + $0x28] sm:$0xff] %v3695_v36  ;;  %v300_v45 = vadd.s32 %v4800_v3, %v99_v34  ;;  %v100_v46 = vadd.s32 %v4810_v7, %v4860_v25  ;;  %vm2896_vm6 = vcmp.ge.s32.totalorder %v2696_v38, 1677722  ;;  %v4880_v49 = vmul.f32 1.1111112, %v3301_v32 }
  0x39   :  { %v2697_v48 = vand.u32 16777215, %v2497_v40  ;;  %v101_v4 = vadd.s32 %v4813_v8, %v4860_v25  ;;  %v3696_v50 = vsel %vm2896_vm6, %v4852_v27, 0.0  ;;  %v4115_v51 = vshrl.u32 %v298_v43, 16 }
  0x3a   :  { %v4116_v52 = vshrl.u32 %v299_v44, 16  ;;  %v4117_v53 = vshrl.u32 %v300_v45, 16  ;;  %3896 = vst [vmem:[#allocation7 + $0x30] sm:$0xff] %v3696_v50  ;;  %v301_v54 = vadd.s32 %v4800_v3, %v100_v46  ;;  %v3302_v58 = vmax.f32 %v3102_v47, 0.0 }
  0x3b   :  { %vm2897_vm7 = vcmp.ge.s32.totalorder %v2697_v48, 1677722  ;;  %v302_v55 = vadd.s32 %v4800_v3, %v101_v4  ;;  %v898_v57 = vxor.u32 %v4115_v51, %v298_v43  ;;  %v102_v27 = vadd.s32 %v4816_v9, %v4860_v25 }
  0x3c   :  { %v3697_v60 = vsel %vm2897_vm7, %v3497_v41, 0.0  ;;  %v899_v61 = vxor.u32 %v4116_v52, %v299_v44  ;;  %v900_v62 = vxor.u32 %v4117_v53, %v300_v45  ;;  %v4118_v63 = vshrl.u32 %v301_v54, 16 }
  0x3d   :  { %3897 = vst [vmem:[#allocation7 + $0x38] sm:$0xff] %v3697_v60  ;;  %v4119_v0 = vshrl.u32 %v302_v55, 16  ;;  %v4887_v12 = vmul.f32 1.1111112, %v3302_v58  ;;  %v1098_v13 = vmul.u32 2146121005, %v898_v57  ;;  %v103_v16 = vadd.s32 %v4819_v10, %v4860_v25 }
  0x3e   :  { %v1099_v14 = vmul.u32 2146121005, %v899_v61  ;;  %v3303_v15 = vmax.f32 %v3103_v59, 0.0  ;;  %v1100_v17 = vmul.u32 2146121005, %v900_v62  ;;  %v901_v18 = vxor.u32 %v4118_v63, %v301_v54 }
  0x3f   :  { %v902_v35 = vxor.u32 %v4119_v0, %v302_v55  ;;  %v303_v37 = vadd.s32 %v4800_v3, %v102_v27  ;;  %v4315_v20 = vshrl.u32 %v1098_v13, 15  ;;  %v304_v39 = vadd.s32 %v4800_v3, %v103_v16 }
  0x40   :  { %v4316_v21 = vshrl.u32 %v1099_v14, 15  ;;  %v4894_v22 = vmul.f32 1.1111112, %v3303_v15  ;;  %v4317_v23 = vshrl.u32 %v1100_v17, 15  ;;  %v1101_v41 = vmul.u32 2146121005, %v901_v18 }
  0x41   :  { %v1102_v24 = vmul.u32 2146121005, %v902_v35  ;;  %v4120_v28 = vshrl.u32 %v303_v37, 16  ;;  %v1698_v29 = vxor.u32 %v4315_v20, %v1098_v13  ;;  %v4121_v32 = vshrl.u32 %v304_v39, 16 }
  0x42   :  { %v1699_v30 = vxor.u32 %v4316_v21, %v1099_v14  ;;  %v3304_v33 = vmax.f32 %v3104_v19, 0.0  ;;  %v1700_v56 = vxor.u32 %v4317_v23, %v1100_v17  ;;  %v4318_v34 = vshrl.u32 %v1101_v41, 15  ;;  %v3105_v19 = vld [vmem:[#allocation4 + $0x78] sm:$0xff] }
  0x43   :  { %v4319_v36 = vshrl.u32 %v1102_v24, 15  ;;  %v903_v38 = vxor.u32 %v4120_v28, %v303_v37  ;;  %v1898_v40 = vmul.u32 2221713035, %v1698_v29  ;;  %v904_v44 = vxor.u32 %v4121_v32, %v304_v39 }
  0x44   :  { %v1899_v43 = vmul.u32 2221713035, %v1699_v30  ;;  %v4897_v45 = vmul.f32 1.1111112, %v3304_v33  ;;  %v1900_v46 = vmul.u32 2221713035, %v1700_v56  ;;  %v1701_v47 = vxor.u32 %v4318_v34, %v1101_v41 }
  0x45   :  { %v1702_v48 = vxor.u32 %v4319_v36, %v1102_v24  ;;  %v1103_v4 = vmul.u32 2146121005, %v903_v38  ;;  %v4515_v50 = vshrl.u32 %v1898_v40, 16  ;;  %v1104_v52 = vmul.u32 2146121005, %v904_v44  ;;  %v3106_v24 = vld [vmem:[#allocation4 + $0x80] sm:$0xff] }
  0x46   :  { %v4516_v51 = vshrl.u32 %v1899_v43, 16  ;;  %v104_v53 = vadd.s32 %v4822_v11, %v4860_v25  ;;  %v4517_v54 = vshrl.u32 %v1900_v46, 16  ;;  %v1901_v55 = vmul.u32 2221713035, %v1701_v47  ;;  %v3107_v33 = vld [vmem:[#allocation4 + $0x88] sm:$0xff] }
  0x47   :  { %v1902_v58 = vmul.u32 2221713035, %v1702_v48  ;;  %v4320_v59 = vshrl.u32 %v1103_v4, 15  ;;  %v2498_v60 = vxor.u32 %v4515_v50, %v1898_v40  ;;  %v4321_v61 = vshrl.u32 %v1104_v52, 15 }
  0x48   :  { %v2499_v57 = vxor.u32 %v4516_v51, %v1899_v43  ;;  %v305_v62 = vadd.s32 %v4800_v3, %v104_v53  ;;  %v2500_v63 = vxor.u32 %v4517_v54, %v1900_v46  ;;  %v4518_v0 = vshrl.u32 %v1901_v55, 16  ;;  %v3109_v53 = vld [vmem:[#allocation4 + $0x98] sm:$0xff] }
  0x49   :  { %v4519_v27 = vshrl.u32 %v1902_v58, 16  ;;  %v1703_v13 = vxor.u32 %v4320_v59, %v1103_v4  ;;  %v2698_v14 = vand.u32 16777215, %v2498_v60  ;;  %v1704_v16 = vxor.u32 %v4321_v61, %v1104_v52 }
  0x4a   :  { %v2699_v15 = vand.u32 16777215, %v2499_v57  ;;  %v4122_v17 = vshrl.u32 %v305_v62, 16  ;;  %v2700_v18 = vand.u32 16777215, %v2500_v63  ;;  %v2501_v35 = vxor.u32 %v4518_v0, %v1901_v55 }
  0x4b   :  { %v2502_v25 = vxor.u32 %v4519_v27, %v1902_v58  ;;  %v1903_v37 = vmul.u32 2221713035, %v1703_v13  ;;  %vm2898_vm8 = vcmp.ge.s32.totalorder %v2698_v14, 1677722  ;;  %v1904_v20 = vmul.u32 2221713035, %v1704_v16 }
  0x4c   :  { %vm2899_vm9 = vcmp.ge.s32.totalorder %v2699_v15, 1677722  ;;  %v905_v21 = vxor.u32 %v4122_v17, %v305_v62  ;;  %v3698_v39 = vsel %vm2898_vm8, %v4862_v26, 0.0  ;;  %vm2900_vm10 = vcmp.ge.s32.totalorder %v2700_v18, 1677722 }
  0x4d   :  { %v3699_v23 = vsel %vm2899_vm9, %v4864_v31, 0.0  ;;  %v2701_v41 = vand.u32 16777215, %v2501_v35  ;;  %3898 = vst [vmem:[#allocation7 + $0x40] sm:$0xff] %v3698_v39  ;;  %v3700_v28 = vsel %vm2900_vm10, %v4873_v42, 0.0  ;;  %v4520_v30 = vshrl.u32 %v1903_v37, 16 }
  0x4e   :  { %3899 = vst [vmem:[#allocation7 + $0x48] sm:$0xff] %v3699_v23  ;;  %v2702_v29 = vand.u32 16777215, %v2502_v25  ;;  %v4521_v32 = vshrl.u32 %v1904_v20, 16  ;;  %3900 = vst [vmem:[#allocation7 + $0x50] sm:$0xff] %v3700_v28  ;;  %v3305_v34 = vmax.f32 %v3105_v19, 0.0 }
  0x4f   :  { %vm2901_vm11 = vcmp.ge.s32.totalorder %v2701_v41, 1677722  ;;  %v1105_v56 = vmul.u32 2146121005, %v905_v21  ;;  %v32_v36 = vadd.s32 16, %v4796_v1  ;;  %v2503_v31 = vxor.u32 %v4520_v30, %v1903_v37 }
  0x50   :  { %v3701_v26 = vsel %vm2901_vm11, %v4880_v49, 0.0  ;;  %vm2902_vm12 = vcmp.ge.s32.totalorder %v2702_v29, 1677722  ;;  %v2504_v38 = vxor.u32 %v4521_v32, %v1904_v20  ;;  %v3505_v42 = vmul.f32 1.1111112, %v3305_v34  ;;  %v3111_v20 = vld [vmem:[#allocation4 + $0xa8] sm:$0xff] }
  0x51   :  { %3901 = vst [vmem:[#allocation7 + $0x58] sm:$0xff] %v3701_v26  ;;  %v3702_v40 = vsel %vm2902_vm12, %v4887_v12, 0.0  ;;  %v4322_v43 = vshrl.u32 %v1105_v56, 15  ;;  %v4908_v44 = vmul.u32 1024, %v32_v36  ;;  %v2703_v46 = vand.u32 16777215, %v2503_v31 }
  0x52   :  { %3902 = vst [vmem:[#allocation7 + $0x60] sm:$0xff] %v3702_v40  ;;  %v2704_v47 = vand.u32 16777215, %v2504_v38  ;;  %v3306_v48 = vmax.f32 %v3106_v24, 0.0  ;;  %v3307_v4 = vmax.f32 %v3107_v33, 0.0  ;;  %v3108_v12 = vld [vmem:[#allocation4 + $0x90] sm:$0xff] }
  0x53   :  { %v1705_v50 = vxor.u32 %v4322_v43, %v1105_v56  ;;  %v105_v51 = vadd.s32 %v4798_v2, %v4908_v44  ;;  %v106_v49 = vadd.s32 %v4804_v5, %v4908_v44  ;;  %v107_v52 = vadd.s32 %v4807_v6, %v4908_v44 }
  0x54   :  { %vm2903_vm13 = vcmp.ge.s32.totalorder %v2703_v46, 1677722  ;;  %vm2904_vm14 = vcmp.ge.s32.totalorder %v2704_v47, 1677722  ;;  %v4916_v54 = vmul.f32 1.1111112, %v3306_v48  ;;  %v108_v55 = vadd.s32 %v4810_v7, %v4908_v44 }
  0x55   :  { %v3703_v58 = vsel %vm2903_vm13, %v4894_v22, 0.0  ;;  %v3704_v59 = vsel %vm2904_vm14, %v4897_v45, 0.0  ;;  %v1905_v60 = vmul.u32 2221713035, %v1705_v50  ;;  %v306_v57 = vadd.s32 %v4800_v3, %v105_v51  ;;  %v3110_v22 = vld [vmem:[#allocation4 + $0xa0] sm:$0xff]  ;;  %v3112_v51 = vld [vmem:[#allocation4 + $0xb0] sm:$0xff] }
  0x56   :  { %3903 = vst [vmem:[#allocation7 + $0x68] sm:$0xff] %v3703_v58  ;;  %3904 = vst [vmem:[#allocation7 + $0x70] sm:$0xff] %v3704_v59  ;;  %v307_v61 = vadd.s32 %v4800_v3, %v106_v49  ;;  %v4924_v62 = vmul.f32 1.1111112, %v3307_v4  ;;  %v308_v63 = vadd.s32 %v4800_v3, %v107_v52  ;;  %v3308_v0 = vmax.f32 %v3108_v12, 0.0 }
  0x57   :  { %v4522_v27 = vshrl.u32 %v1905_v60, 16  ;;  %v4123_v13 = vshrl.u32 %v306_v57, 16  ;;  %v309_v14 = vadd.s32 %v4800_v3, %v108_v55  ;;  %v3309_v15 = vmax.f32 %v3109_v53, 0.0 }
  0x58   :  { %v4124_v16 = vshrl.u32 %v307_v61, 16  ;;  %v4125_v45 = vshrl.u32 %v308_v63, 16  ;;  %v4928_v17 = vmul.f32 1.1111112, %v3308_v0  ;;  %v109_v18 = vadd.s32 %v4813_v8, %v4908_v44 }
  0x59   :  { %v2505_v35 = vxor.u32 %v4522_v27, %v1905_v60  ;;  %v906_v25 = vxor.u32 %v4123_v13, %v306_v57  ;;  %v4126_v37 = vshrl.u32 %v309_v14, 16  ;;  %v4932_v19 = vmul.f32 1.1111112, %v3309_v15 }
  0x5a   :  { %v907_v21 = vxor.u32 %v4124_v16, %v307_v61  ;;  %v908_v39 = vxor.u32 %v4125_v45, %v308_v63  ;;  %v310_v23 = vadd.s32 %v4800_v3, %v109_v18  ;;  %v3310_v41 = vmax.f32 %v3110_v22, 0.0 }
  0x5b   :  { %v2705_v24 = vand.u32 16777215, %v2505_v35  ;;  %v1106_v28 = vmul.u32 2146121005, %v906_v25  ;;  %v909_v29 = vxor.u32 %v4126_v37, %v309_v14  ;;  %v110_v30 = vadd.s32 %v4816_v9, %v4908_v44 }
  0x5c   :  { %v1107_v32 = vmul.u32 2146121005, %v907_v21  ;;  %v1108_v33 = vmul.u32 2146121005, %v908_v39  ;;  %v4127_v56 = vshrl.u32 %v310_v23, 16  ;;  %v3311_v34 = vmax.f32 %v3111_v20, 0.0 }
  0x5d   :  { %vm2905_vm15 = vcmp.ge.s32.totalorder %v2705_v24, 1677722  ;;  %v4323_v36 = vshrl.u32 %v1106_v28, 15  ;;  %v1109_v26 = vmul.u32 2146121005, %v909_v29  ;;  %v311_v31 = vadd.s32 %v4800_v3, %v110_v30 }
  0x5e   :  { %v3705_v38 = vsel %vm2905_vm15, %v3505_v42, 0.0  ;;  %v4324_v40 = vshrl.u32 %v1107_v32, 15  ;;  %v4325_v43 = vshrl.u32 %v1108_v33, 15  ;;  %v910_v46 = vxor.u32 %v4127_v56, %v310_v23 }
  0x5f   :  { %3905 = vst [vmem:[#allocation7 + $0x78] sm:$0xff] %v3705_v38  ;;  %v1706_v47 = vxor.u32 %v4323_v36, %v1106_v28  ;;  %v4326_v48 = vshrl.u32 %v1109_v26, 15  ;;  %v4938_v4 = vmul.f32 1.1111112, %v3310_v41  ;;  %v4128_v50 = vshrl.u32 %v311_v31, 16 }
  0x60   :  { %v1707_v49 = vxor.u32 %v4324_v40, %v1107_v32  ;;  %v1708_v52 = vxor.u32 %v4325_v43, %v1108_v33  ;;  %v1110_v12 = vmul.u32 2146121005, %v910_v46  ;;  %v4940_v53 = vmul.f32 1.1111112, %v3311_v34  ;;  %v3113_v34 = vld [vmem:[#allocation4 + $0xb8] sm:$0xff]  ;;  %v3114_v40 = vld [vmem:[#allocation4 + $0xc0] sm:$0xff] }
  0x61   :  { %v1906_v55 = vmul.u32 2221713035, %v1706_v47  ;;  %v1709_v58 = vxor.u32 %v4326_v48, %v1109_v26  ;;  %v911_v59 = vxor.u32 %v4128_v50, %v311_v31  ;;  %v111_v42 = vadd.s32 %v4819_v10, %v4908_v44  ;;  %v3115_v47 = vld [vmem:[#allocation4 + $0xc8] sm:$0xff] }
  0x62   :  { %v1907_v60 = vmul.u32 2221713035, %v1707_v49  ;;  %v1908_v57 = vmul.u32 2221713035, %v1708_v52  ;;  %v4327_v61 = vshrl.u32 %v1110_v12, 15  ;;  %v3312_v63 = vmax.f32 %v3112_v51, 0.0 }
  0x63   :  { %v4523_v0 = vshrl.u32 %v1906_v55, 16  ;;  %v1909_v27 = vmul.u32 2221713035, %v1709_v58  ;;  %v1111_v13 = vmul.u32 2146121005, %v911_v59  ;;  %v312_v14 = vadd.s32 %v4800_v3, %v111_v42  ;;  %v3116_v59 = vld [vmem:[#allocation4 + $0xd0] sm:$0xff] }
  0x64   :  { %v4524_v15 = vshrl.u32 %v1907_v60, 16  ;;  %v4525_v22 = vshrl.u32 %v1908_v57, 16  ;;  %v1710_v16 = vxor.u32 %v4327_v61, %v1110_v12  ;;  %v4945_v45 = vmul.f32 1.1111112, %v3312_v63 }
  0x65   :  { %v2506_v18 = vxor.u32 %v4523_v0, %v1906_v55  ;;  %v4526_v35 = vshrl.u32 %v1909_v27, 16  ;;  %v4328_v25 = vshrl.u32 %v1111_v13, 15  ;;  %v4129_v37 = vshrl.u32 %v312_v14, 16 }
  0x66   :  { %v2507_v20 = vxor.u32 %v4524_v15, %v1907_v60  ;;  %v2508_v21 = vxor.u32 %v4525_v22, %v1908_v57  ;;  %v1910_v39 = vmul.u32 2221713035, %v1710_v16  ;;  %v112_v23 = vadd.s32 %v4822_v11, %v4908_v44  ;;  %v3117_v15 = vld [vmem:[#allocation4 + $0xd8] sm:$0xff] }
  0x67   :  { %v2706_v41 = vand.u32 16777215, %v2506_v18  ;;  %v2509_v24 = vxor.u32 %v4526_v35, %v1909_v27  ;;  %v1711_v28 = vxor.u32 %v4328_v25, %v1111_v13  ;;  %v912_v29 = vxor.u32 %v4129_v37, %v312_v14 }
  0x68   :  { %v2707_v30 = vand.u32 16777215, %v2507_v20  ;;  %v2708_v32 = vand.u32 16777215, %v2508_v21  ;;  %v4527_v33 = vshrl.u32 %v1910_v39, 16  ;;  %v313_v56 = vadd.s32 %v4800_v3, %v112_v23 }
  0x69   :  { %vm2906_vm0 = vcmp.ge.s32.totalorder %v2706_v41, 1677722  ;;  %v2709_v36 = vand.u32 16777215, %v2509_v24  ;;  %v1911_v26 = vmul.u32 2221713035, %v1711_v28 }
  0x6a   :  { %v3706_v31 = vsel %vm2906_vm0, %v4916_v54, 0.0  ;;  %vm2907_vm1 = vcmp.ge.s32.totalorder %v2707_v30, 1677722  ;;  %vm2908_vm2 = vcmp.ge.s32.totalorder %v2708_v32, 1677722  ;;  %v2510_v38 = vxor.u32 %v4527_v33, %v1910_v39  ;;  %v3118_v32 = vld [vmem:[#allocation4 + $0xe0] sm:$0xff] }
  0x6b   :  { %3906 = vst [vmem:[#allocation7 + $0x80] sm:$0xff] %v3706_v31  ;;  %v3707_v44 = vsel %vm2907_vm1, %v4924_v62, 0.0  ;;  %v3708_v43 = vsel %vm2908_vm2, %v4928_v17, 0.0  ;;  %vm2909_vm3 = vcmp.ge.s32.totalorder %v2709_v36, 1677722  ;;  %v4528_v46 = vshrl.u32 %v1911_v26, 16 }
  0x6c   :  { %3907 = vst [vmem:[#allocation7 + $0x88] sm:$0xff] %v3707_v44  ;;  %3908 = vst [vmem:[#allocation7 + $0x90] sm:$0xff] %v3708_v43  ;;  %v3709_v48 = vsel %vm2909_vm3, %v4932_v19, 0.0  ;;  %v2710_v50 = vand.u32 16777215, %v2510_v38  ;;  %v4130_v49 = vshrl.u32 %v313_v56, 16 }
  0x6d   :  { %v1112_v51 = vmul.u32 2146121005, %v912_v29  ;;  %3909 = vst [vmem:[#allocation7 + $0x98] sm:$0xff] %v3709_v48  ;;  %v2511_v54 = vxor.u32 %v4528_v46, %v1911_v26  ;;  %v3313_v52 = vmax.f32 %v3113_v34, 0.0  ;;  %v33_v12 = vadd.s32 24, %v4796_v1 }
  0x6e   :  { %v3314_v55 = vmax.f32 %v3114_v40, 0.0  ;;  %vm2910_vm4 = vcmp.ge.s32.totalorder %v2710_v50, 1677722  ;;  %v913_v58 = vxor.u32 %v4130_v49, %v313_v56  ;;  %v3315_v17 = vmax.f32 %v3115_v47, 0.0 }
  0x6f   :  { %v4329_v62 = vshrl.u32 %v1112_v51, 15  ;;  %v3710_v42 = vsel %vm2910_vm4, %v4938_v4, 0.0  ;;  %v2711_v60 = vand.u32 16777215, %v2511_v54  ;;  %v4956_v57 = vmul.f32 1.1111112, %v3313_v52 }
  0x70   :  { %v4958_v19 = vmul.u32 1024, %v33_v12  ;;  %3910 = vst [vmem:[#allocation7 + $0xa0] sm:$0xff] %v3710_v42  ;;  %v1113_v63 = vmul.u32 2146121005, %v913_v58  ;;  %v4960_v0 = vmul.f32 1.1111112, %v3314_v55 }
  0x71   :  { %v1712_v61 = vxor.u32 %v4329_v62, %v1112_v51  ;;  %v4962_v27 = vmul.f32 1.1111112, %v3315_v17  ;;  %vm2911_vm5 = vcmp.ge.s32.totalorder %v2711_v60, 1677722  ;;  %v3316_v35 = vmax.f32 %v3116_v59, 0.0  ;;  %v3119_v59 = vld [vmem:[#allocation4 + $0xe8] sm:$0xff] }
  0x72   :  { %v113_v13 = vadd.s32 %v4798_v2, %v4958_v19  ;;  %v114_v14 = vadd.s32 %v4804_v5, %v4958_v19  ;;  %v115_v4 = vadd.s32 %v4807_v6, %v4958_v19  ;;  %v3711_v22 = vsel %vm2911_vm5, %v4940_v53, 0.0 }
  0x73   :  { %v1912_v16 = vmul.u32 2221713035, %v1712_v61  ;;  %v4330_v18 = vshrl.u32 %v1113_v63, 15  ;;  %3911 = vst [vmem:[#allocation7 + $0xa8] sm:$0xff] %v3711_v22  ;;  %v116_v21 = vadd.s32 %v4810_v7, %v4958_v19  ;;  %v4976_v41 = vmul.f32 1.1111112, %v3316_v35 }
  0x74   :  { %v314_v25 = vadd.s32 %v4800_v3, %v113_v13  ;;  %v315_v37 = vadd.s32 %v4800_v3, %v114_v14  ;;  %v316_v20 = vadd.s32 %v4800_v3, %v115_v4  ;;  %v3317_v24 = vmax.f32 %v3117_v15, 0.0 }
  0x75   :  { %v4529_v39 = vshrl.u32 %v1912_v16, 16  ;;  %v1713_v23 = vxor.u32 %v4330_v18, %v1113_v63  ;;  %v317_v30 = vadd.s32 %v4800_v3, %v116_v21  ;;  %v117_v36 = vadd.s32 %v4813_v8, %v4958_v19 }
  0x76   :  { %v4131_v28 = vshrl.u32 %v314_v25, 16  ;;  %v4132_v53 = vshrl.u32 %v315_v37, 16  ;;  %v4133_v29 = vshrl.u32 %v316_v20, 16  ;;  %v4979_v34 = vmul.f32 1.1111112, %v3317_v24 }
  0x77   :  { %v2512_v33 = vxor.u32 %v4529_v39, %v1912_v16  ;;  %v1913_v56 = vmul.u32 2221713035, %v1713_v23  ;;  %v4134_v40 = vshrl.u32 %v317_v30, 16  ;;  %v318_v46 = vadd.s32 %v4800_v3, %v117_v36 }
  0x78   :  { %v914_v26 = vxor.u32 %v4131_v28, %v314_v25  ;;  %v915_v31 = vxor.u32 %v4132_v53, %v315_v37  ;;  %v916_v38 = vxor.u32 %v4133_v29, %v316_v20  ;;  %v3318_v47 = vmax.f32 %v3118_v32, 0.0  ;;  %v3120_v20 = vld [vmem:[#allocation4 + $0xf0] sm:$0xff] }
  0x79   :  { %v2712_v44 = vand.u32 16777215, %v2512_v33  ;;  %v4530_v43 = vshrl.u32 %v1913_v56, 16  ;;  %v917_v51 = vxor.u32 %v4134_v40, %v317_v30  ;;  %v118_v49 = vadd.s32 %v4816_v9, %v4958_v19 }
  0x7a   :  { %v1114_v48 = vmul.u32 2146121005, %v914_v26  ;;  %v1115_v50 = vmul.u32 2146121005, %v915_v31  ;;  %v4135_v12 = vshrl.u32 %v318_v46, 16  ;;  %v3319_v18 = vmax.f32 %v3119_v59, 0.0 }
  0x7b   :  { %vm2912_vm6 = vcmp.ge.s32.totalorder %v2712_v44, 1677722  ;;  %v2513_v54 = vxor.u32 %v4530_v43, %v1913_v56  ;;  %v1116_v52 = vmul.u32 2146121005, %v916_v38  ;;  %v1117_v17 = vmul.u32 2146121005, %v917_v51 }
  0x7c   :  { %v3712_v55 = vsel %vm2912_vm6, %v4945_v45, 0.0  ;;  %v4331_v62 = vshrl.u32 %v1114_v48, 15  ;;  %v4332_v58 = vshrl.u32 %v1115_v50, 15  ;;  %v918_v61 = vxor.u32 %v4135_v12, %v318_v46 }
  0x7d   :  { %3912 = vst [vmem:[#allocation7 + $0xb0] sm:$0xff] %v3712_v55  ;;  %v2713_v42 = vand.u32 16777215, %v2513_v54  ;;  %v4333_v60 = vshrl.u32 %v1116_v52, 15  ;;  %v4987_v63 = vmul.f32 1.1111112, %v3318_v47  ;;  %v319_v15 = vadd.s32 %v4800_v3, %v118_v49 }
  0x7e   :  { %v1714_v13 = vxor.u32 %v4331_v62, %v1114_v48  ;;  %v1715_v14 = vxor.u32 %v4332_v58, %v1115_v50  ;;  %v4334_v4 = vshrl.u32 %v1117_v17, 15  ;;  %v1118_v16 = vmul.u32 2146121005, %v918_v61  ;;  %v3121_v55 = vld [vmem:[#allocation4 + $0xf8] sm:$0xff] }
  0x7f   :  { %vm2913_vm7 = vcmp.ge.s32.totalorder %v2713_v42, 1677722  ;;  %v1716_v22 = vxor.u32 %v4333_v60, %v1116_v52  ;;  %v4136_v23 = vshrl.u32 %v319_v15, 16  ;;  %v4991_v24 = vmul.f32 1.1111112, %v3319_v18  ;;  %v3122_v60 = vld [vmem:[#allocation4 + $0x100] sm:$0xff] }
  0x80   :  { %v3713_v45 = vsel %vm2913_vm7, %v4956_v57, 0.0  ;;  %v1914_v35 = vmul.u32 2221713035, %v1714_v13  ;;  %v1915_v25 = vmul.u32 2221713035, %v1715_v14  ;;  %v1717_v37 = vxor.u32 %v4334_v4, %v1117_v17 }
  0x81   :  { %3913 = vst [vmem:[#allocation7 + $0xb8] sm:$0xff] %v3713_v45  ;;  %v1916_v21 = vmul.u32 2221713035, %v1716_v22  ;;  %v4335_v39 = vshrl.u32 %v1118_v16, 15  ;;  %v119_v30 = vadd.s32 %v4819_v10, %v4958_v19  ;;  %v919_v56 = vxor.u32 %v4136_v23, %v319_v15 }
  0x82   :  { %v4531_v28 = vshrl.u32 %v1914_v35, 16  ;;  %v4532_v53 = vshrl.u32 %v1915_v25, 16  ;;  %v1917_v29 = vmul.u32 2221713035, %v1717_v37  ;;  %v3320_v57 = vmax.f32 %v3120_v20, 0.0 }
  0x83   :  { %v4533_v32 = vshrl.u32 %v1916_v21, 16  ;;  %v1718_v33 = vxor.u32 %v4335_v39, %v1118_v16  ;;  %v320_v38 = vadd.s32 %v4800_v3, %v119_v30  ;;  %v1119_v43 = vmul.u32 2146121005, %v919_v56 }
  0x84   :  { %v2514_v36 = vxor.u32 %v4531_v28, %v1914_v35  ;;  %v2515_v26 = vxor.u32 %v4532_v53, %v1915_v25  ;;  %v4534_v31 = vshrl.u32 %v1917_v29, 16  ;;  %v4996_v46 = vmul.f32 1.1111112, %v3320_v57  ;;  %v3124_v35 = vld [vmem:[#allocation4 + $0x110] sm:$0xff] }
  0x85   :  { %v2516_v40 = vxor.u32 %v4533_v32, %v1916_v21  ;;  %v1918_v44 = vmul.u32 2221713035, %v1718_v33  ;;  %v4137_v51 = vshrl.u32 %v320_v38, 16  ;;  %v4336_v52 = vshrl.u32 %v1119_v43, 15 }
  0x86   :  { %v2714_v47 = vand.u32 16777215, %v2514_v36  ;;  %v2715_v48 = vand.u32 16777215, %v2515_v26  ;;  %v2517_v50 = vxor.u32 %v4534_v31, %v1917_v29  ;;  %v120_v12 = vadd.s32 %v4822_v11, %v4958_v19  ;;  %v3123_v19 = vld [vmem:[#allocation4 + $0x108] sm:$0xff] }
  0x87   :  { %v2716_v49 = vand.u32 16777215, %v2516_v40  ;;  %v4535_v54 = vshrl.u32 %v1918_v44, 16  ;;  %v920_v58 = vxor.u32 %v4137_v51, %v320_v38  ;;  %v1719_v13 = vxor.u32 %v4336_v52, %v1119_v43 }
  0x88   :  { %vm2914_vm8 = vcmp.ge.s32.totalorder %v2714_v47, 1677722  ;;  %vm2915_vm9 = vcmp.ge.s32.totalorder %v2715_v48, 1677722  ;;  %v2717_v62 = vand.u32 16777215, %v2517_v50  ;;  %v321_v22 = vadd.s32 %v4800_v3, %v120_v12 }
  0x89   :  { %v3714_v17 = vsel %vm2914_vm8, %v4960_v0, 0.0  ;;  %v3715_v59 = vsel %vm2915_vm9, %v4962_v27, 0.0  ;;  %vm2916_vm10 = vcmp.ge.s32.totalorder %v2716_v49, 1677722  ;;  %v2518_v42 = vxor.u32 %v4535_v54, %v1918_v44 }
  0x8a   :  { %3914 = vst [vmem:[#allocation7 + $0xc0] sm:$0xff] %v3714_v17  ;;  %3915 = vst [vmem:[#allocation7 + $0xc8] sm:$0xff] %v3715_v59  ;;  %v3716_v61 = vsel %vm2916_vm10, %v4976_v41, 0.0  ;;  %vm2917_vm11 = vcmp.ge.s32.totalorder %v2717_v62, 1677722  ;;  %v3321_v0 = vmax.f32 %v3121_v55, 0.0 }
  0x8b   :  { %v1120_v14 = vmul.u32 2146121005, %v920_v58  ;;  %3916 = vst [vmem:[#allocation7 + $0xd0] sm:$0xff] %v3716_v61  ;;  %v3717_v4 = vsel %vm2917_vm11, %v4979_v34, 0.0  ;;  %v2718_v15 = vand.u32 16777215, %v2518_v42 }
  0x8c   :  { %3917 = vst [vmem:[#allocation7 + $0xd8] sm:$0xff] %v3717_v4  ;;  %v1919_v27 = vmul.u32 2221713035, %v1719_v13  ;;  %v34_v18 = vadd.s32 32, %v4796_v1  ;;  %v3322_v45 = vmax.f32 %v3122_v60, 0.0  ;;  %v4138_v41 = vshrl.u32 %v321_v22, 16 }
  0x8d   :  { %v4337_v16 = vshrl.u32 %v1120_v14, 15  ;;  %vm2918_vm12 = vcmp.ge.s32.totalorder %v2718_v15, 1677722  ;;  %v5006_v25 = vmul.f32 1.1111112, %v3321_v0  ;;  %v3323_v37 = vmax.f32 %v3123_v19, 0.0 }
  0x8e   :  { %v3718_v20 = vsel %vm2918_vm12, %v4987_v63, 0.0  ;;  %v4536_v21 = vshrl.u32 %v1919_v27, 16  ;;  %v5009_v39 = vmul.u32 1024, %v34_v18  ;;  %v921_v23 = vxor.u32 %v4138_v41, %v321_v22  ;;  %v3125_v63 = vld [vmem:[#allocation4 + $0x118] sm:$0xff]  ;;  %v3126_v4 = vld [vmem:[#allocation4 + $0x120] sm:$0xff] }
  0x8f   :  { %v1720_v34 = vxor.u32 %v4337_v16, %v1120_v14  ;;  %3918 = vst [vmem:[#allocation7 + $0xe0] sm:$0xff] %v3718_v20  ;;  %v5011_v28 = vmul.f32 1.1111112, %v3322_v45  ;;  %v5013_v53 = vmul.f32 1.1111112, %v3323_v37  ;;  %v3324_v29 = vmax.f32 %v3124_v35, 0.0 }
  0x90   :  { %v2519_v30 = vxor.u32 %v4536_v21, %v1919_v27  ;;  %v121_v33 = vadd.s32 %v4798_v2, %v5009_v39  ;;  %v122_v56 = vadd.s32 %v4804_v5, %v5009_v39  ;;  %v1121_v57 = vmul.u32 2146121005, %v921_v23 }
  0x91   :  { %v1920_v32 = vmul.u32 2221713035, %v1720_v34  ;;  %v123_v36 = vadd.s32 %v4807_v6, %v5009_v39  ;;  %v5021_v26 = vmul.f32 1.1111112, %v3324_v29  ;;  %v124_v31 = vadd.s32 %v4810_v7, %v5009_v39  ;;  %v3127_v29 = vld [vmem:[#allocation4 + $0x128] sm:$0xff] }
  0x92   :  { %v2719_v38 = vand.u32 16777215, %v2519_v30  ;;  %v322_v44 = vadd.s32 %v4800_v3, %v121_v33  ;;  %v323_v43 = vadd.s32 %v4800_v3, %v122_v56  ;;  %v4338_v47 = vshrl.u32 %v1121_v57, 15 }
  0x93   :  { %v4537_v40 = vshrl.u32 %v1920_v32, 16  ;;  %v324_v48 = vadd.s32 %v4800_v3, %v123_v36  ;;  %v325_v50 = vadd.s32 %v4800_v3, %v124_v31  ;;  %v3325_v51 = vmax.f32 %v3125_v63, 0.0 }
  0x94   :  { %vm2919_vm13 = vcmp.ge.s32.totalorder %v2719_v38, 1677722  ;;  %v4139_v54 = vshrl.u32 %v322_v44, 16  ;;  %v4140_v52 = vshrl.u32 %v323_v43, 16  ;;  %v1721_v55 = vxor.u32 %v4338_v47, %v1121_v57 }
  0x95   :  { %v2520_v49 = vxor.u32 %v4537_v40, %v1920_v32  ;;  %v3719_v12 = vsel %vm2919_vm13, %v4991_v24, 0.0  ;;  %v4141_v62 = vshrl.u32 %v324_v48, 16  ;;  %v4142_v58 = vshrl.u32 %v325_v50, 16 }
  0x96   :  { %3919 = vst [vmem:[#allocation7 + $0xe8] sm:$0xff] %v3719_v12  ;;  %v922_v59 = vxor.u32 %v4139_v54, %v322_v44  ;;  %v923_v42 = vxor.u32 %v4140_v52, %v323_v43  ;;  %v5030_v60 = vmul.f32 1.1111112, %v3325_v51  ;;  %v1921_v61 = vmul.u32 2221713035, %v1721_v55  ;;  %v3128_v52 = vld [vmem:[#allocation4 + $0x130] sm:$0xff] }
  0x97   :  { %v2720_v17 = vand.u32 16777215, %v2520_v49  ;;  %v924_v13 = vxor.u32 %v4141_v62, %v324_v48  ;;  %v925_v14 = vxor.u32 %v4142_v58, %v325_v50  ;;  %v125_v19 = vadd.s32 %v4813_v8, %v5009_v39 }
  0x98   :  { %v1122_v15 = vmul.u32 2146121005, %v922_v59  ;;  %v1123_v22 = vmul.u32 2146121005, %v923_v42  ;;  %v126_v24 = vadd.s32 %v4816_v9, %v5009_v39  ;;  %v4538_v27 = vshrl.u32 %v1921_v61, 16 }
  0x99   :  { %vm2920_vm14 = vcmp.ge.s32.totalorder %v2720_v17, 1677722  ;;  %v1124_v16 = vmul.u32 2146121005, %v924_v13  ;;  %v1125_v18 = vmul.u32 2146121005, %v925_v14  ;;  %v326_v41 = vadd.s32 %v4800_v3, %v125_v19 }
  0x9a   :  { %v3720_v0 = vsel %vm2920_vm14, %v4996_v46, 0.0  ;;  %v4339_v45 = vshrl.u32 %v1122_v15, 15  ;;  %v4340_v35 = vshrl.u32 %v1123_v22, 15  ;;  %v3326_v37 = vmax.f32 %v3126_v4, 0.0 }
  0x9b   :  { %3920 = vst [vmem:[#allocation7 + $0xf0] sm:$0xff] %v3720_v0  ;;  %v2521_v20 = vxor.u32 %v4538_v27, %v1921_v61  ;;  %v4341_v21 = vshrl.u32 %v1124_v16, 15  ;;  %v4342_v34 = vshrl.u32 %v1125_v18, 15  ;;  %v327_v23 = vadd.s32 %v4800_v3, %v126_v24  ;;  %v3129_v0 = vld [vmem:[#allocation4 + $0x138] sm:$0xff] }
  0x9c   :  { %v1722_v30 = vxor.u32 %v4339_v45, %v1122_v15  ;;  %v1723_v32 = vxor.u32 %v4340_v35, %v1123_v22  ;;  %v4143_v33 = vshrl.u32 %v326_v41, 16  ;;  %v5039_v56 = vmul.f32 1.1111112, %v3326_v37  ;;  %v3130_v35 = vld [vmem:[#allocation4 + $0x140] sm:$0xff] }
  0x9d   :  { %v2721_v46 = vand.u32 16777215, %v2521_v20  ;;  %v1724_v63 = vxor.u32 %v4341_v21, %v1124_v16  ;;  %v1725_v57 = vxor.u32 %v4342_v34, %v1125_v18  ;;  %v4144_v36 = vshrl.u32 %v327_v23, 16 }
  0x9e   :  { %v1922_v31 = vmul.u32 2221713035, %v1722_v30  ;;  %v1923_v38 = vmul.u32 2221713035, %v1723_v32  ;;  %v926_v40 = vxor.u32 %v4143_v33, %v326_v41  ;;  %v3327_v44 = vmax.f32 %v3127_v29, 0.0  ;;  %v3131_v41 = vld [vmem:[#allocation4 + $0x148] sm:$0xff] }
  0x9f   :  { %vm2921_vm15 = vcmp.ge.s32.totalorder %v2721_v46, 1677722  ;;  %v1924_v43 = vmul.u32 2221713035, %v1724_v63  ;;  %v1925_v47 = vmul.u32 2221713035, %v1725_v57  ;;  %v927_v48 = vxor.u32 %v4144_v36, %v327_v23 }
  0xa0   :  { %v3721_v50 = vsel %vm2921_vm15, %v5006_v25, 0.0  ;;  %v4539_v51 = vshrl.u32 %v1922_v31, 16  ;;  %v4540_v49 = vshrl.u32 %v1923_v38, 16  ;;  %v1126_v54 = vmul.u32 2146121005, %v926_v40 }
  0xa1   :  { %3921 = vst [vmem:[#allocation7 + $0xf8] sm:$0xff] %v3721_v50  ;;  %v4541_v12 = vshrl.u32 %v1924_v43, 16  ;;  %v4542_v55 = vshrl.u32 %v1925_v47, 16  ;;  %v1127_v62 = vmul.u32 2146121005, %v927_v48  ;;  %v127_v61 = vadd.s32 %v4819_v10, %v5009_v39 }
  0xa2   :  { %v5042_v58 = vmul.f32 1.1111112, %v3327_v44  ;;  %v2522_v17 = vxor.u32 %v4539_v51, %v1922_v31  ;;  %v2523_v59 = vxor.u32 %v4540_v49, %v1923_v38  ;;  %v4343_v42 = vshrl.u32 %v1126_v54, 15 }
  0xa3   :  { %v2524_v13 = vxor.u32 %v4541_v12, %v1924_v43  ;;  %v2525_v14 = vxor.u32 %v4542_v55, %v1925_v47  ;;  %v4344_v19 = vshrl.u32 %v1127_v62, 15  ;;  %v3328_v25 = vmax.f32 %v3128_v52, 0.0 }
  0xa4   :  { %v2722_v4 = vand.u32 16777215, %v2522_v17  ;;  %v2723_v15 = vand.u32 16777215, %v2523_v59  ;;  %v1726_v22 = vxor.u32 %v4343_v42, %v1126_v54  ;;  %v328_v24 = vadd.s32 %v4800_v3, %v127_v61  ;;  %v3133_v61 = vld [vmem:[#allocation4 + $0x158] sm:$0xff] }
  0xa5   :  { %v2724_v27 = vand.u32 16777215, %v2524_v13  ;;  %v2725_v16 = vand.u32 16777215, %v2525_v14  ;;  %v1727_v18 = vxor.u32 %v4344_v19, %v1127_v62  ;;  %v5047_v45 = vmul.f32 1.1111112, %v3328_v25 }
  0xa6   :  { %vm2922_vm0 = vcmp.ge.s32.totalorder %v2722_v4, 1677722  ;;  %vm2923_vm1 = vcmp.ge.s32.totalorder %v2723_v15, 1677722  ;;  %v1926_v37 = vmul.u32 2221713035, %v1726_v22  ;;  %v128_v20 = vadd.s32 %v4822_v11, %v5009_v39 }
  0xa7   :  { %v3722_v21 = vsel %vm2922_vm0, %v5011_v28, 0.0  ;;  %v3723_v34 = vsel %vm2923_vm1, %v5013_v53, 0.0  ;;  %vm2924_vm2 = vcmp.ge.s32.totalorder %v2724_v27, 1677722  ;;  %vm2925_vm3 = vcmp.ge.s32.totalorder %v2725_v16, 1677722 }
  0xa8   :  { %3922 = vst [vmem:[#allocation7 + $0x100] sm:$0xff] %v3722_v21  ;;  %3923 = vst [vmem:[#allocation7 + $0x108] sm:$0xff] %v3723_v34  ;;  %v3724_v23 = vsel %vm2924_vm2, %v5021_v26, 0.0  ;;  %v3725_v29 = vsel %vm2925_vm3, %v5030_v60, 0.0  ;;  %v4543_v30 = vshrl.u32 %v1926_v37, 16  ;;  %v4145_v33 = vshrl.u32 %v328_v24, 16 }
  0xa9   :  { %v1927_v32 = vmul.u32 2221713035, %v1727_v18  ;;  %3924 = vst [vmem:[#allocation7 + $0x110] sm:$0xff] %v3724_v23  ;;  %3925 = vst [vmem:[#allocation7 + $0x118] sm:$0xff] %v3725_v29  ;;  %v329_v46 = vadd.s32 %v4800_v3, %v128_v20  ;;  %v3329_v39 = vmax.f32 %v3129_v0, 0.0  ;;  %v35_v28 = vadd.s32 40, %v4796_v1 }
  0xaa   :  { %v2526_v63 = vxor.u32 %v4543_v30, %v1926_v37  ;;  %v3330_v57 = vmax.f32 %v3130_v35, 0.0  ;;  %v3331_v36 = vmax.f32 %v3131_v41, 0.0  ;;  %v928_v31 = vxor.u32 %v4145_v33, %v328_v24  ;;  %v3132_v60 = vld [vmem:[#allocation4 + $0x150] sm:$0xff]  ;;  %v3134_v37 = vld [vmem:[#allocation4 + $0x160] sm:$0xff] }
  0xab   :  { %v4544_v53 = vshrl.u32 %v1927_v32, 16  ;;  %v4146_v38 = vshrl.u32 %v329_v46, 16  ;;  %v5057_v40 = vmul.f32 1.1111112, %v3329_v39  ;;  %v5059_v26 = vmul.u32 1024, %v35_v28 }
  0xac   :  { %v2726_v44 = vand.u32 16777215, %v2526_v63  ;;  %v5061_v47 = vmul.f32 1.1111112, %v3330_v57  ;;  %v5063_v48 = vmul.f32 1.1111112, %v3331_v36 }
  0xad   :  { %v2527_v43 = vxor.u32 %v4544_v53, %v1927_v32  ;;  %v1128_v50 = vmul.u32 2146121005, %v928_v31  ;;  %v929_v51 = vxor.u32 %v4146_v38, %v329_v46  ;;  %v129_v49 = vadd.s32 %v4798_v2, %v5059_v26 }
  0xae   :  { %v130_v54 = vadd.s32 %v4804_v5, %v5059_v26  ;;  %vm2926_vm4 = vcmp.ge.s32.totalorder %v2726_v44, 1677722  ;;  %v131_v12 = vadd.s32 %v4807_v6, %v5059_v26  ;;  %v3332_v55 = vmax.f32 %v3132_v60, 0.0 }
  0xaf   :  { %v2727_v52 = vand.u32 16777215, %v2527_v43  ;;  %v3726_v62 = vsel %vm2926_vm4, %v5039_v56, 0.0  ;;  %v4345_v17 = vshrl.u32 %v1128_v50, 15  ;;  %v1129_v59 = vmul.u32 2146121005, %v929_v51 }
  0xb0   :  { %v330_v42 = vadd.s32 %v4800_v3, %v129_v49  ;;  %3926 = vst [vmem:[#allocation7 + $0x120] sm:$0xff] %v3726_v62  ;;  %v331_v13 = vadd.s32 %v4800_v3, %v130_v54  ;;  %v332_v14 = vadd.s32 %v4800_v3, %v131_v12  ;;  %v5075_v19 = vmul.f32 1.1111112, %v3332_v55  ;;  %v3135_v62 = vld [vmem:[#allocation4 + $0x168] sm:$0xff] }
  0xb1   :  { %vm2927_vm5 = vcmp.ge.s32.totalorder %v2727_v52, 1677722  ;;  %v1728_v4 = vxor.u32 %v4345_v17, %v1128_v50  ;;  %v4346_v15 = vshrl.u32 %v1129_v59, 15  ;;  %v132_v0 = vadd.s32 %v4810_v7, %v5059_v26 }
  0xb2   :  { %v3727_v25 = vsel %vm2927_vm5, %v5042_v58, 0.0  ;;  %v4147_v22 = vshrl.u32 %v330_v42, 16  ;;  %v4148_v56 = vshrl.u32 %v331_v13, 16  ;;  %v4149_v24 = vshrl.u32 %v332_v14, 16 }
  0xb3   :  { %3927 = vst [vmem:[#allocation7 + $0x128] sm:$0xff] %v3727_v25  ;;  %v3333_v27 = vmax.f32 %v3133_v61, 0.0  ;;  %v1928_v16 = vmul.u32 2221713035, %v1728_v4  ;;  %v1729_v18 = vxor.u32 %v4346_v15, %v1129_v59  ;;  %v133_v41 = vadd.s32 %v4813_v8, %v5059_v26 }
  0xb4   :  { %v930_v35 = vxor.u32 %v4147_v22, %v330_v42  ;;  %v931_v20 = vxor.u32 %v4148_v56, %v331_v13  ;;  %v932_v21 = vxor.u32 %v4149_v24, %v332_v14  ;;  %v333_v58 = vadd.s32 %v4800_v3, %v132_v0 }
  0xb5   :  { %v5083_v34 = vmul.f32 1.1111112, %v3333_v27  ;;  %v4545_v23 = vshrl.u32 %v1928_v16, 16  ;;  %v1929_v29 = vmul.u32 2221713035, %v1729_v18  ;;  %v334_v32 = vadd.s32 %v4800_v3, %v133_v41 }
  0xb6   :  { %v1130_v30 = vmul.u32 2146121005, %v930_v35  ;;  %v1131_v33 = vmul.u32 2146121005, %v931_v20  ;;  %v4150_v39 = vshrl.u32 %v333_v58, 16  ;;  %v3334_v28 = vmax.f32 %v3134_v37, 0.0 }
  0xb7   :  { %v1132_v46 = vmul.u32 2146121005, %v932_v21  ;;  %v2528_v63 = vxor.u32 %v4545_v23, %v1928_v16  ;;  %v4546_v53 = vshrl.u32 %v1929_v29, 16  ;;  %v4151_v36 = vshrl.u32 %v334_v32, 16 }
  0xb8   :  { %v4347_v57 = vshrl.u32 %v1130_v30, 15  ;;  %v4348_v31 = vshrl.u32 %v1131_v33, 15  ;;  %v933_v60 = vxor.u32 %v4150_v39, %v333_v58  ;;  %v5086_v44 = vmul.f32 1.1111112, %v3334_v28 }
  0xb9   :  { %v4349_v38 = vshrl.u32 %v1132_v46, 15  ;;  %v2728_v43 = vand.u32 16777215, %v2528_v63  ;;  %v2529_v50 = vxor.u32 %v4546_v53, %v1929_v29  ;;  %v934_v49 = vxor.u32 %v4151_v36, %v334_v32  ;;  %v3136_v32 = vld [vmem:[#allocation4 + $0x170] sm:$0xff] }
  0xba   :  { %v1730_v51 = vxor.u32 %v4347_v57, %v1130_v30  ;;  %v1731_v54 = vxor.u32 %v4348_v31, %v1131_v33  ;;  %v1133_v12 = vmul.u32 2146121005, %v933_v60  ;;  %v134_v55 = vadd.s32 %v4816_v9, %v5059_v26  ;;  %v3137_v31 = vld [vmem:[#allocation4 + $0x178] sm:$0xff] }
  0xbb   :  { %v1732_v52 = vxor.u32 %v4349_v38, %v1132_v46  ;;  %vm2928_vm6 = vcmp.ge.s32.totalorder %v2728_v43, 1677722  ;;  %v2729_v17 = vand.u32 16777215, %v2529_v50  ;;  %v135_v42 = vadd.s32 %v4819_v10, %v5059_v26 }
  0xbc   :  { %v1930_v59 = vmul.u32 2221713035, %v1730_v51  ;;  %v3728_v61 = vsel %vm2928_vm6, %v5047_v45, 0.0  ;;  %v1931_v13 = vmul.u32 2221713035, %v1731_v54  ;;  %v4350_v25 = vshrl.u32 %v1133_v12, 15 }
  0xbd   :  { %v1932_v14 = vmul.u32 2221713035, %v1732_v52  ;;  %3928 = vst [vmem:[#allocation7 + $0x130] sm:$0xff] %v3728_v61  ;;  %vm2929_vm7 = vcmp.ge.s32.totalorder %v2729_v17, 1677722  ;;  %v335_v22 = vadd.s32 %v4800_v3, %v134_v55  ;;  %v3335_v41 = vmax.f32 %v3135_v62, 0.0 }
  0xbe   :  { %v4547_v4 = vshrl.u32 %v1930_v59, 16  ;;  %v1134_v15 = vmul.u32 2146121005, %v934_v49  ;;  %v3729_v56 = vsel %vm2929_vm7, %v5057_v40, 0.0  ;;  %v4548_v24 = vshrl.u32 %v1931_v13, 16  ;;  %v3138_v62 = vld [vmem:[#allocation4 + $0x180] sm:$0xff] }
  0xbf   :  { %v4549_v0 = vshrl.u32 %v1932_v14, 16  ;;  %v1733_v27 = vxor.u32 %v4350_v25, %v1133_v12  ;;  %3929 = vst [vmem:[#allocation7 + $0x138] sm:$0xff] %v3729_v56  ;;  %v4152_v35 = vshrl.u32 %v335_v22, 16  ;;  %v336_v21 = vadd.s32 %v4800_v3, %v135_v42  ;;  %v3139_v17 = vld [vmem:[#allocation4 + $0x188] sm:$0xff] }
  0xc0   :  { %v2530_v16 = vxor.u32 %v4547_v4, %v1930_v59  ;;  %v4351_v18 = vshrl.u32 %v1134_v15, 15  ;;  %v2531_v45 = vxor.u32 %v4548_v24, %v1931_v13  ;;  %v5096_v30 = vmul.f32 1.1111112, %v3335_v41 }
  0xc1   :  { %v2532_v37 = vxor.u32 %v4549_v0, %v1932_v14  ;;  %v1933_v20 = vmul.u32 2221713035, %v1733_v27  ;;  %v935_v29 = vxor.u32 %v4152_v35, %v335_v22  ;;  %v4153_v39 = vshrl.u32 %v336_v21, 16  ;;  %v3140_v0 = vld [vmem:[#allocation4 + $0x190] sm:$0xff] }
  0xc2   :  { %v2730_v58 = vand.u32 16777215, %v2530_v16  ;;  %v1734_v23 = vxor.u32 %v4351_v18, %v1134_v15  ;;  %v2731_v40 = vand.u32 16777215, %v2531_v45  ;;  %v136_v53 = vadd.s32 %v4822_v11, %v5059_v26 }
  0xc3   :  { %v2732_v33 = vand.u32 16777215, %v2532_v37  ;;  %v4550_v46 = vshrl.u32 %v1933_v20, 16  ;;  %v1135_v63 = vmul.u32 2146121005, %v935_v29  ;;  %v936_v49 = vxor.u32 %v4153_v39, %v336_v21 }
  0xc4   :  { %vm2930_vm8 = vcmp.ge.s32.totalorder %v2730_v58, 1677722  ;;  %v1934_v28 = vmul.u32 2221713035, %v1734_v23  ;;  %vm2931_vm9 = vcmp.ge.s32.totalorder %v2731_v40, 1677722  ;;  %v337_v26 = vadd.s32 %v4800_v3, %v136_v53 }
  0xc5   :  { %v3730_v57 = vsel %vm2930_vm8, %v5061_v47, 0.0  ;;  %vm2932_vm10 = vcmp.ge.s32.totalorder %v2732_v33, 1677722  ;;  %v2533_v36 = vxor.u32 %v4550_v46, %v1933_v20  ;;  %v3731_v38 = vsel %vm2931_vm9, %v5063_v48, 0.0 }
  0xc6   :  { %3930 = vst [vmem:[#allocation7 + $0x140] sm:$0xff] %v3730_v57  ;;  %v3732_v60 = vsel %vm2932_vm10, %v5075_v19, 0.0  ;;  %v4551_v43 = vshrl.u32 %v1934_v28, 16  ;;  %v4352_v50 = vshrl.u32 %v1135_v63, 15  ;;  %3931 = vst [vmem:[#allocation7 + $0x148] sm:$0xff] %v3731_v38  ;;  %v3336_v54 = vmax.f32 %v3136_v32, 0.0 }
  0xc7   :  { %3932 = vst [vmem:[#allocation7 + $0x150] sm:$0xff] %v3732_v60  ;;  %v2733_v51 = vand.u32 16777215, %v2533_v36  ;;  %v3337_v12 = vmax.f32 %v3137_v31, 0.0  ;;  %v36_v55 = vadd.s32 48, %v4796_v1  ;;  %v4154_v13 = vshrl.u32 %v337_v26, 16 }
  0xc8   :  { %v2534_v52 = vxor.u32 %v4551_v43, %v1934_v28  ;;  %v1735_v47 = vxor.u32 %v4352_v50, %v1135_v63  ;;  %v1136_v48 = vmul.u32 2146121005, %v936_v49  ;;  %v5105_v59 = vmul.f32 1.1111112, %v3336_v54  ;;  %v3141_v63 = vld [vmem:[#allocation4 + $0x198] sm:$0xff] }
  0xc9   :  { %vm2933_vm11 = vcmp.ge.s32.totalorder %v2733_v51, 1677722  ;;  %v5108_v25 = vmul.f32 1.1111112, %v3337_v12  ;;  %v5110_v4 = vmul.u32 1024, %v36_v55  ;;  %v3338_v15 = vmax.f32 %v3138_v62, 0.0 }
  0xca   :  { %v3733_v19 = vsel %vm2933_vm11, %v5083_v34, 0.0  ;;  %v2734_v42 = vand.u32 16777215, %v2534_v52  ;;  %v1935_v61 = vmul.u32 2221713035, %v1735_v47  ;;  %v4353_v14 = vshrl.u32 %v1136_v48, 15 }
  0xcb   :  { %3933 = vst [vmem:[#allocation7 + $0x158] sm:$0xff] %v3733_v19  ;;  %v937_v56 = vxor.u32 %v4154_v13, %v337_v26  ;;  %v3339_v24 = vmax.f32 %v3139_v17, 0.0  ;;  %v137_v34 = vadd.s32 %v4798_v2, %v5110_v4  ;;  %v5115_v18 = vmul.f32 1.1111112, %v3338_v15 }
  0xcc   :  { %vm2934_vm12 = vcmp.ge.s32.totalorder %v2734_v42, 1677722  ;;  %v4552_v22 = vshrl.u32 %v1935_v61, 16  ;;  %v1736_v16 = vxor.u32 %v4353_v14, %v1136_v48  ;;  %v138_v45 = vadd.s32 %v4804_v5, %v5110_v4 }
  0xcd   :  { %v3734_v27 = vsel %vm2934_vm12, %v5086_v44, 0.0  ;;  %v1137_v41 = vmul.u32 2146121005, %v937_v56  ;;  %v5119_v37 = vmul.f32 1.1111112, %v3339_v24  ;;  %v338_v21 = vadd.s32 %v4800_v3, %v137_v34 }
  0xce   :  { %3934 = vst [vmem:[#allocation7 + $0x160] sm:$0xff] %v3734_v27  ;;  %v2535_v35 = vxor.u32 %v4552_v22, %v1935_v61  ;;  %v1936_v20 = vmul.u32 2221713035, %v1736_v16  ;;  %v139_v44 = vadd.s32 %v4807_v6, %v5110_v4  ;;  %v3340_v58 = vmax.f32 %v3140_v0, 0.0 }
  0xcf   :  { %v4354_v29 = vshrl.u32 %v1137_v41, 15  ;;  %v339_v32 = vadd.s32 %v4800_v3, %v138_v45  ;;  %v140_v40 = vadd.s32 %v4810_v7, %v5110_v4  ;;  %v4155_v46 = vshrl.u32 %v338_v21, 16 }
  0xd0   :  { %v2735_v23 = vand.u32 16777215, %v2535_v35  ;;  %v4553_v33 = vshrl.u32 %v1936_v20, 16  ;;  %v340_v39 = vadd.s32 %v4800_v3, %v139_v44  ;;  %v5128_v28 = vmul.f32 1.1111112, %v3340_v58 }
  0xd1   :  { %v1737_v53 = vxor.u32 %v4354_v29, %v1137_v41  ;;  %v4156_v57 = vshrl.u32 %v339_v32, 16  ;;  %v341_v36 = vadd.s32 %v4800_v3, %v140_v40  ;;  %v938_v60 = vxor.u32 %v4155_v46, %v338_v21 }
  0xd2   :  { %vm2935_vm13 = vcmp.ge.s32.totalorder %v2735_v23, 1677722  ;;  %v2536_v38 = vxor.u32 %v4553_v33, %v1936_v20  ;;  %v4157_v43 = vshrl.u32 %v340_v39, 16  ;;  %v3341_v54 = vmax.f32 %v3141_v63, 0.0 }
  0xd3   :  { %v3735_v31 = vsel %vm2935_vm13, %v5096_v30, 0.0  ;;  %v1937_v50 = vmul.u32 2221713035, %v1737_v53  ;;  %v939_v51 = vxor.u32 %v4156_v57, %v339_v32  ;;  %v4158_v49 = vshrl.u32 %v341_v36, 16  ;;  %v3142_v30 = vld [vmem:[#allocation4 + $0x1a0] sm:$0xff] }
  0xd4   :  { %3935 = vst [vmem:[#allocation7 + $0x168] sm:$0xff] %v3735_v31  ;;  %v2736_v26 = vand.u32 16777215, %v2536_v38  ;;  %v1138_v52 = vmul.u32 2146121005, %v938_v60  ;;  %v940_v47 = vxor.u32 %v4157_v43, %v340_v39  ;;  %v141_v12 = vadd.s32 %v4813_v8, %v5110_v4  ;;  %v3144_v43 = vld [vmem:[#allocation4 + $0x1b0] sm:$0xff] }
  0xd5   :  { %v4554_v55 = vshrl.u32 %v1937_v50, 16  ;;  %v1139_v62 = vmul.u32 2146121005, %v939_v51  ;;  %v941_v17 = vxor.u32 %v4158_v49, %v341_v36  ;;  %v5134_v48 = vmul.f32 1.1111112, %v3341_v54 }
  0xd6   :  { %vm2936_vm14 = vcmp.ge.s32.totalorder %v2736_v26, 1677722  ;;  %v4355_v19 = vshrl.u32 %v1138_v52, 15  ;;  %v1140_v42 = vmul.u32 2146121005, %v940_v47  ;;  %v342_v61 = vadd.s32 %v4800_v3, %v141_v12 }
  0xd7   :  { %v3736_v13 = vsel %vm2936_vm14, %v5105_v59, 0.0  ;;  %v2537_v14 = vxor.u32 %v4554_v55, %v1937_v50  ;;  %v4356_v15 = vshrl.u32 %v1139_v62, 15  ;;  %v1141_v22 = vmul.u32 2146121005, %v941_v17  ;;  %v3143_v59 = vld [vmem:[#allocation4 + $0x1a8] sm:$0xff] }
  0xd8   :  { %3936 = vst [vmem:[#allocation7 + $0x170] sm:$0xff] %v3736_v13  ;;  %v1738_v56 = vxor.u32 %v4355_v19, %v1138_v52  ;;  %v4357_v24 = vshrl.u32 %v1140_v42, 15  ;;  %v4159_v0 = vshrl.u32 %v342_v61, 16  ;;  %v3342_v27 = vmax.f32 %v3142_v30, 0.0 }
  0xd9   :  { %v2737_v16 = vand.u32 16777215, %v2537_v14  ;;  %v1739_v34 = vxor.u32 %v4356_v15, %v1139_v62  ;;  %v4358_v35 = vshrl.u32 %v1141_v22, 15  ;;  %v142_v41 = vadd.s32 %v4816_v9, %v5110_v4 }
  0xda   :  { %v1938_v45 = vmul.u32 2221713035, %v1738_v56  ;;  %v1740_v20 = vxor.u32 %v4357_v24, %v1140_v42  ;;  %v942_v21 = vxor.u32 %v4159_v0, %v342_v61  ;;  %v5140_v44 = vmul.f32 1.1111112, %v3342_v27  ;;  %v3145_v61 = vld [vmem:[#allocation4 + $0x1b8] sm:$0xff]  ;;  %v3146_v0 = vld [vmem:[#allocation4 + $0x1c0] sm:$0xff] }
  0xdb   :  { %vm2937_vm15 = vcmp.ge.s32.totalorder %v2737_v16, 1677722  ;;  %v1939_v58 = vmul.u32 2221713035, %v1739_v34  ;;  %v1741_v23 = vxor.u32 %v4358_v35, %v1141_v22  ;;  %v343_v29 = vadd.s32 %v4800_v3, %v142_v41 }
  0xdc   :  { %v3737_v32 = vsel %vm2937_vm15, %v5108_v25, 0.0  ;;  %v4555_v40 = vshrl.u32 %v1938_v45, 16  ;;  %v1940_v33 = vmul.u32 2221713035, %v1740_v20  ;;  %v1142_v46 = vmul.u32 2146121005, %v942_v21 }
  0xdd   :  { %3937 = vst [vmem:[#allocation7 + $0x178] sm:$0xff] %v3737_v32  ;;  %v4556_v39 = vshrl.u32 %v1939_v58, 16  ;;  %v1941_v63 = vmul.u32 2221713035, %v1741_v23  ;;  %v4160_v53 = vshrl.u32 %v343_v29, 16  ;;  %v3343_v57 = vmax.f32 %v3143_v59, 0.0 }
  0xde   :  { %v2538_v36 = vxor.u32 %v4555_v40, %v1938_v45  ;;  %v4557_v31 = vshrl.u32 %v1940_v33, 16  ;;  %v4359_v38 = vshrl.u32 %v1142_v46, 15  ;;  %v143_v60 = vadd.s32 %v4819_v10, %v5110_v4 }
  0xdf   :  { %v2539_v50 = vxor.u32 %v4556_v39, %v1939_v58  ;;  %v4558_v51 = vshrl.u32 %v1941_v63, 16  ;;  %v943_v49 = vxor.u32 %v4160_v53, %v343_v29  ;;  %v5146_v54 = vmul.f32 1.1111112, %v3343_v57  ;;  %v3148_v58 = vld [vmem:[#allocation4 + $0x1d0] sm:$0xff] }
  0xe0   :  { %v2738_v25 = vand.u32 16777215, %v2538_v36  ;;  %v2540_v26 = vxor.u32 %v4557_v31, %v1940_v33  ;;  %v1742_v52 = vxor.u32 %v4359_v38, %v1142_v46  ;;  %v344_v47 = vadd.s32 %v4800_v3, %v143_v60 }
  0xe1   :  { %v2739_v12 = vand.u32 16777215, %v2539_v50  ;;  %v2541_v55 = vxor.u32 %v4558_v51, %v1941_v63  ;;  %v1143_v62 = vmul.u32 2146121005, %v943_v49  ;;  %v3344_v17 = vmax.f32 %v3144_v43, 0.0 }
  0xe2   :  { %vm2938_vm0 = vcmp.ge.s32.totalorder %v2738_v25, 1677722  ;;  %v2740_v30 = vand.u32 16777215, %v2540_v26  ;;  %v1942_v19 = vmul.u32 2221713035, %v1742_v52  ;;  %v144_v42 = vadd.s32 %v4822_v11, %v5110_v4 }
  0xe3   :  { %v3738_v13 = vsel %vm2938_vm0, %v5115_v18, 0.0  ;;  %vm2939_vm1 = vcmp.ge.s32.totalorder %v2739_v12, 1677722  ;;  %v2741_v14 = vand.u32 16777215, %v2541_v55  ;;  %v4360_v15 = vshrl.u32 %v1143_v62, 15 }
  0xe4   :  { %3938 = vst [vmem:[#allocation7 + $0x180] sm:$0xff] %v3738_v13  ;;  %v3739_v22 = vsel %vm2939_vm1, %v5119_v37, 0.0  ;;  %vm2940_vm2 = vcmp.ge.s32.totalorder %v2740_v30, 1677722  ;;  %v4559_v56 = vshrl.u32 %v1942_v19, 16  ;;  %v4161_v24 = vshrl.u32 %v344_v47, 16 }
  0xe5   :  { %3939 = vst [vmem:[#allocation7 + $0x188] sm:$0xff] %v3739_v22  ;;  %v3740_v27 = vsel %vm2940_vm2, %v5128_v28, 0.0  ;;  %vm2941_vm3 = vcmp.ge.s32.totalorder %v2741_v14, 1677722  ;;  %v1743_v16 = vxor.u32 %v4360_v15, %v1143_v62  ;;  %v5154_v34 = vmul.f32 1.1111112, %v3344_v17 }
  0xe6   :  { %v3147_v4 = vld [vmem:[#allocation4 + $0x1c8] sm:$0xff]  ;;  %3940 = vst [vmem:[#allocation7 + $0x190] sm:$0xff] %v3740_v27  ;;  %v3741_v18 = vsel %vm2941_vm3, %v5134_v48, 0.0  ;;  %v2542_v35 = vxor.u32 %v4559_v56, %v1942_v19  ;;  %v944_v41 = vxor.u32 %v4161_v24, %v344_v47  ;;  %v345_v45 = vadd.s32 %v4800_v3, %v144_v42  ;;  %v3149_v62 = vld [vmem:[#allocation4 + $0x1d8] sm:$0xff] }
  0xe7   :  { %3941 = vst [vmem:[#allocation7 + $0x198] sm:$0xff] %v3741_v18  ;;  %v1943_v37 = vmul.u32 2221713035, %v1743_v16  ;;  %v3345_v20 = vmax.f32 %v3145_v61, 0.0  ;;  %v37_v21 = vadd.s32 56, %v4796_v1  ;;  %v3346_v59 = vmax.f32 %v3146_v0, 0.0 }
  0xe8   :  { %v2742_v28 = vand.u32 16777215, %v2542_v35  ;;  %v1144_v23 = vmul.u32 2146121005, %v944_v41  ;;  %v4162_v29 = vshrl.u32 %v345_v45, 16  ;;  %v3347_v32 = vmax.f32 %v3147_v4, 0.0 }
  0xe9   :  { %v4560_v40 = vshrl.u32 %v1943_v37, 16  ;;  %v5159_v33 = vmul.f32 1.1111112, %v3345_v20  ;;  %v5161_v46 = vmul.u32 1024, %v37_v21  ;;  %v5163_v48 = vmul.f32 1.1111112, %v3346_v59 }
  0xea   :  { %vm2942_vm4 = vcmp.ge.s32.totalorder %v2742_v28, 1677722  ;;  %v4361_v39 = vshrl.u32 %v1144_v23, 15  ;;  %v945_v63 = vxor.u32 %v4162_v29, %v345_v45  ;;  %v5165_v53 = vmul.f32 1.1111112, %v3347_v32  ;;  %v3150_v18 = vld [vmem:[#allocation4 + $0x1e0] sm:$0xff] }
  0xeb   :  { %v3742_v57 = vsel %vm2942_vm4, %v5140_v44, 0.0  ;;  %v2543_v36 = vxor.u32 %v4560_v40, %v1943_v37  ;;  %v145_v31 = vadd.s32 %v4798_v2, %v5161_v46  ;;  %v146_v38 = vadd.s32 %v4804_v5, %v5161_v46 }
  0xec   :  { %3942 = vst [vmem:[#allocation7 + $0x1a0] sm:$0xff] %v3742_v57  ;;  %v1744_v60 = vxor.u32 %v4361_v39, %v1144_v23  ;;  %v1145_v43 = vmul.u32 2146121005, %v945_v63  ;;  %v147_v50 = vadd.s32 %v4807_v6, %v5161_v46  ;;  %v3348_v51 = vmax.f32 %v3148_v58, 0.0 }
  0xed   :  { %v2743_v49 = vand.u32 16777215, %v2543_v36  ;;  %v346_v25 = vadd.s32 %v4800_v3, %v145_v31  ;;  %v347_v26 = vadd.s32 %v4800_v3, %v146_v38  ;;  %v148_v44 = vadd.s32 %v4810_v7, %v5161_v46 }
  0xee   :  { %v1944_v52 = vmul.u32 2221713035, %v1744_v60  ;;  %v4362_v47 = vshrl.u32 %v1145_v43, 15  ;;  %v348_v12 = vadd.s32 %v4800_v3, %v147_v50  ;;  %v5179_v55 = vmul.f32 1.1111112, %v3348_v51 }
  0xef   :  { %vm2943_vm5 = vcmp.ge.s32.totalorder %v2743_v49, 1677722  ;;  %v4163_v17 = vshrl.u32 %v346_v25, 16  ;;  %v4164_v30 = vshrl.u32 %v347_v26, 16  ;;  %v349_v19 = vadd.s32 %v4800_v3, %v148_v44  ;;  %v3151_v44 = vld [vmem:[#allocation4 + $0x1e8] sm:$0xff] }
  0xf0   :  { %v3743_v42 = vsel %vm2943_vm5, %v5146_v54, 0.0  ;;  %v4561_v61 = vshrl.u32 %v1944_v52, 16  ;;  %v1745_v13 = vxor.u32 %v4362_v47, %v1145_v43  ;;  %v4165_v14 = vshrl.u32 %v348_v12, 16 }
  0xf1   :  { %3943 = vst [vmem:[#allocation7 + $0x1a8] sm:$0xff] %v3743_v42  ;;  %v946_v15 = vxor.u32 %v4163_v17, %v346_v25  ;;  %v947_v22 = vxor.u32 %v4164_v30, %v347_v26  ;;  %v4166_v56 = vshrl.u32 %v349_v19, 16  ;;  %v3349_v24 = vmax.f32 %v3149_v62, 0.0 }
  0xf2   :  { %v2544_v0 = vxor.u32 %v4561_v61, %v1944_v52  ;;  %v1945_v27 = vmul.u32 2221713035, %v1745_v13  ;;  %v948_v16 = vxor.u32 %v4165_v14, %v348_v12  ;;  %v149_v4 = vadd.s32 %v4813_v8, %v5161_v46 }
  0xf3   :  { %v1146_v35 = vmul.u32 2146121005, %v946_v15  ;;  %v1147_v41 = vmul.u32 2146121005, %v947_v22  ;;  %v949_v45 = vxor.u32 %v4166_v56, %v349_v19  ;;  %v5185_v37 = vmul.f32 1.1111112, %v3349_v24 }
  0xf4   :  { %v2744_v54 = vand.u32 16777215, %v2544_v0  ;;  %v4562_v20 = vshrl.u32 %v1945_v27, 16  ;;  %v1148_v21 = vmul.u32 2146121005, %v948_v16  ;;  %v350_v59 = vadd.s32 %v4800_v3, %v149_v4  ;;  %v3152_v24 = vld [vmem:[#allocation4 + $0x1f0] sm:$0xff] }
  0xf5   :  { %v4363_v58 = vshrl.u32 %v1146_v35, 15  ;;  %v4364_v28 = vshrl.u32 %v1147_v41, 15  ;;  %v1149_v23 = vmul.u32 2146121005, %v949_v45  ;;  %v3350_v29 = vmax.f32 %v3150_v18, 0.0 }
  0xf6   :  { %vm2944_vm6 = vcmp.ge.s32.totalorder %v2744_v54, 1677722  ;;  %v2545_v32 = vxor.u32 %v4562_v20, %v1945_v27  ;;  %v4365_v40 = vshrl.u32 %v1148_v21, 15  ;;  %v4167_v39 = vshrl.u32 %v350_v59, 16 }
  0xf7   :  { %v3744_v63 = vsel %vm2944_vm6, %v5154_v34, 0.0  ;;  %v1746_v57 = vxor.u32 %v4363_v58, %v1146_v35  ;;  %v1747_v36 = vxor.u32 %v4364_v28, %v1147_v41  ;;  %v4366_v31 = vshrl.u32 %v1149_v23, 15 }
  0xf8   :  { %3944 = vst [vmem:[#allocation7 + $0x1b0] sm:$0xff] %v3744_v63  ;;  %v2745_v38 = vand.u32 16777215, %v2545_v32  ;;  %v1748_v60 = vxor.u32 %v4365_v40, %v1148_v21  ;;  %v950_v43 = vxor.u32 %v4167_v39, %v350_v59  ;;  %v5189_v50 = vmul.f32 1.1111112, %v3350_v29  ;;  %v3153_v59 = vld [vmem:[#allocation4 + $0x1f8] sm:$0xff] }
  0xf9   :  { %v1946_v51 = vmul.u32 2221713035, %v1746_v57  ;;  %v1947_v49 = vmul.u32 2221713035, %v1747_v36  ;;  %v1749_v25 = vxor.u32 %v4366_v31, %v1149_v23  ;;  %v150_v26 = vadd.s32 %v4816_v9, %v5161_v46  ;;  %v3154_v40 = vld [vmem:[#allocation4 + $0x200] sm:$0xff]  ;;  %v3155_v36 = vld [vmem:[#allocation4 + $0x208] sm:$0xff] }
  0xfa   :  { %vm2945_vm7 = vcmp.ge.s32.totalorder %v2745_v38, 1677722  ;;  %v1948_v52 = vmul.u32 2221713035, %v1748_v60  ;;  %v1150_v47 = vmul.u32 2146121005, %v950_v43  ;;  %v151_v34 = vadd.s32 %v4819_v10, %v5161_v46 }
  0xfb   :  { %v3745_v12 = vsel %vm2945_vm7, %v5159_v33, 0.0  ;;  %v4563_v62 = vshrl.u32 %v1946_v51, 16  ;;  %v4564_v17 = vshrl.u32 %v1947_v49, 16  ;;  %v1949_v30 = vmul.u32 2221713035, %v1749_v25 }
  0xfc   :  { %3945 = vst [vmem:[#allocation7 + $0x1b8] sm:$0xff] %v3745_v12  ;;  %v4565_v19 = vshrl.u32 %v1948_v52, 16  ;;  %v4367_v42 = vshrl.u32 %v1150_v47, 15  ;;  %v351_v61 = vadd.s32 %v4800_v3, %v150_v26  ;;  %v3351_v13 = vmax.f32 %v3151_v44, 0.0 }
  0xfd   :  { %v2546_v14 = vxor.u32 %v4563_v62, %v1946_v51  ;;  %v2547_v15 = vxor.u32 %v4564_v17, %v1947_v49  ;;  %v4566_v22 = vshrl.u32 %v1949_v30, 16  ;;  %v352_v56 = vadd.s32 %v4800_v3, %v151_v34  ;;  %v3156_v34 = vld [vmem:[#allocation4 + $0x210] sm:$0xff] }
  0xfe   :  { %v2548_v0 = vxor.u32 %v4565_v19, %v1948_v52  ;;  %v1750_v27 = vxor.u32 %v4367_v42, %v1150_v47  ;;  %v4168_v16 = vshrl.u32 %v351_v61, 16  ;;  %v5198_v4 = vmul.f32 1.1111112, %v3351_v13 }
  0xff   :  { %v2746_v33 = vand.u32 16777215, %v2546_v14  ;;  %v2747_v18 = vand.u32 16777215, %v2547_v15  ;;  %v2549_v35 = vxor.u32 %v4566_v22, %v1949_v30  ;;  %v4169_v41 = vshrl.u32 %v352_v56, 16 }
 0x100   :  { %v2748_v45 = vand.u32 16777215, %v2548_v0  ;;  %v1950_v54 = vmul.u32 2221713035, %v1750_v27  ;;  %v951_v20 = vxor.u32 %v4168_v16, %v351_v61  ;;  %v3352_v21 = vmax.f32 %v3152_v24, 0.0  ;;  %v3157_v27 = vld [vmem:[#allocation4 + $0x218] sm:$0xff] }
 0x101   :  { %vm2946_vm8 = vcmp.ge.s32.totalorder %v2746_v33, 1677722  ;;  %vm2947_vm9 = vcmp.ge.s32.totalorder %v2747_v18, 1677722  ;;  %v2749_v58 = vand.u32 16777215, %v2549_v35  ;;  %v952_v28 = vxor.u32 %v4169_v41, %v352_v56 }
 0x102   :  { %v3746_v23 = vsel %vm2946_vm8, %v5163_v48, 0.0  ;;  %v3747_v29 = vsel %vm2947_vm9, %v5165_v53, 0.0  ;;  %vm2948_vm10 = vcmp.ge.s32.totalorder %v2748_v45, 1677722  ;;  %v4567_v32 = vshrl.u32 %v1950_v54, 16 }
 0x103   :  { %3946 = vst [vmem:[#allocation7 + $0x1c0] sm:$0xff] %v3746_v23  ;;  %3947 = vst [vmem:[#allocation7 + $0x1c8] sm:$0xff] %v3747_v29  ;;  %v3748_v39 = vsel %vm2948_vm10, %v5179_v55, 0.0  ;;  %vm2949_vm11 = vcmp.ge.s32.totalorder %v2749_v58, 1677722  ;;  %v152_v57 = vadd.s32 %v4822_v11, %v5161_v46  ;;  %v3353_v51 = vmax.f32 %v3153_v59, 0.0 }
 0x104   :  { %v1151_v63 = vmul.u32 2146121005, %v951_v20  ;;  %3948 = vst [vmem:[#allocation7 + $0x1d0] sm:$0xff] %v3748_v39  ;;  %v3749_v31 = vsel %vm2949_vm11, %v5185_v37, 0.0  ;;  %v2550_v38 = vxor.u32 %v4567_v32, %v1950_v54  ;;  %v1152_v48 = vmul.u32 2146121005, %v952_v28 }
 0x105   :  { %v5206_v60 = vmul.f32 1.1111112, %v3352_v21  ;;  %3949 = vst [vmem:[#allocation7 + $0x1d8] sm:$0xff] %v3749_v31  ;;  %v353_v43 = vadd.s32 %v4800_v3, %v152_v57  ;;  %v38_v55 = vadd.s32 64, %v4796_v1  ;;  %v3354_v26 = vmax.f32 %v3154_v40, 0.0  ;;  %v3158_v31 = vld [vmem:[#allocation4 + $0x220] sm:$0xff] }
 0x106   :  { %v4368_v53 = vshrl.u32 %v1151_v63, 15  ;;  %v2750_v49 = vand.u32 16777215, %v2550_v38  ;;  %v4369_v25 = vshrl.u32 %v1152_v48, 15  ;;  %v3355_v44 = vmax.f32 %v3155_v36, 0.0 }
 0x107   :  { %v4170_v52 = vshrl.u32 %v353_v43, 16  ;;  %v5210_v47 = vmul.f32 1.1111112, %v3353_v51  ;;  %v5212_v37 = vmul.u32 1024, %v38_v55  ;;  %v5214_v62 = vmul.f32 1.1111112, %v3354_v26 }
 0x108   :  { %v1751_v46 = vxor.u32 %v4368_v53, %v1151_v63  ;;  %vm2950_vm12 = vcmp.ge.s32.totalorder %v2750_v49, 1677722  ;;  %v1752_v12 = vxor.u32 %v4369_v25, %v1152_v48  ;;  %v5216_v17 = vmul.f32 1.1111112, %v3355_v44 }
 0x109   :  { %v3750_v30 = vsel %vm2950_vm12, %v5189_v50, 0.0  ;;  %v953_v42 = vxor.u32 %v4170_v52, %v353_v43  ;;  %v153_v61 = vadd.s32 %v4798_v2, %v5212_v37  ;;  %v154_v14 = vadd.s32 %v4804_v5, %v5212_v37 }
 0x10a   :  { %v1951_v19 = vmul.u32 2221713035, %v1751_v46  ;;  %3950 = vst [vmem:[#allocation7 + $0x1e0] sm:$0xff] %v3750_v30  ;;  %v1952_v13 = vmul.u32 2221713035, %v1752_v12  ;;  %v155_v15 = vadd.s32 %v4807_v6, %v5212_v37  ;;  %v3356_v22 = vmax.f32 %v3156_v34, 0.0 }
 0x10b   :  { %v1153_v24 = vmul.u32 2146121005, %v953_v42  ;;  %v354_v0 = vadd.s32 %v4800_v3, %v153_v61  ;;  %v156_v50 = vadd.s32 %v4810_v7, %v5212_v37  ;;  %v355_v33 = vadd.s32 %v4800_v3, %v154_v14  ;;  %v3159_v61 = vld [vmem:[#allocation4 + $0x228] sm:$0xff] }
 0x10c   :  { %v4568_v56 = vshrl.u32 %v1951_v19, 16  ;;  %v4569_v16 = vshrl.u32 %v1952_v13, 16  ;;  %v356_v18 = vadd.s32 %v4800_v3, %v155_v15  ;;  %v5230_v35 = vmul.f32 1.1111112, %v3356_v22 }
 0x10d   :  { %v4370_v45 = vshrl.u32 %v1153_v24, 15  ;;  %v4171_v54 = vshrl.u32 %v354_v0, 16  ;;  %v357_v20 = vadd.s32 %v4800_v3, %v156_v50  ;;  %v4172_v59 = vshrl.u32 %v355_v33, 16 }
 0x10e   :  { %v2551_v41 = vxor.u32 %v4568_v56, %v1951_v19  ;;  %v2552_v21 = vxor.u32 %v4569_v16, %v1952_v13  ;;  %v4173_v58 = vshrl.u32 %v356_v18, 16  ;;  %v3357_v28 = vmax.f32 %v3157_v27, 0.0 }
 0x10f   :  { %v1753_v29 = vxor.u32 %v4370_v45, %v1153_v24  ;;  %v954_v32 = vxor.u32 %v4171_v54, %v354_v0  ;;  %v4174_v40 = vshrl.u32 %v357_v20, 16  ;;  %v955_v63 = vxor.u32 %v4172_v59, %v355_v33 }
 0x110   :  { %v2751_v23 = vand.u32 16777215, %v2551_v41  ;;  %v2752_v39 = vand.u32 16777215, %v2552_v21  ;;  %v956_v57 = vxor.u32 %v4173_v58, %v356_v18  ;;  %v5233_v36 = vmul.f32 1.1111112, %v3357_v28 }
 0x111   :  { %v1953_v38 = vmul.u32 2221713035, %v1753_v29  ;;  %v1154_v48 = vmul.u32 2146121005, %v954_v32  ;;  %v957_v53 = vxor.u32 %v4174_v40, %v357_v20  ;;  %v157_v55 = vadd.s32 %v4813_v8, %v5212_v37  ;;  %v3160_v18 = vld [vmem:[#allocation4 + $0x230] sm:$0xff] }
 0x112   :  { %vm2951_vm13 = vcmp.ge.s32.totalorder %v2751_v23, 1677722  ;;  %vm2952_vm14 = vcmp.ge.s32.totalorder %v2752_v39, 1677722  ;;  %v1155_v51 = vmul.u32 2146121005, %v955_v63  ;;  %v158_v42 = vadd.s32 %v4816_v9, %v5212_v37 }
 0x113   :  { %v3751_v43 = vsel %vm2951_vm13, %v5198_v4, 0.0  ;;  %v3752_v49 = vsel %vm2952_vm14, %v5206_v60, 0.0  ;;  %v4570_v25 = vshrl.u32 %v1953_v38, 16  ;;  %v4371_v26 = vshrl.u32 %v1154_v48, 15 }
 0x114   :  { %3951 = vst [vmem:[#allocation7 + $0x1e8] sm:$0xff] %v3751_v43  ;;  %v1156_v44 = vmul.u32 2146121005, %v956_v57  ;;  %3952 = vst [vmem:[#allocation7 + $0x1f0] sm:$0xff] %v3752_v49  ;;  %v4372_v46 = vshrl.u32 %v1155_v51, 15  ;;  %v358_v34 = vadd.s32 %v4800_v3, %v157_v55  ;;  %v3358_v12 = vmax.f32 %v3158_v31, 0.0 }
 0x115   :  { %v1157_v52 = vmul.u32 2146121005, %v957_v53  ;;  %v2553_v30 = vxor.u32 %v4570_v25, %v1953_v38  ;;  %v1754_v19 = vxor.u32 %v4371_v26, %v1154_v48  ;;  %v359_v0 = vadd.s32 %v4800_v3, %v158_v42 }
 0x116   :  { %v4373_v4 = vshrl.u32 %v1156_v44, 15  ;;  %v1755_v13 = vxor.u32 %v4372_v46, %v1155_v51  ;;  %v4175_v15 = vshrl.u32 %v358_v34, 16  ;;  %v5242_v60 = vmul.f32 1.1111112, %v3358_v12 }
 0x117   :  { %v4374_v14 = vshrl.u32 %v1157_v52, 15  ;;  %v2753_v22 = vand.u32 16777215, %v2553_v30  ;;  %v1954_v56 = vmul.u32 2221713035, %v1754_v19  ;;  %v3359_v33 = vmax.f32 %v3159_v61, 0.0 }
 0x118   :  { %v1756_v24 = vxor.u32 %v4373_v4, %v1156_v44  ;;  %v1955_v50 = vmul.u32 2221713035, %v1755_v13  ;;  %v958_v16 = vxor.u32 %v4175_v15, %v358_v34  ;;  %v4176_v54 = vshrl.u32 %v359_v0, 16  ;;  %v3161_v44 = vld [vmem:[#allocation4 + $0x238] sm:$0xff]  ;;  %v3162_v4 = vld [vmem:[#allocation4 + $0x240] sm:$0xff] }
 0x119   :  { %v1757_v27 = vxor.u32 %v4374_v14, %v1157_v52  ;;  %vm2953_vm15 = vcmp.ge.s32.totalorder %v2753_v22, 1677722  ;;  %v4571_v41 = vshrl.u32 %v1954_v56, 16  ;;  %v5246_v32 = vmul.f32 1.1111112, %v3359_v33 }
 0x11a   :  { %v1956_v45 = vmul.u32 2221713035, %v1756_v24  ;;  %v3753_v20 = vsel %vm2953_vm15, %v5210_v47, 0.0  ;;  %v4572_v21 = vshrl.u32 %v1955_v50, 16  ;;  %v1158_v58 = vmul.u32 2146121005, %v958_v16 }
 0x11b   :  { %v1957_v59 = vmul.u32 2221713035, %v1757_v27  ;;  %3953 = vst [vmem:[#allocation7 + $0x1f8] sm:$0xff] %v3753_v20  ;;  %v2554_v28 = vxor.u32 %v4571_v41, %v1954_v56  ;;  %v959_v29 = vxor.u32 %v4176_v54, %v359_v0  ;;  %v159_v57 = vadd.s32 %v4819_v10, %v5212_v37 }
 0x11c   :  { %v4573_v23 = vshrl.u32 %v1956_v45, 16  ;;  %v2555_v40 = vxor.u32 %v4572_v21, %v1955_v50  ;;  %v4375_v63 = vshrl.u32 %v1158_v58, 15  ;;  %v3360_v53 = vmax.f32 %v3160_v18, 0.0 }
 0x11d   :  { %v4574_v39 = vshrl.u32 %v1957_v59, 16  ;;  %v2754_v31 = vand.u32 16777215, %v2554_v28  ;;  %v1159_v48 = vmul.u32 2146121005, %v959_v29  ;;  %v360_v55 = vadd.s32 %v4800_v3, %v159_v57  ;;  %v3164_v29 = vld [vmem:[#allocation4 + $0x250] sm:$0xff] }
 0x11e   :  { %v2556_v38 = vxor.u32 %v4573_v23, %v1956_v45  ;;  %v2755_v47 = vand.u32 16777215, %v2555_v40  ;;  %v1758_v51 = vxor.u32 %v4375_v63, %v1158_v58  ;;  %v160_v26 = vadd.s32 %v4822_v11, %v5212_v37  ;;  %v3163_v37 = vld [vmem:[#allocation4 + $0x248] sm:$0xff] }
 0x11f   :  { %v2557_v43 = vxor.u32 %v4574_v39, %v1957_v59  ;;  %vm2954_vm0 = vcmp.ge.s32.totalorder %v2754_v31, 1677722  ;;  %v4376_v25 = vshrl.u32 %v1159_v48, 15  ;;  %v4177_v34 = vshrl.u32 %v360_v55, 16 }
 0x120   :  { %v2756_v49 = vand.u32 16777215, %v2556_v38  ;;  %v3754_v46 = vsel %vm2954_vm0, %v5214_v62, 0.0  ;;  %vm2955_vm1 = vcmp.ge.s32.totalorder %v2755_v47, 1677722  ;;  %v361_v22 = vadd.s32 %v4800_v3, %v160_v26 }
 0x121   :  { %v2757_v52 = vand.u32 16777215, %v2557_v43  ;;  %3954 = vst [vmem:[#allocation7 + $0x200] sm:$0xff] %v3754_v46  ;;  %v3755_v12 = vsel %vm2955_vm1, %v5216_v17, 0.0  ;;  %v1958_v30 = vmul.u32 2221713035, %v1758_v51  ;;  %v1759_v19 = vxor.u32 %v4376_v25, %v1159_v48 }
 0x122   :  { %vm2956_vm2 = vcmp.ge.s32.totalorder %v2756_v49, 1677722  ;;  %3955 = vst [vmem:[#allocation7 + $0x208] sm:$0xff] %v3755_v12  ;;  %v960_v61 = vxor.u32 %v4177_v34, %v360_v55  ;;  %v5256_v13 = vmul.f32 1.1111112, %v3360_v53  ;;  %v3361_v56 = vmax.f32 %v3161_v44, 0.0 }
 0x123   :  { %v3756_v42 = vsel %vm2956_vm2, %v5230_v35, 0.0  ;;  %vm2957_vm3 = vcmp.ge.s32.totalorder %v2757_v52, 1677722  ;;  %v4575_v14 = vshrl.u32 %v1958_v30, 16  ;;  %v1959_v15 = vmul.u32 2221713035, %v1759_v19 }
 0x124   :  { %3956 = vst [vmem:[#allocation7 + $0x210] sm:$0xff] %v3756_v42  ;;  %v3757_v62 = vsel %vm2957_vm3, %v5233_v36, 0.0  ;;  %v1160_v17 = vmul.u32 2146121005, %v960_v61  ;;  %v39_v24 = vadd.s32 72, %v4796_v1  ;;  %v3362_v0 = vmax.f32 %v3162_v4, 0.0 }
 0x125   :  { %3957 = vst [vmem:[#allocation7 + $0x218] sm:$0xff] %v3757_v62  ;;  %v2558_v50 = vxor.u32 %v4575_v14, %v1958_v30  ;;  %v4576_v35 = vshrl.u32 %v1959_v15, 16  ;;  %v4178_v27 = vshrl.u32 %v361_v22, 16  ;;  %v3363_v16 = vmax.f32 %v3163_v37, 0.0  ;;  %v3165_v51 = vld [vmem:[#allocation4 + $0x258] sm:$0xff] }
 0x126   :  { %v4377_v33 = vshrl.u32 %v1160_v17, 15  ;;  %v5261_v18 = vmul.f32 1.1111112, %v3361_v56  ;;  %v5263_v41 = vmul.u32 1024, %v39_v24  ;;  %v5265_v36 = vmul.f32 1.1111112, %v3362_v0 }
 0x127   :  { %v2758_v45 = vand.u32 16777215, %v2558_v50  ;;  %v2559_v54 = vxor.u32 %v4576_v35, %v1959_v15  ;;  %v961_v20 = vxor.u32 %v4178_v27, %v361_v22  ;;  %v5267_v21 = vmul.f32 1.1111112, %v3363_v16  ;;  %v3166_v0 = vld [vmem:[#allocation4 + $0x260] sm:$0xff] }
 0x128   :  { %v1760_v59 = vxor.u32 %v4377_v33, %v1160_v17  ;;  %v161_v58 = vadd.s32 %v4798_v2, %v5263_v41  ;;  %v162_v28 = vadd.s32 %v4804_v5, %v5263_v41  ;;  %v163_v23 = vadd.s32 %v4807_v6, %v5263_v41 }
 0x129   :  { %vm2958_vm4 = vcmp.ge.s32.totalorder %v2758_v45, 1677722  ;;  %v2759_v40 = vand.u32 16777215, %v2559_v54  ;;  %v1161_v39 = vmul.u32 2146121005, %v961_v20  ;;  %v164_v63 = vadd.s32 %v4810_v7, %v5263_v41 }
 0x12a   :  { %v3758_v57 = vsel %vm2958_vm4, %v5242_v60, 0.0  ;;  %v1960_v31 = vmul.u32 2221713035, %v1760_v59  ;;  %v362_v38 = vadd.s32 %v4800_v3, %v161_v58  ;;  %v363_v48 = vadd.s32 %v4800_v3, %v162_v28 }
 0x12b   :  { %3958 = vst [vmem:[#allocation7 + $0x220] sm:$0xff] %v3758_v57  ;;  %vm2959_vm5 = vcmp.ge.s32.totalorder %v2759_v40, 1677722  ;;  %v4378_v53 = vshrl.u32 %v1161_v39, 15  ;;  %v364_v47 = vadd.s32 %v4800_v3, %v163_v23  ;;  %v3364_v43 = vmax.f32 %v3164_v29, 0.0 }
 0x12c   :  { %v3759_v55 = vsel %vm2959_vm5, %v5246_v32, 0.0  ;;  %v4577_v49 = vshrl.u32 %v1960_v31, 16  ;;  %v4179_v25 = vshrl.u32 %v362_v38, 16  ;;  %v4180_v26 = vshrl.u32 %v363_v48, 16 }
 0x12d   :  { %3959 = vst [vmem:[#allocation7 + $0x228] sm:$0xff] %v3759_v55  ;;  %v1761_v44 = vxor.u32 %v4378_v53, %v1161_v39  ;;  %v4181_v60 = vshrl.u32 %v364_v47, 16  ;;  %v5282_v46 = vmul.f32 1.1111112, %v3364_v43  ;;  %v365_v52 = vadd.s32 %v4800_v3, %v164_v63  ;;  %v3167_v63 = vld [vmem:[#allocation4 + $0x268] sm:$0xff] }
 0x12e   :  { %v2560_v34 = vxor.u32 %v4577_v49, %v1960_v31  ;;  %v962_v12 = vxor.u32 %v4179_v25, %v362_v38  ;;  %v963_v30 = vxor.u32 %v4180_v26, %v363_v48  ;;  %v3365_v19 = vmax.f32 %v3165_v51, 0.0 }
 0x12f   :  { %v1961_v4 = vmul.u32 2221713035, %v1761_v44  ;;  %v964_v42 = vxor.u32 %v4181_v60, %v364_v47  ;;  %v4182_v61 = vshrl.u32 %v365_v52, 16  ;;  %v165_v32 = vadd.s32 %v4813_v8, %v5263_v41 }
 0x130   :  { %v2760_v37 = vand.u32 16777215, %v2560_v34  ;;  %v1162_v62 = vmul.u32 2146121005, %v962_v12  ;;  %v1163_v14 = vmul.u32 2146121005, %v963_v30  ;;  %v166_v15 = vadd.s32 %v4816_v9, %v5263_v41 }
 0x131   :  { %v4578_v22 = vshrl.u32 %v1961_v4, 16  ;;  %v1164_v17 = vmul.u32 2146121005, %v964_v42  ;;  %v965_v56 = vxor.u32 %v4182_v61, %v365_v52  ;;  %v5289_v24 = vmul.f32 1.1111112, %v3365_v19  ;;  %v3168_v19 = vld [vmem:[#allocation4 + $0x270] sm:$0xff] }
 0x132   :  { %vm2960_vm6 = vcmp.ge.s32.totalorder %v2760_v37, 1677722  ;;  %v4379_v50 = vshrl.u32 %v1162_v62, 15  ;;  %v4380_v35 = vshrl.u32 %v1163_v14, 15  ;;  %v366_v27 = vadd.s32 %v4800_v3, %v165_v32 }
 0x133   :  { %v3760_v16 = vsel %vm2960_vm6, %v5256_v13, 0.0  ;;  %v2561_v33 = vxor.u32 %v4578_v22, %v1961_v4  ;;  %v4381_v45 = vshrl.u32 %v1164_v17, 15  ;;  %v1165_v54 = vmul.u32 2146121005, %v965_v56 }
 0x134   :  { %3960 = vst [vmem:[#allocation7 + $0x230] sm:$0xff] %v3760_v16  ;;  %v1762_v20 = vxor.u32 %v4379_v50, %v1162_v62  ;;  %v1763_v59 = vxor.u32 %v4380_v35, %v1163_v14  ;;  %v4183_v58 = vshrl.u32 %v366_v27, 16  ;;  %v3366_v28 = vmax.f32 %v3166_v0, 0.0  ;;  %v3169_v0 = vld [vmem:[#allocation4 + $0x278] sm:$0xff] }
 0x135   :  { %v2761_v23 = vand.u32 16777215, %v2561_v33  ;;  %v1764_v29 = vxor.u32 %v4381_v45, %v1164_v17  ;;  %v4382_v40 = vshrl.u32 %v1165_v54, 15  ;;  %v367_v39 = vadd.s32 %v4800_v3, %v166_v15 }
 0x136   :  { %v1962_v57 = vmul.u32 2221713035, %v1762_v20  ;;  %v1963_v31 = vmul.u32 2221713035, %v1763_v59  ;;  %v966_v38 = vxor.u32 %v4183_v58, %v366_v27  ;;  %v5294_v48 = vmul.f32 1.1111112, %v3366_v28 }
 0x137   :  { %vm2961_vm7 = vcmp.ge.s32.totalorder %v2761_v23, 1677722  ;;  %v1964_v13 = vmul.u32 2221713035, %v1764_v29  ;;  %v1765_v53 = vxor.u32 %v4382_v40, %v1165_v54  ;;  %v4184_v47 = vshrl.u32 %v367_v39, 16  ;;  %v3170_v58 = vld [vmem:[#allocation4 + $0x280] sm:$0xff] }
 0x138   :  { %v3761_v43 = vsel %vm2961_vm7, %v5261_v18, 0.0  ;;  %v4579_v51 = vshrl.u32 %v1962_v57, 16  ;;  %v4580_v55 = vshrl.u32 %v1963_v31, 16  ;;  %v1166_v49 = vmul.u32 2146121005, %v966_v38 }
 0x139   :  { %3961 = vst [vmem:[#allocation7 + $0x238] sm:$0xff] %v3761_v43  ;;  %v4581_v25 = vshrl.u32 %v1964_v13, 16  ;;  %v1965_v26 = vmul.u32 2221713035, %v1765_v53  ;;  %v967_v44 = vxor.u32 %v4184_v47, %v367_v39  ;;  %v3367_v60 = vmax.f32 %v3167_v63, 0.0  ;;  %v3172_v63 = vld [vmem:[#allocation4 + $0x290] sm:$0xff] }
 0x13a   :  { %v2562_v52 = vxor.u32 %v4579_v51, %v1962_v57  ;;  %v2563_v34 = vxor.u32 %v4580_v55, %v1963_v31  ;;  %v4383_v12 = vshrl.u32 %v1166_v49, 15  ;;  %v167_v30 = vadd.s32 %v4819_v10, %v5263_v41 }
 0x13b   :  { %v2564_v4 = vxor.u32 %v4581_v25, %v1964_v13  ;;  %v4582_v42 = vshrl.u32 %v1965_v26, 16  ;;  %v1167_v61 = vmul.u32 2146121005, %v967_v44  ;;  %v5299_v32 = vmul.f32 1.1111112, %v3367_v60 }
 0x13c   :  { %v2762_v18 = vand.u32 16777215, %v2562_v52  ;;  %v2763_v37 = vand.u32 16777215, %v2563_v34  ;;  %v1766_v62 = vxor.u32 %v4383_v12, %v1166_v49  ;;  %v368_v14 = vadd.s32 %v4800_v3, %v167_v30  ;;  %v3173_v30 = vld [vmem:[#allocation4 + $0x298] sm:$0xff] }
 0x13d   :  { %v2764_v15 = vand.u32 16777215, %v2564_v4  ;;  %v2565_v22 = vxor.u32 %v4582_v42, %v1965_v26  ;;  %v4384_v17 = vshrl.u32 %v1167_v61, 15  ;;  %v3368_v56 = vmax.f32 %v3168_v19, 0.0 }
 0x13e   :  { %vm2962_vm8 = vcmp.ge.s32.totalorder %v2762_v18, 1677722  ;;  %vm2963_vm9 = vcmp.ge.s32.totalorder %v2763_v37, 1677722  ;;  %v1966_v50 = vmul.u32 2221713035, %v1766_v62  ;;  %v168_v35 = vadd.s32 %v4822_v11, %v5263_v41 }
 0x13f   :  { %v3762_v27 = vsel %vm2962_vm8, %v5265_v36, 0.0  ;;  %v3763_v16 = vsel %vm2963_vm9, %v5267_v21, 0.0  ;;  %vm2964_vm10 = vcmp.ge.s32.totalorder %v2764_v15, 1677722  ;;  %v2765_v33 = vand.u32 16777215, %v2565_v22 }
 0x140   :  { %3962 = vst [vmem:[#allocation7 + $0x240] sm:$0xff] %v3762_v27  ;;  %3963 = vst [vmem:[#allocation7 + $0x248] sm:$0xff] %v3763_v16  ;;  %v3764_v45 = vsel %vm2964_vm10, %v5282_v46, 0.0  ;;  %v4583_v54 = vshrl.u32 %v1966_v50, 16  ;;  %v1767_v20 = vxor.u32 %v4384_v17, %v1167_v61  ;;  %v4185_v59 = vshrl.u32 %v368_v14, 16  ;;  %v3171_v36 = vld [vmem:[#allocation4 + $0x288] sm:$0xff] }
 0x141   :  { %3964 = vst [vmem:[#allocation7 + $0x250] sm:$0xff] %v3764_v45  ;;  %vm2965_vm11 = vcmp.ge.s32.totalorder %v2765_v33, 1677722  ;;  %v5307_v28 = vmul.f32 1.1111112, %v3368_v56  ;;  %v369_v41 = vadd.s32 %v4800_v3, %v168_v35  ;;  %v3369_v23 = vmax.f32 %v3169_v0, 0.0 }
 0x142   :  { %v3765_v21 = vsel %vm2965_vm11, %v5289_v24, 0.0  ;;  %v2566_v29 = vxor.u32 %v4583_v54, %v1966_v50  ;;  %v1967_v40 = vmul.u32 2221713035, %v1767_v20  ;;  %v968_v39 = vxor.u32 %v4185_v59, %v368_v14  ;;  %v3174_v35 = vld [vmem:[#allocation4 + $0x2a0] sm:$0xff] }
 0x143   :  { %3965 = vst [vmem:[#allocation7 + $0x258] sm:$0xff] %v3765_v21  ;;  %v4186_v46 = vshrl.u32 %v369_v41, 16  ;;  %v5311_v57 = vmul.f32 1.1111112, %v3369_v23  ;;  %v40_v31 = vadd.s32 80, %v4796_v1  ;;  %v3370_v38 = vmax.f32 %v3170_v58, 0.0 }
 0x144   :  { %v2766_v13 = vand.u32 16777215, %v2566_v29  ;;  %v4584_v53 = vshrl.u32 %v1967_v40, 16  ;;  %v1168_v47 = vmul.u32 2146121005, %v968_v39  ;;  %v3371_v43 = vmax.f32 %v3171_v36, 0.0 }
 0x145   :  { %v969_v51 = vxor.u32 %v4186_v46, %v369_v41  ;;  %v5314_v55 = vmul.u32 1024, %v40_v31  ;;  %v5316_v49 = vmul.f32 1.1111112, %v3370_v38  ;;  %v3372_v24 = vmax.f32 %v3172_v63, 0.0 }
 0x146   :  { %vm2966_vm12 = vcmp.ge.s32.totalorder %v2766_v13, 1677722  ;;  %v2567_v25 = vxor.u32 %v4584_v53, %v1967_v40  ;;  %v4385_v26 = vshrl.u32 %v1168_v47, 15  ;;  %v5318_v44 = vmul.f32 1.1111112, %v3371_v43 }
 0x147   :  { %v3766_v60 = vsel %vm2966_vm12, %v5294_v48, 0.0  ;;  %v1169_v52 = vmul.u32 2146121005, %v969_v51  ;;  %v169_v34 = vadd.s32 %v4798_v2, %v5314_v55  ;;  %v170_v12 = vadd.s32 %v4804_v5, %v5314_v55 }
 0x148   :  { %3966 = vst [vmem:[#allocation7 + $0x260] sm:$0xff] %v3766_v60  ;;  %v2767_v19 = vand.u32 16777215, %v2567_v25  ;;  %v1768_v4 = vxor.u32 %v4385_v26, %v1168_v47  ;;  %v171_v42 = vadd.s32 %v4807_v6, %v5314_v55  ;;  %v5327_v61 = vmul.f32 1.1111112, %v3372_v24 }
 0x149   :  { %v4386_v18 = vshrl.u32 %v1169_v52, 15  ;;  %v370_v37 = vadd.s32 %v4800_v3, %v169_v34  ;;  %v371_v48 = vadd.s32 %v4800_v3, %v170_v12  ;;  %v172_v62 = vadd.s32 %v4810_v7, %v5314_v55 }
 0x14a   :  { %vm2967_vm13 = vcmp.ge.s32.totalorder %v2767_v19, 1677722  ;;  %v1968_v14 = vmul.u32 2221713035, %v1768_v4  ;;  %v372_v15 = vadd.s32 %v4800_v3, %v171_v42  ;;  %v3373_v22 = vmax.f32 %v3173_v30, 0.0  ;;  %v3175_v42 = vld [vmem:[#allocation4 + $0x2a8] sm:$0xff] }
 0x14b   :  { %v3767_v17 = vsel %vm2967_vm13, %v5299_v32, 0.0  ;;  %v1769_v56 = vxor.u32 %v4386_v18, %v1169_v52  ;;  %v4187_v0 = vshrl.u32 %v370_v37, 16  ;;  %v4188_v50 = vshrl.u32 %v371_v48, 16 }
 0x14c   :  { %3967 = vst [vmem:[#allocation7 + $0x268] sm:$0xff] %v3767_v17  ;;  %v4585_v27 = vshrl.u32 %v1968_v14, 16  ;;  %v4189_v16 = vshrl.u32 %v372_v15, 16  ;;  %v373_v33 = vadd.s32 %v4800_v3, %v172_v62  ;;  %v5336_v45 = vmul.f32 1.1111112, %v3373_v22 }
 0x14d   :  { %v1969_v54 = vmul.u32 2221713035, %v1769_v56  ;;  %v970_v20 = vxor.u32 %v4187_v0, %v370_v37  ;;  %v971_v59 = vxor.u32 %v4188_v50, %v371_v48  ;;  %v173_v58 = vadd.s32 %v4813_v8, %v5314_v55 }
 0x14e   :  { %v2568_v41 = vxor.u32 %v4585_v27, %v1968_v14  ;;  %v972_v23 = vxor.u32 %v4189_v16, %v372_v15  ;;  %v4190_v32 = vshrl.u32 %v373_v33, 16  ;;  %v3374_v36 = vmax.f32 %v3174_v35, 0.0 }
 0x14f   :  { %v4586_v21 = vshrl.u32 %v1969_v54, 16  ;;  %v1170_v29 = vmul.u32 2146121005, %v970_v20  ;;  %v1171_v40 = vmul.u32 2146121005, %v971_v59  ;;  %v374_v39 = vadd.s32 %v4800_v3, %v173_v58 }
 0x150   :  { %v2768_v63 = vand.u32 16777215, %v2568_v41  ;;  %v1172_v46 = vmul.u32 2146121005, %v972_v23  ;;  %v973_v31 = vxor.u32 %v4190_v32, %v373_v33  ;;  %v5341_v38 = vmul.f32 1.1111112, %v3374_v36 }
 0x151   :  { %v2569_v13 = vxor.u32 %v4586_v21, %v1969_v54  ;;  %v4387_v53 = vshrl.u32 %v1170_v29, 15  ;;  %v4388_v47 = vshrl.u32 %v1171_v40, 15  ;;  %v4191_v43 = vshrl.u32 %v374_v39, 16  ;;  %v3176_v32 = vld [vmem:[#allocation4 + $0x2b0] sm:$0xff] }
 0x152   :  { %vm2968_vm14 = vcmp.ge.s32.totalorder %v2768_v63, 1677722  ;;  %v4389_v51 = vshrl.u32 %v1172_v46, 15  ;;  %v1173_v24 = vmul.u32 2146121005, %v973_v31  ;;  %v174_v25 = vadd.s32 %v4816_v9, %v5314_v55 }
 0x153   :  { %v3768_v26 = vsel %vm2968_vm14, %v5307_v28, 0.0  ;;  %v2769_v60 = vand.u32 16777215, %v2569_v13  ;;  %v1770_v52 = vxor.u32 %v4387_v53, %v1170_v29  ;;  %v1771_v34 = vxor.u32 %v4388_v47, %v1171_v40  ;;  %v3177_v13 = vld [vmem:[#allocation4 + $0x2b8] sm:$0xff] }
 0x154   :  { %3968 = vst [vmem:[#allocation7 + $0x270] sm:$0xff] %v3768_v26  ;;  %v1772_v12 = vxor.u32 %v4389_v51, %v1172_v46  ;;  %v4390_v30 = vshrl.u32 %v1173_v24, 15  ;;  %v974_v19 = vxor.u32 %v4191_v43, %v374_v39  ;;  %v375_v4 = vadd.s32 %v4800_v3, %v174_v25 }
 0x155   :  { %vm2969_vm15 = vcmp.ge.s32.totalorder %v2769_v60, 1677722  ;;  %v1970_v18 = vmul.u32 2221713035, %v1770_v52  ;;  %v1971_v37 = vmul.u32 2221713035, %v1771_v34  ;;  %v175_v48 = vadd.s32 %v4819_v10, %v5314_v55 }
 0x156   :  { %v3769_v62 = vsel %vm2969_vm15, %v5311_v57, 0.0  ;;  %v1972_v14 = vmul.u32 2221713035, %v1772_v12  ;;  %v1773_v28 = vxor.u32 %v4390_v30, %v1173_v24  ;;  %v1174_v15 = vmul.u32 2146121005, %v974_v19  ;;  %v3178_v52 = vld [vmem:[#allocation4 + $0x2c0] sm:$0xff] }
 0x157   :  { %3969 = vst [vmem:[#allocation7 + $0x278] sm:$0xff] %v3769_v62  ;;  %v4587_v22 = vshrl.u32 %v1970_v18, 16  ;;  %v4588_v17 = vshrl.u32 %v1971_v37, 16  ;;  %v4192_v56 = vshrl.u32 %v375_v4, 16  ;;  %v3375_v0 = vmax.f32 %v3175_v42, 0.0 }
 0x158   :  { %v4589_v50 = vshrl.u32 %v1972_v14, 16  ;;  %v1973_v35 = vmul.u32 2221713035, %v1773_v28  ;;  %v4391_v27 = vshrl.u32 %v1174_v15, 15  ;;  %v376_v16 = vadd.s32 %v4800_v3, %v175_v48 }
 0x159   :  { %v2570_v33 = vxor.u32 %v4587_v22, %v1970_v18  ;;  %v2571_v54 = vxor.u32 %v4588_v17, %v1971_v37  ;;  %v975_v20 = vxor.u32 %v4192_v56, %v375_v4  ;;  %v5351_v59 = vmul.f32 1.1111112, %v3375_v0  ;;  %v3180_v18 = vld [vmem:[#allocation4 + $0x2d0] sm:$0xff] }
 0x15a   :  { %v2572_v58 = vxor.u32 %v4589_v50, %v1972_v14  ;;  %v4590_v57 = vshrl.u32 %v1973_v35, 16  ;;  %v1774_v41 = vxor.u32 %v4391_v27, %v1174_v15  ;;  %v4193_v23 = vshrl.u32 %v376_v16, 16 }
 0x15b   :  { %v2770_v36 = vand.u32 16777215, %v2570_v33  ;;  %v2771_v21 = vand.u32 16777215, %v2571_v54  ;;  %v1175_v29 = vmul.u32 2146121005, %v975_v20  ;;  %v176_v40 = vadd.s32 %v4822_v11, %v5314_v55 }
 0x15c   :  { %v2772_v39 = vand.u32 16777215, %v2572_v58  ;;  %v2573_v63 = vxor.u32 %v4590_v57, %v1973_v35  ;;  %v1974_v46 = vmul.u32 2221713035, %v1774_v41  ;;  %v976_v31 = vxor.u32 %v4193_v23, %v376_v16  ;;  %v3181_v58 = vld [vmem:[#allocation4 + $0x2d8] sm:$0xff] }
 0x15d   :  { %vm2970_vm0 = vcmp.ge.s32.totalorder %v2770_v36, 1677722  ;;  %vm2971_vm1 = vcmp.ge.s32.totalorder %v2771_v21, 1677722  ;;  %v4392_v53 = vshrl.u32 %v1175_v29, 15  ;;  %v3376_v47 = vmax.f32 %v3176_v32, 0.0 }
 0x15e   :  { %v3770_v43 = vsel %vm2970_vm0, %v5316_v49, 0.0  ;;  %v3771_v51 = vsel %vm2971_vm1, %v5318_v44, 0.0  ;;  %vm2972_vm2 = vcmp.ge.s32.totalorder %v2772_v39, 1677722  ;;  %v2773_v24 = vand.u32 16777215, %v2573_v63 }
 0x15f   :  { %3970 = vst [vmem:[#allocation7 + $0x280] sm:$0xff] %v3770_v43  ;;  %3971 = vst [vmem:[#allocation7 + $0x288] sm:$0xff] %v3771_v51  ;;  %v3772_v25 = vsel %vm2972_vm2, %v5327_v61, 0.0  ;;  %v4591_v55 = vshrl.u32 %v1974_v46, 16  ;;  %v1775_v26 = vxor.u32 %v4392_v53, %v1175_v29  ;;  %v1176_v60 = vmul.u32 2146121005, %v976_v31 }
 0x160   :  { %3972 = vst [vmem:[#allocation7 + $0x290] sm:$0xff] %v3772_v25  ;;  %vm2973_vm3 = vcmp.ge.s32.totalorder %v2773_v24, 1677722  ;;  %v5358_v34 = vmul.f32 1.1111112, %v3376_v47  ;;  %v377_v12 = vadd.s32 %v4800_v3, %v176_v40  ;;  %v3377_v30 = vmax.f32 %v3177_v13, 0.0 }
 0x161   :  { %v3179_v49 = vld [vmem:[#allocation4 + $0x2c8] sm:$0xff]  ;;  %v3773_v44 = vsel %vm2973_vm3, %v5336_v45, 0.0  ;;  %v2574_v19 = vxor.u32 %v4591_v55, %v1974_v46  ;;  %v1975_v4 = vmul.u32 2221713035, %v1775_v26  ;;  %v4393_v42 = vshrl.u32 %v1176_v60, 15  ;;  %v3182_v47 = vld [vmem:[#allocation4 + $0x2e0] sm:$0xff] }
 0x162   :  { %3973 = vst [vmem:[#allocation7 + $0x298] sm:$0xff] %v3773_v44  ;;  %v4194_v61 = vshrl.u32 %v377_v12, 16  ;;  %v5362_v37 = vmul.f32 1.1111112, %v3377_v30  ;;  %v41_v48 = vadd.s32 88, %v4796_v1  ;;  %v3378_v62 = vmax.f32 %v3178_v52, 0.0 }
 0x163   :  { %v2774_v14 = vand.u32 16777215, %v2574_v19  ;;  %v4592_v28 = vshrl.u32 %v1975_v4, 16  ;;  %v1776_v15 = vxor.u32 %v4393_v42, %v1176_v60  ;;  %v3379_v22 = vmax.f32 %v3179_v49, 0.0  ;;  %v3183_v49 = vld [vmem:[#allocation4 + $0x2e8] sm:$0xff] }
 0x164   :  { %v977_v17 = vxor.u32 %v4194_v61, %v377_v12  ;;  %v5365_v56 = vmul.u32 1024, %v41_v48  ;;  %v5367_v0 = vmul.f32 1.1111112, %v3378_v62  ;;  %v3380_v45 = vmax.f32 %v3180_v18, 0.0 }
 0x165   :  { %vm2974_vm4 = vcmp.ge.s32.totalorder %v2774_v14, 1677722  ;;  %v2575_v50 = vxor.u32 %v4592_v28, %v1975_v4  ;;  %v1976_v35 = vmul.u32 2221713035, %v1776_v15  ;;  %v5369_v27 = vmul.f32 1.1111112, %v3379_v22 }
 0x166   :  { %v3774_v16 = vsel %vm2974_vm4, %v5341_v38, 0.0  ;;  %v1177_v33 = vmul.u32 2146121005, %v977_v17  ;;  %v177_v54 = vadd.s32 %v4798_v2, %v5365_v56  ;;  %v178_v20 = vadd.s32 %v4804_v5, %v5365_v56 }
 0x167   :  { %3974 = vst [vmem:[#allocation7 + $0x2a0] sm:$0xff] %v3774_v16  ;;  %v2775_v57 = vand.u32 16777215, %v2575_v50  ;;  %v4593_v41 = vshrl.u32 %v1976_v35, 16  ;;  %v179_v23 = vadd.s32 %v4807_v6, %v5365_v56  ;;  %v5378_v32 = vmul.f32 1.1111112, %v3380_v45 }
 0x168   :  { %v4394_v36 = vshrl.u32 %v1177_v33, 15  ;;  %v378_v21 = vadd.s32 %v4800_v3, %v177_v54  ;;  %v379_v38 = vadd.s32 %v4800_v3, %v178_v20  ;;  %v180_v29 = vadd.s32 %v4810_v7, %v5365_v56 }
 0x169   :  { %vm2975_vm5 = vcmp.ge.s32.totalorder %v2775_v57, 1677722  ;;  %v2576_v40 = vxor.u32 %v4593_v41, %v1976_v35  ;;  %v380_v39 = vadd.s32 %v4800_v3, %v179_v23  ;;  %v3381_v63 = vmax.f32 %v3181_v58, 0.0  ;;  %v3184_v23 = vld [vmem:[#allocation4 + $0x2f0] sm:$0xff] }
 0x16a   :  { %v3775_v46 = vsel %vm2975_vm5, %v5351_v59, 0.0  ;;  %v1777_v31 = vxor.u32 %v4394_v36, %v1177_v33  ;;  %v4195_v13 = vshrl.u32 %v378_v21, 16  ;;  %v4196_v53 = vshrl.u32 %v379_v38, 16 }
 0x16b   :  { %3975 = vst [vmem:[#allocation7 + $0x2a8] sm:$0xff] %v3775_v46  ;;  %v2776_v43 = vand.u32 16777215, %v2576_v40  ;;  %v4197_v51 = vshrl.u32 %v380_v39, 16  ;;  %v381_v24 = vadd.s32 %v4800_v3, %v180_v29  ;;  %v5387_v25 = vmul.f32 1.1111112, %v3381_v63 }
 0x16c   :  { %v1977_v55 = vmul.u32 2221713035, %v1777_v31  ;;  %v978_v26 = vxor.u32 %v4195_v13, %v378_v21  ;;  %v979_v60 = vxor.u32 %v4196_v53, %v379_v38  ;;  %v181_v52 = vadd.s32 %v4813_v8, %v5365_v56 }
 0x16d   :  { %vm2976_vm6 = vcmp.ge.s32.totalorder %v2776_v43, 1677722  ;;  %v980_v12 = vxor.u32 %v4197_v51, %v380_v39  ;;  %v4198_v59 = vshrl.u32 %v381_v24, 16  ;;  %v3382_v30 = vmax.f32 %v3182_v47, 0.0 }
 0x16e   :  { %v3776_v44 = vsel %vm2976_vm6, %v5358_v34, 0.0  ;;  %v4594_v19 = vshrl.u32 %v1977_v55, 16  ;;  %v1178_v4 = vmul.u32 2146121005, %v978_v26  ;;  %v1179_v42 = vmul.u32 2146121005, %v979_v60 }
 0x16f   :  { %3976 = vst [vmem:[#allocation7 + $0x2b0] sm:$0xff] %v3776_v44  ;;  %v1180_v18 = vmul.u32 2146121005, %v980_v12  ;;  %v981_v61 = vxor.u32 %v4198_v59, %v381_v24  ;;  %v382_v48 = vadd.s32 %v4800_v3, %v181_v52  ;;  %v5393_v62 = vmul.f32 1.1111112, %v3382_v30 }
 0x170   :  { %v2577_v14 = vxor.u32 %v4594_v19, %v1977_v55  ;;  %v4395_v28 = vshrl.u32 %v1178_v4, 15  ;;  %v4396_v15 = vshrl.u32 %v1179_v42, 15  ;;  %v182_v22 = vadd.s32 %v4816_v9, %v5365_v56 }
 0x171   :  { %v4397_v17 = vshrl.u32 %v1180_v18, 15  ;;  %v1181_v45 = vmul.u32 2146121005, %v981_v61  ;;  %v4199_v50 = vshrl.u32 %v382_v48, 16  ;;  %v3383_v34 = vmax.f32 %v3183_v49, 0.0  ;;  %v3185_v49 = vld [vmem:[#allocation4 + $0x2f8] sm:$0xff] }
 0x172   :  { %v2777_v35 = vand.u32 16777215, %v2577_v14  ;;  %v1778_v16 = vxor.u32 %v4395_v28, %v1178_v4  ;;  %v1779_v33 = vxor.u32 %v4396_v15, %v1179_v42  ;;  %v383_v54 = vadd.s32 %v4800_v3, %v182_v22 }
 0x173   :  { %v1780_v20 = vxor.u32 %v4397_v17, %v1180_v18  ;;  %v4398_v58 = vshrl.u32 %v1181_v45, 15  ;;  %v982_v57 = vxor.u32 %v4199_v50, %v382_v48  ;;  %v5398_v41 = vmul.f32 1.1111112, %v3383_v34 }
 0x174   :  { %vm2977_vm7 = vcmp.ge.s32.totalorder %v2777_v35, 1677722  ;;  %v1978_v36 = vmul.u32 2221713035, %v1778_v16  ;;  %v1979_v21 = vmul.u32 2221713035, %v1779_v33  ;;  %v183_v38 = vadd.s32 %v4819_v10, %v5365_v56 }
 0x175   :  { %v3777_v29 = vsel %vm2977_vm7, %v5362_v37, 0.0  ;;  %v1980_v40 = vmul.u32 2221713035, %v1780_v20  ;;  %v1781_v39 = vxor.u32 %v4398_v58, %v1181_v45  ;;  %v1182_v63 = vmul.u32 2146121005, %v982_v57  ;;  %v3186_v33 = vld [vmem:[#allocation4 + $0x300] sm:$0xff] }
 0x176   :  { %3977 = vst [vmem:[#allocation7 + $0x2b8] sm:$0xff] %v3777_v29  ;;  %v4595_v46 = vshrl.u32 %v1978_v36, 16  ;;  %v4596_v31 = vshrl.u32 %v1979_v21, 16  ;;  %v4200_v13 = vshrl.u32 %v383_v54, 16  ;;  %v384_v53 = vadd.s32 %v4800_v3, %v183_v38 }
 0x177   :  { %v4597_v47 = vshrl.u32 %v1980_v40, 16  ;;  %v1981_v43 = vmul.u32 2221713035, %v1781_v39  ;;  %v4399_v51 = vshrl.u32 %v1182_v63, 15  ;;  %v3384_v24 = vmax.f32 %v3184_v23, 0.0 }
 0x178   :  { %v2578_v55 = vxor.u32 %v4595_v46, %v1978_v36  ;;  %v2579_v26 = vxor.u32 %v4596_v31, %v1979_v21  ;;  %v983_v60 = vxor.u32 %v4200_v13, %v383_v54  ;;  %v4201_v52 = vshrl.u32 %v384_v53, 16  ;;  %v3187_v54 = vld [vmem:[#allocation4 + $0x308] sm:$0xff] }
 0x179   :  { %v2580_v12 = vxor.u32 %v4597_v47, %v1980_v40  ;;  %v4598_v59 = vshrl.u32 %v1981_v43, 16  ;;  %v1782_v37 = vxor.u32 %v4399_v51, %v1182_v63  ;;  %v5404_v30 = vmul.f32 1.1111112, %v3384_v24 }
 0x17a   :  { %v2778_v44 = vand.u32 16777215, %v2578_v55  ;;  %v2779_v19 = vand.u32 16777215, %v2579_v26  ;;  %v1183_v4 = vmul.u32 2146121005, %v983_v60  ;;  %v984_v42 = vxor.u32 %v4201_v52, %v384_v53 }
 0x17b   :  { %v2780_v18 = vand.u32 16777215, %v2580_v12  ;;  %v2581_v61 = vxor.u32 %v4598_v59, %v1981_v43  ;;  %v1982_v48 = vmul.u32 2221713035, %v1782_v37  ;;  %v184_v14 = vadd.s32 %v4822_v11, %v5365_v56  ;;  %v3189_v52 = vld [vmem:[#allocation4 + $0x318] sm:$0xff] }
 0x17c   :  { %vm2978_vm8 = vcmp.ge.s32.totalorder %v2778_v44, 1677722  ;;  %vm2979_vm9 = vcmp.ge.s32.totalorder %v2779_v19, 1677722  ;;  %v4400_v28 = vshrl.u32 %v1183_v4, 15  ;;  %v3385_v15 = vmax.f32 %v3185_v49, 0.0 }
 0x17d   :  { %v3778_v22 = vsel %vm2978_vm8, %v5367_v0, 0.0  ;;  %v3779_v17 = vsel %vm2979_vm9, %v5369_v27, 0.0  ;;  %vm2980_vm10 = vcmp.ge.s32.totalorder %v2780_v18, 1677722  ;;  %v2781_v45 = vand.u32 16777215, %v2581_v61 }
 0x17e   :  { %3978 = vst [vmem:[#allocation7 + $0x2c0] sm:$0xff] %v3778_v22  ;;  %3979 = vst [vmem:[#allocation7 + $0x2c8] sm:$0xff] %v3779_v17  ;;  %v3780_v50 = vsel %vm2980_vm10, %v5378_v32, 0.0  ;;  %v4599_v34 = vshrl.u32 %v1982_v48, 16  ;;  %v1783_v35 = vxor.u32 %v4400_v28, %v1183_v4  ;;  %v1184_v16 = vmul.u32 2146121005, %v984_v42 }
 0x17f   :  { %3980 = vst [vmem:[#allocation7 + $0x2d0] sm:$0xff] %v3780_v50  ;;  %vm2981_vm11 = vcmp.ge.s32.totalorder %v2781_v45, 1677722  ;;  %v385_v56 = vadd.s32 %v4800_v3, %v184_v14  ;;  %v5412_v20 = vmul.f32 1.1111112, %v3385_v15  ;;  %v42_v0 = vadd.s32 96, %v4796_v1 }
 0x180   :  { %v3188_v27 = vld [vmem:[#allocation4 + $0x310] sm:$0xff]  ;;  %v3781_v58 = vsel %vm2981_vm11, %v5387_v25, 0.0  ;;  %v2582_v57 = vxor.u32 %v4599_v34, %v1982_v48  ;;  %v1983_v23 = vmul.u32 2221713035, %v1783_v35  ;;  %v4401_v36 = vshrl.u32 %v1184_v16, 15  ;;  %v3190_v48 = vld [vmem:[#allocation4 + $0x320] sm:$0xff] }
 0x181   :  { %3981 = vst [vmem:[#allocation7 + $0x2d8] sm:$0xff] %v3781_v58  ;;  %v4202_v32 = vshrl.u32 %v385_v56, 16  ;;  %v5416_v21 = vmul.u32 1024, %v42_v0  ;;  %v3386_v38 = vmax.f32 %v3186_v33, 0.0  ;;  %v3387_v29 = vmax.f32 %v3187_v54, 0.0 }
 0x182   :  { %v2782_v40 = vand.u32 16777215, %v2582_v57  ;;  %v4600_v39 = vshrl.u32 %v1983_v23, 16  ;;  %v1784_v63 = vxor.u32 %v4401_v36, %v1184_v16  ;;  %v3388_v46 = vmax.f32 %v3188_v27, 0.0  ;;  %v3191_v36 = vld [vmem:[#allocation4 + $0x328] sm:$0xff] }
 0x183   :  { %v985_v31 = vxor.u32 %v4202_v32, %v385_v56  ;;  %v185_v13 = vadd.s32 %v4798_v2, %v5416_v21  ;;  %v5420_v53 = vmul.f32 1.1111112, %v3386_v38  ;;  %v186_v25 = vadd.s32 %v4804_v5, %v5416_v21 }
 0x184   :  { %vm2982_vm12 = vcmp.ge.s32.totalorder %v2782_v40, 1677722  ;;  %v2583_v47 = vxor.u32 %v4600_v39, %v1983_v23  ;;  %v1984_v43 = vmul.u32 2221713035, %v1784_v63  ;;  %v5424_v51 = vmul.f32 1.1111112, %v3387_v29 }
 0x185   :  { %v3782_v24 = vsel %vm2982_vm12, %v5393_v62, 0.0  ;;  %v1185_v55 = vmul.u32 2146121005, %v985_v31  ;;  %v386_v26 = vadd.s32 %v4800_v3, %v185_v13  ;;  %v387_v60 = vadd.s32 %v4800_v3, %v186_v25 }
 0x186   :  { %3982 = vst [vmem:[#allocation7 + $0x2e0] sm:$0xff] %v3782_v24  ;;  %v2783_v12 = vand.u32 16777215, %v2583_v47  ;;  %v4601_v59 = vshrl.u32 %v1984_v43, 16  ;;  %v187_v37 = vadd.s32 %v4807_v6, %v5416_v21  ;;  %v5431_v49 = vmul.f32 1.1111112, %v3388_v46 }
 0x187   :  { %v4402_v44 = vshrl.u32 %v1185_v55, 15  ;;  %v4203_v19 = vshrl.u32 %v386_v26, 16  ;;  %v4204_v4 = vshrl.u32 %v387_v60, 16  ;;  %v188_v62 = vadd.s32 %v4810_v7, %v5416_v21 }
 0x188   :  { %vm2983_vm13 = vcmp.ge.s32.totalorder %v2783_v12, 1677722  ;;  %v2584_v42 = vxor.u32 %v4601_v59, %v1984_v43  ;;  %v388_v18 = vadd.s32 %v4800_v3, %v187_v37  ;;  %v3389_v61 = vmax.f32 %v3189_v52, 0.0  ;;  %v3192_v37 = vld [vmem:[#allocation4 + $0x330] sm:$0xff] }
 0x189   :  { %v3783_v14 = vsel %vm2983_vm13, %v5398_v41, 0.0  ;;  %v1785_v28 = vxor.u32 %v4402_v44, %v1185_v55  ;;  %v986_v15 = vxor.u32 %v4203_v19, %v386_v26  ;;  %v987_v22 = vxor.u32 %v4204_v4, %v387_v60 }
 0x18a   :  { %3983 = vst [vmem:[#allocation7 + $0x2e8] sm:$0xff] %v3783_v14  ;;  %v2784_v17 = vand.u32 16777215, %v2584_v42  ;;  %v4205_v45 = vshrl.u32 %v388_v18, 16  ;;  %v389_v50 = vadd.s32 %v4800_v3, %v188_v62  ;;  %v5438_v34 = vmul.f32 1.1111112, %v3389_v61 }
 0x18b   :  { %v1985_v35 = vmul.u32 2221713035, %v1785_v28  ;;  %v1186_v16 = vmul.u32 2146121005, %v986_v15  ;;  %v189_v33 = vadd.s32 %v4813_v8, %v5416_v21  ;;  %v3390_v54 = vmax.f32 %v3190_v48, 0.0 }
 0x18c   :  { %vm2984_vm14 = vcmp.ge.s32.totalorder %v2784_v17, 1677722  ;;  %v1187_v56 = vmul.u32 2146121005, %v987_v22  ;;  %v988_v0 = vxor.u32 %v4205_v45, %v388_v18  ;;  %v4206_v41 = vshrl.u32 %v389_v50, 16 }
 0x18d   :  { %v3784_v27 = vsel %vm2984_vm14, %v5404_v30, 0.0  ;;  %v4602_v58 = vshrl.u32 %v1985_v35, 16  ;;  %v4403_v57 = vshrl.u32 %v1186_v16, 15  ;;  %v390_v23 = vadd.s32 %v4800_v3, %v189_v33 }
 0x18e   :  { %3984 = vst [vmem:[#allocation7 + $0x2f0] sm:$0xff] %v3784_v27  ;;  %v4404_v32 = vshrl.u32 %v1187_v56, 15  ;;  %v1188_v38 = vmul.u32 2146121005, %v988_v0  ;;  %v989_v29 = vxor.u32 %v4206_v41, %v389_v50  ;;  %v5444_v40 = vmul.f32 1.1111112, %v3390_v54 }
 0x18f   :  { %v2585_v39 = vxor.u32 %v4602_v58, %v1985_v35  ;;  %v1786_v63 = vxor.u32 %v4403_v57, %v1186_v16  ;;  %v4207_v46 = vshrl.u32 %v390_v23, 16  ;;  %v190_v31 = vadd.s32 %v4816_v9, %v5416_v21  ;;  %v3193_v27 = vld [vmem:[#allocation4 + $0x338] sm:$0xff] }
 0x190   :  { %v1787_v13 = vxor.u32 %v4404_v32, %v1187_v56  ;;  %v4405_v25 = vshrl.u32 %v1188_v38, 15  ;;  %v1189_v30 = vmul.u32 2146121005, %v989_v29  ;;  %v3391_v47 = vmax.f32 %v3191_v36, 0.0 }
 0x191   :  { %v2785_v43 = vand.u32 16777215, %v2585_v39  ;;  %v1986_v24 = vmul.u32 2221713035, %v1786_v63  ;;  %v990_v55 = vxor.u32 %v4207_v46, %v390_v23  ;;  %v391_v26 = vadd.s32 %v4800_v3, %v190_v31 }
 0x192   :  { %v1987_v60 = vmul.u32 2221713035, %v1787_v13  ;;  %v1788_v52 = vxor.u32 %v4405_v25, %v1188_v38  ;;  %v4406_v12 = vshrl.u32 %v1189_v30, 15  ;;  %v5449_v59 = vmul.f32 1.1111112, %v3391_v47 }
 0x193   :  { %vm2985_vm15 = vcmp.ge.s32.totalorder %v2785_v43, 1677722  ;;  %v4603_v44 = vshrl.u32 %v1986_v24, 16  ;;  %v1190_v19 = vmul.u32 2146121005, %v990_v55  ;;  %v4208_v4 = vshrl.u32 %v391_v26, 16 }
 0x194   :  { %v3785_v62 = vsel %vm2985_vm15, %v5412_v20, 0.0  ;;  %v4604_v42 = vshrl.u32 %v1987_v60, 16  ;;  %v1988_v18 = vmul.u32 2221713035, %v1788_v52  ;;  %v1789_v61 = vxor.u32 %v4406_v12, %v1189_v30  ;;  %v3194_v30 = vld [vmem:[#allocation4 + $0x340] sm:$0xff]  ;;  %v3195_v55 = vld [vmem:[#allocation4 + $0x348] sm:$0xff] }
 0x195   :  { %3985 = vst [vmem:[#allocation7 + $0x2f8] sm:$0xff] %v3785_v62  ;;  %v2586_v48 = vxor.u32 %v4603_v44, %v1986_v24  ;;  %v4407_v14 = vshrl.u32 %v1190_v19, 15  ;;  %v991_v28 = vxor.u32 %v4208_v4, %v391_v26  ;;  %v191_v15 = vadd.s32 %v4819_v10, %v5416_v21  ;;  %v3196_v52 = vld [vmem:[#allocation4 + $0x350] sm:$0xff] }
 0x196   :  { %v2587_v22 = vxor.u32 %v4604_v42, %v1987_v60  ;;  %v4605_v17 = vshrl.u32 %v1988_v18, 16  ;;  %v1989_v45 = vmul.u32 2221713035, %v1789_v61  ;;  %v3392_v50 = vmax.f32 %v3192_v37, 0.0 }
 0x197   :  { %v2786_v35 = vand.u32 16777215, %v2586_v48  ;;  %v1790_v16 = vxor.u32 %v4407_v14, %v1190_v19  ;;  %v1191_v33 = vmul.u32 2146121005, %v991_v28  ;;  %v392_v54 = vadd.s32 %v4800_v3, %v191_v15 }
 0x198   :  { %v2787_v20 = vand.u32 16777215, %v2587_v22  ;;  %v2588_v56 = vxor.u32 %v4605_v17, %v1988_v18  ;;  %v4606_v0 = vshrl.u32 %v1989_v45, 16  ;;  %v5455_v41 = vmul.f32 1.1111112, %v3392_v50 }
 0x199   :  { %vm2986_vm0 = vcmp.ge.s32.totalorder %v2786_v35, 1677722  ;;  %v1990_v58 = vmul.u32 2221713035, %v1790_v16  ;;  %v4408_v57 = vshrl.u32 %v1191_v33, 15  ;;  %v4209_v23 = vshrl.u32 %v392_v54, 16 }
 0x19a   :  { %v3786_v36 = vsel %vm2986_vm0, %v5420_v53, 0.0  ;;  %vm2987_vm1 = vcmp.ge.s32.totalorder %v2787_v20, 1677722  ;;  %v2788_v32 = vand.u32 16777215, %v2588_v56  ;;  %v2589_v38 = vxor.u32 %v4606_v0, %v1989_v45 }
 0x19b   :  { %3986 = vst [vmem:[#allocation7 + $0x300] sm:$0xff] %v3786_v36  ;;  %v3787_v29 = vsel %vm2987_vm1, %v5424_v51, 0.0  ;;  %v4607_v39 = vshrl.u32 %v1990_v58, 16  ;;  %v1791_v63 = vxor.u32 %v4408_v57, %v1191_v33  ;;  %v992_v46 = vxor.u32 %v4209_v23, %v392_v54  ;;  %v3197_v33 = vld [vmem:[#allocation4 + $0x358] sm:$0xff] }
 0x19c   :  { %3987 = vst [vmem:[#allocation7 + $0x308] sm:$0xff] %v3787_v29  ;;  %vm2988_vm2 = vcmp.ge.s32.totalorder %v2788_v32, 1677722  ;;  %v2789_v31 = vand.u32 16777215, %v2589_v38  ;;  %v192_v13 = vadd.s32 %v4822_v11, %v5416_v21  ;;  %v3393_v25 = vmax.f32 %v3193_v27, 0.0 }
 0x19d   :  { %v3788_v47 = vsel %vm2988_vm2, %v5431_v49, 0.0  ;;  %v2590_v53 = vxor.u32 %v4607_v39, %v1990_v58  ;;  %v1991_v43 = vmul.u32 2221713035, %v1791_v63  ;;  %v1192_v24 = vmul.u32 2146121005, %v992_v46 }
 0x19e   :  { %3988 = vst [vmem:[#allocation7 + $0x310] sm:$0xff] %v3788_v47  ;;  %vm2989_vm3 = vcmp.ge.s32.totalorder %v2789_v31, 1677722  ;;  %v393_v51 = vadd.s32 %v4800_v3, %v192_v13  ;;  %v5463_v26 = vmul.f32 1.1111112, %v3393_v25  ;;  %v43_v60 = vadd.s32 104, %v4796_v1 }
 0x19f   :  { %v3789_v12 = vsel %vm2989_vm3, %v5438_v34, 0.0  ;;  %v2790_v21 = vand.u32 16777215, %v2590_v53  ;;  %v4608_v37 = vshrl.u32 %v1991_v43, 16  ;;  %v4409_v44 = vshrl.u32 %v1192_v24, 15  ;;  %v3198_v31 = vld [vmem:[#allocation4 + $0x360] sm:$0xff] }
 0x1a0   :  { %3989 = vst [vmem:[#allocation7 + $0x318] sm:$0xff] %v3789_v12  ;;  %v4210_v49 = vshrl.u32 %v393_v51, 16  ;;  %v5467_v19 = vmul.u32 1024, %v43_v60  ;;  %v3394_v4 = vmax.f32 %v3194_v30, 0.0  ;;  %v3395_v62 = vmax.f32 %v3195_v55, 0.0 }
 0x1a1   :  { %vm2990_vm4 = vcmp.ge.s32.totalorder %v2790_v21, 1677722  ;;  %v2591_v42 = vxor.u32 %v4608_v37, %v1991_v43  ;;  %v1792_v18 = vxor.u32 %v4409_v44, %v1192_v24  ;;  %v3396_v61 = vmax.f32 %v3196_v52, 0.0  ;;  %v3199_v44 = vld [vmem:[#allocation4 + $0x368] sm:$0xff] }
 0x1a2   :  { %v3790_v48 = vsel %vm2990_vm4, %v5444_v40, 0.0  ;;  %v993_v14 = vxor.u32 %v4210_v49, %v393_v51  ;;  %v193_v28 = vadd.s32 %v4798_v2, %v5467_v19  ;;  %v5472_v34 = vmul.f32 1.1111112, %v3394_v4 }
 0x1a3   :  { %3990 = vst [vmem:[#allocation7 + $0x320] sm:$0xff] %v3790_v48  ;;  %v2791_v15 = vand.u32 16777215, %v2591_v42  ;;  %v1992_v22 = vmul.u32 2221713035, %v1792_v18  ;;  %v194_v17 = vadd.s32 %v4804_v5, %v5467_v19  ;;  %v195_v40 = vadd.s32 %v4807_v6, %v5467_v19 }
 0x1a4   :  { %v5476_v45 = vmul.f32 1.1111112, %v3395_v62  ;;  %v1193_v50 = vmul.u32 2146121005, %v993_v14  ;;  %v394_v35 = vadd.s32 %v4800_v3, %v193_v28  ;;  %v5481_v16 = vmul.f32 1.1111112, %v3396_v61 }
 0x1a5   :  { %vm2991_vm5 = vcmp.ge.s32.totalorder %v2791_v15, 1677722  ;;  %v4609_v54 = vshrl.u32 %v1992_v22, 16  ;;  %v395_v20 = vadd.s32 %v4800_v3, %v194_v17  ;;  %v196_v56 = vadd.s32 %v4810_v7, %v5467_v19 }
 0x1a6   :  { %v3791_v0 = vsel %vm2991_vm5, %v5449_v59, 0.0  ;;  %v4410_v27 = vshrl.u32 %v1193_v50, 15  ;;  %v4211_v58 = vshrl.u32 %v394_v35, 16  ;;  %v396_v57 = vadd.s32 %v4800_v3, %v195_v40 }
 0x1a7   :  { %3991 = vst [vmem:[#allocation7 + $0x328] sm:$0xff] %v3791_v0  ;;  %v2592_v23 = vxor.u32 %v4609_v54, %v1992_v22  ;;  %v4212_v36 = vshrl.u32 %v395_v20, 16  ;;  %v397_v32 = vadd.s32 %v4800_v3, %v196_v56  ;;  %v3397_v38 = vmax.f32 %v3197_v33, 0.0  ;;  %v3200_v33 = vld [vmem:[#allocation4 + $0x370] sm:$0xff] }
 0x1a8   :  { %v1793_v29 = vxor.u32 %v4410_v27, %v1193_v50  ;;  %v994_v39 = vxor.u32 %v4211_v58, %v394_v35  ;;  %v4213_v63 = vshrl.u32 %v396_v57, 16  ;;  %v197_v46 = vadd.s32 %v4813_v8, %v5467_v19 }
 0x1a9   :  { %v2792_v13 = vand.u32 16777215, %v2592_v23  ;;  %v995_v25 = vxor.u32 %v4212_v36, %v395_v20  ;;  %v4214_v59 = vshrl.u32 %v397_v32, 16  ;;  %v5491_v30 = vmul.f32 1.1111112, %v3397_v38 }
 0x1aa   :  { %v1993_v47 = vmul.u32 2221713035, %v1793_v29  ;;  %v1194_v53 = vmul.u32 2146121005, %v994_v39  ;;  %v996_v43 = vxor.u32 %v4213_v63, %v396_v57  ;;  %v398_v24 = vadd.s32 %v4800_v3, %v197_v46 }
 0x1ab   :  { %vm2992_vm6 = vcmp.ge.s32.totalorder %v2792_v13, 1677722  ;;  %v1195_v55 = vmul.u32 2146121005, %v995_v25  ;;  %v997_v51 = vxor.u32 %v4214_v59, %v397_v32  ;;  %v3398_v60 = vmax.f32 %v3198_v31, 0.0 }
 0x1ac   :  { %v3792_v52 = vsel %vm2992_vm6, %v5455_v41, 0.0  ;;  %v4610_v12 = vshrl.u32 %v1993_v47, 16  ;;  %v4411_v21 = vshrl.u32 %v1194_v53, 15  ;;  %v1196_v37 = vmul.u32 2146121005, %v996_v43 }
 0x1ad   :  { %3992 = vst [vmem:[#allocation7 + $0x330] sm:$0xff] %v3792_v52  ;;  %v4412_v49 = vshrl.u32 %v1195_v55, 15  ;;  %v1197_v4 = vmul.u32 2146121005, %v997_v51  ;;  %v4215_v62 = vshrl.u32 %v398_v24, 16  ;;  %v198_v14 = vadd.s32 %v4816_v9, %v5467_v19  ;;  %v3201_v52 = vld [vmem:[#allocation4 + $0x378] sm:$0xff] }
 0x1ae   :  { %v5495_v42 = vmul.f32 1.1111112, %v3398_v60  ;;  %v2593_v18 = vxor.u32 %v4610_v12, %v1993_v47  ;;  %v1794_v61 = vxor.u32 %v4411_v21, %v1194_v53  ;;  %v4413_v48 = vshrl.u32 %v1196_v37, 15 }
 0x1af   :  { %v1795_v28 = vxor.u32 %v4412_v49, %v1195_v55  ;;  %v4414_v15 = vshrl.u32 %v1197_v4, 15  ;;  %v998_v22 = vxor.u32 %v4215_v62, %v398_v24  ;;  %v3399_v41 = vmax.f32 %v3199_v44, 0.0 }
 0x1b0   :  { %v2793_v17 = vand.u32 16777215, %v2593_v18  ;;  %v1994_v50 = vmul.u32 2221713035, %v1794_v61  ;;  %v1796_v35 = vxor.u32 %v4413_v48, %v1196_v37  ;;  %v399_v40 = vadd.s32 %v4800_v3, %v198_v14  ;;  %v3202_v48 = vld [vmem:[#allocation4 + $0x380] sm:$0xff] }
 0x1b1   :  { %v1995_v54 = vmul.u32 2221713035, %v1795_v28  ;;  %v1797_v20 = vxor.u32 %v4414_v15, %v1197_v4  ;;  %v1198_v56 = vmul.u32 2146121005, %v998_v22  ;;  %v5500_v0 = vmul.f32 1.1111112, %v3399_v41 }
 0x1b2   :  { %vm2993_vm7 = vcmp.ge.s32.totalorder %v2793_v17, 1677722  ;;  %v4611_v27 = vshrl.u32 %v1994_v50, 16  ;;  %v1996_v58 = vmul.u32 2221713035, %v1796_v35  ;;  %v4216_v57 = vshrl.u32 %v399_v40, 16 }
 0x1b3   :  { %v3793_v23 = vsel %vm2993_vm7, %v5463_v26, 0.0  ;;  %v4612_v36 = vshrl.u32 %v1995_v54, 16  ;;  %v1997_v32 = vmul.u32 2221713035, %v1797_v20  ;;  %v4415_v38 = vshrl.u32 %v1198_v56, 15  ;;  %v3203_v22 = vld [vmem:[#allocation4 + $0x388] sm:$0xff] }
 0x1b4   :  { %3993 = vst [vmem:[#allocation7 + $0x338] sm:$0xff] %v3793_v23  ;;  %v2594_v29 = vxor.u32 %v4611_v27, %v1994_v50  ;;  %v4613_v39 = vshrl.u32 %v1996_v58, 16  ;;  %v999_v63 = vxor.u32 %v4216_v57, %v399_v40  ;;  %v199_v46 = vadd.s32 %v4819_v10, %v5467_v19 }
 0x1b5   :  { %v2595_v31 = vxor.u32 %v4612_v36, %v1995_v54  ;;  %v4614_v13 = vshrl.u32 %v1997_v32, 16  ;;  %v1798_v25 = vxor.u32 %v4415_v38, %v1198_v56  ;;  %v3400_v59 = vmax.f32 %v3200_v33, 0.0 }
 0x1b6   :  { %v2794_v47 = vand.u32 16777215, %v2594_v29  ;;  %v2596_v53 = vxor.u32 %v4613_v39, %v1996_v58  ;;  %v1199_v43 = vmul.u32 2146121005, %v999_v63  ;;  %v400_v24 = vadd.s32 %v4800_v3, %v199_v46 }
 0x1b7   :  { %v2795_v26 = vand.u32 16777215, %v2595_v31  ;;  %v2597_v55 = vxor.u32 %v4614_v13, %v1997_v32  ;;  %v1998_v51 = vmul.u32 2221713035, %v1798_v25  ;;  %v5506_v60 = vmul.f32 1.1111112, %v3400_v59 }
 0x1b8   :  { %vm2994_vm8 = vcmp.ge.s32.totalorder %v2794_v47, 1677722  ;;  %v2796_v12 = vand.u32 16777215, %v2596_v53  ;;  %v4416_v21 = vshrl.u32 %v1199_v43, 15  ;;  %v4217_v37 = vshrl.u32 %v400_v24, 16 }
 0x1b9   :  { %v3794_v44 = vsel %vm2994_vm8, %v5472_v34, 0.0  ;;  %vm2995_vm9 = vcmp.ge.s32.totalorder %v2795_v26, 1677722  ;;  %v2797_v49 = vand.u32 16777215, %v2597_v55  ;;  %v4615_v4 = vshrl.u32 %v1998_v51, 16 }
 0x1ba   :  { %3994 = vst [vmem:[#allocation7 + $0x340] sm:$0xff] %v3794_v44  ;;  %v3795_v62 = vsel %vm2995_vm9, %v5476_v45, 0.0  ;;  %vm2996_vm10 = vcmp.ge.s32.totalorder %v2796_v12, 1677722  ;;  %v1799_v18 = vxor.u32 %v4416_v21, %v1199_v43  ;;  %v1000_v61 = vxor.u32 %v4217_v37, %v400_v24  ;;  %v3205_v43 = vld [vmem:[#allocation4 + $0x398] sm:$0xff] }
 0x1bb   :  { %3995 = vst [vmem:[#allocation7 + $0x348] sm:$0xff] %v3795_v62  ;;  %v3796_v14 = vsel %vm2996_vm10, %v5481_v16, 0.0  ;;  %vm2997_vm11 = vcmp.ge.s32.totalorder %v2797_v49, 1677722  ;;  %v2598_v28 = vxor.u32 %v4615_v4, %v1998_v51  ;;  %v200_v15 = vadd.s32 %v4822_v11, %v5467_v19  ;;  %v3204_v19 = vld [vmem:[#allocation4 + $0x390] sm:$0xff]  ;;  %v3206_v62 = vld [vmem:[#allocation4 + $0x3a0] sm:$0xff] }
 0x1bc   :  { %3996 = vst [vmem:[#allocation7 + $0x350] sm:$0xff] %v3796_v14  ;;  %v3797_v34 = vsel %vm2997_vm11, %v5491_v30, 0.0  ;;  %v1999_v41 = vmul.u32 2221713035, %v1799_v18  ;;  %v1200_v17 = vmul.u32 2146121005, %v1000_v61 }
 0x1bd   :  { %v3401_v50 = vmax.f32 %v3201_v52, 0.0  ;;  %3997 = vst [vmem:[#allocation7 + $0x358] sm:$0xff] %v3797_v34  ;;  %v2798_v45 = vand.u32 16777215, %v2598_v28  ;;  %v401_v35 = vadd.s32 %v4800_v3, %v200_v15  ;;  %v44_v40 = vadd.s32 112, %v4796_v1 }
 0x1be   :  { %v3402_v33 = vmax.f32 %v3202_v48, 0.0  ;;  %v4616_v16 = vshrl.u32 %v1999_v41, 16  ;;  %v4417_v54 = vshrl.u32 %v1200_v17, 15  ;;  %v3403_v56 = vmax.f32 %v3203_v22, 0.0 }
 0x1bf   :  { %v5516_v20 = vmul.f32 1.1111112, %v3401_v50  ;;  %vm2998_vm12 = vcmp.ge.s32.totalorder %v2798_v45, 1677722  ;;  %v4218_v27 = vshrl.u32 %v401_v35, 16  ;;  %v5518_v58 = vmul.u32 1024, %v44_v40 }
 0x1c0   :  { %v5520_v30 = vmul.f32 1.1111112, %v3402_v33  ;;  %v3798_v57 = vsel %vm2998_vm12, %v5495_v42, 0.0  ;;  %v2599_v23 = vxor.u32 %v4616_v16, %v1999_v41  ;;  %v1800_v36 = vxor.u32 %v4417_v54, %v1200_v17 }
 0x1c1   :  { %v5523_v32 = vmul.f32 1.1111112, %v3403_v56  ;;  %3998 = vst [vmem:[#allocation7 + $0x360] sm:$0xff] %v3798_v57  ;;  %v1001_v38 = vxor.u32 %v4218_v27, %v401_v35  ;;  %v201_v29 = vadd.s32 %v4798_v2, %v5518_v58  ;;  %v202_v39 = vadd.s32 %v4804_v5, %v5518_v58 }
 0x1c2   :  { %v203_v63 = vadd.s32 %v4807_v6, %v5518_v58  ;;  %v2799_v46 = vand.u32 16777215, %v2599_v23  ;;  %v2000_v31 = vmul.u32 2221713035, %v1800_v36  ;;  %v3404_v13 = vmax.f32 %v3204_v19, 0.0  ;;  %v3207_v19 = vld [vmem:[#allocation4 + $0x3a8] sm:$0xff] }
 0x1c3   :  { %v204_v42 = vadd.s32 %v4810_v7, %v5518_v58  ;;  %v1201_v25 = vmul.u32 2146121005, %v1001_v38  ;;  %v402_v59 = vadd.s32 %v4800_v3, %v201_v29  ;;  %v403_v47 = vadd.s32 %v4800_v3, %v202_v39 }
 0x1c4   :  { %v404_v53 = vadd.s32 %v4800_v3, %v203_v63  ;;  %vm2999_vm13 = vcmp.ge.s32.totalorder %v2799_v46, 1677722  ;;  %v4617_v24 = vshrl.u32 %v2000_v31, 16  ;;  %v5536_v26 = vmul.f32 1.1111112, %v3404_v13 }
 0x1c5   :  { %v405_v55 = vadd.s32 %v4800_v3, %v204_v42  ;;  %v3799_v51 = vsel %vm2999_vm13, %v5500_v0, 0.0  ;;  %v4418_v52 = vshrl.u32 %v1201_v25, 15  ;;  %v4219_v12 = vshrl.u32 %v402_v59, 16 }
 0x1c6   :  { %v4220_v21 = vshrl.u32 %v403_v47, 16  ;;  %3999 = vst [vmem:[#allocation7 + $0x368] sm:$0xff] %v3799_v51  ;;  %v2600_v37 = vxor.u32 %v4617_v24, %v2000_v31  ;;  %v4221_v44 = vshrl.u32 %v404_v53, 16  ;;  %v3405_v4 = vmax.f32 %v3205_v43, 0.0 }
 0x1c7   :  { %v4222_v49 = vshrl.u32 %v405_v55, 16  ;;  %v1801_v18 = vxor.u32 %v4418_v52, %v1201_v25  ;;  %v1002_v61 = vxor.u32 %v4219_v12, %v402_v59  ;;  %v205_v14 = vadd.s32 %v4813_v8, %v5518_v58 }
 0x1c8   :  { %v1003_v48 = vxor.u32 %v4220_v21, %v403_v47  ;;  %v2800_v28 = vand.u32 16777215, %v2600_v37  ;;  %v1004_v15 = vxor.u32 %v4221_v44, %v404_v53  ;;  %v5542_v34 = vmul.f32 1.1111112, %v3405_v4  ;;  %v3208_v21 = vld [vmem:[#allocation4 + $0x3b0] sm:$0xff] }
 0x1c9   :  { %v1005_v22 = vxor.u32 %v4222_v49, %v405_v55  ;;  %v2001_v0 = vmul.u32 2221713035, %v1801_v18  ;;  %v1202_v41 = vmul.u32 2146121005, %v1002_v61  ;;  %v406_v17 = vadd.s32 %v4800_v3, %v205_v14 }
 0x1ca   :  { %v3406_v50 = vmax.f32 %v3206_v62, 0.0  ;;  %vm3000_vm14 = vcmp.ge.s32.totalorder %v2800_v28, 1677722  ;;  %v1203_v45 = vmul.u32 2146121005, %v1003_v48  ;;  %v206_v40 = vadd.s32 %v4816_v9, %v5518_v58 }
 0x1cb   :  { %v1204_v35 = vmul.u32 2146121005, %v1004_v15  ;;  %v3800_v33 = vsel %vm3000_vm14, %v5506_v60, 0.0  ;;  %v4618_v16 = vshrl.u32 %v2001_v0, 16  ;;  %v4419_v54 = vshrl.u32 %v1202_v41, 15 }
 0x1cc   :  { %v1205_v56 = vmul.u32 2146121005, %v1005_v22  ;;  %4000 = vst [vmem:[#allocation7 + $0x370] sm:$0xff] %v3800_v33  ;;  %v4420_v27 = vshrl.u32 %v1203_v45, 15  ;;  %v4223_v23 = vshrl.u32 %v406_v17, 16  ;;  %v407_v63 = vadd.s32 %v4800_v3, %v206_v40 }
 0x1cd   :  { %v4421_v57 = vshrl.u32 %v1204_v35, 15  ;;  %v5548_v36 = vmul.f32 1.1111112, %v3406_v50  ;;  %v2601_v38 = vxor.u32 %v4618_v16, %v2001_v0  ;;  %v1802_v29 = vxor.u32 %v4419_v54, %v1202_v41 }
 0x1ce   :  { %v4422_v39 = vshrl.u32 %v1205_v56, 15  ;;  %v1803_v46 = vxor.u32 %v4420_v27, %v1203_v45  ;;  %v1006_v13 = vxor.u32 %v4223_v23, %v406_v17  ;;  %v3407_v42 = vmax.f32 %v3207_v19, 0.0  ;;  %v3210_v19 = vld [vmem:[#allocation4 + $0x3c0] sm:$0xff]  ;;  %v3211_v23 = vld [vmem:[#allocation4 + $0x3c8] sm:$0xff] }
 0x1cf   :  { %v1804_v31 = vxor.u32 %v4421_v57, %v1204_v35  ;;  %v2801_v60 = vand.u32 16777215, %v2601_v38  ;;  %v2002_v25 = vmul.u32 2221713035, %v1802_v29  ;;  %v4224_v47 = vshrl.u32 %v407_v63, 16 }
 0x1d0   :  { %v1805_v59 = vxor.u32 %v4422_v39, %v1205_v56  ;;  %v2003_v53 = vmul.u32 2221713035, %v1803_v46  ;;  %v5551_v24 = vmul.f32 1.1111112, %v3407_v42  ;;  %v207_v55 = vadd.s32 %v4819_v10, %v5518_v58  ;;  %v3209_v56 = vld [vmem:[#allocation4 + $0x3b8] sm:$0xff] }
 0x1d1   :  { %v2004_v43 = vmul.u32 2221713035, %v1804_v31  ;;  %vm3001_vm15 = vcmp.ge.s32.totalorder %v2801_v60, 1677722  ;;  %v4619_v51 = vshrl.u32 %v2002_v25, 16  ;;  %v1007_v12 = vxor.u32 %v4224_v47, %v407_v63 }
 0x1d2   :  { %v2005_v52 = vmul.u32 2221713035, %v1805_v59  ;;  %v3801_v37 = vsel %vm3001_vm15, %v5516_v20, 0.0  ;;  %v4620_v44 = vshrl.u32 %v2003_v53, 16  ;;  %v1206_v4 = vmul.u32 2146121005, %v1006_v13 }
 0x1d3   :  { %v4621_v49 = vshrl.u32 %v2004_v43, 16  ;;  %4001 = vst [vmem:[#allocation7 + $0x378] sm:$0xff] %v3801_v37  ;;  %v2602_v62 = vxor.u32 %v4619_v51, %v2002_v25  ;;  %v1207_v61 = vmul.u32 2146121005, %v1007_v12  ;;  %v408_v48 = vadd.s32 %v4800_v3, %v207_v55 }
 0x1d4   :  { %v4622_v18 = vshrl.u32 %v2005_v52, 16  ;;  %v2603_v14 = vxor.u32 %v4620_v44, %v2003_v53  ;;  %v4423_v15 = vshrl.u32 %v1206_v4, 15  ;;  %v3408_v22 = vmax.f32 %v3208_v21, 0.0 }
 0x1d5   :  { %v2604_v28 = vxor.u32 %v4621_v49, %v2004_v43  ;;  %v2802_v0 = vand.u32 16777215, %v2602_v62  ;;  %v4424_v17 = vshrl.u32 %v1207_v61, 15  ;;  %v4225_v50 = vshrl.u32 %v408_v48, 16 }
 0x1d6   :  { %v2605_v41 = vxor.u32 %v4622_v18, %v2005_v52  ;;  %v2803_v45 = vand.u32 16777215, %v2603_v14  ;;  %v1806_v20 = vxor.u32 %v4423_v15, %v1206_v4  ;;  %v5557_v40 = vmul.f32 1.1111112, %v3408_v22  ;;  %v3212_v15 = vld [vmem:[#allocation4 + $0x3d0] sm:$0xff] }
 0x1d7   :  { %v2804_v35 = vand.u32 16777215, %v2604_v28  ;;  %vm3002_vm0 = vcmp.ge.s32.totalorder %v2802_v0, 1677722  ;;  %v1807_v16 = vxor.u32 %v4424_v17, %v1207_v61  ;;  %v1008_v54 = vxor.u32 %v4225_v50, %v408_v48  ;;  %v3213_v17 = vld [vmem:[#allocation4 + $0x3d8] sm:$0xff] }
 0x1d8   :  { %v2805_v33 = vand.u32 16777215, %v2605_v41  ;;  %v3802_v27 = vsel %vm3002_vm0, %v5520_v30, 0.0  ;;  %vm3003_vm1 = vcmp.ge.s32.totalorder %v2803_v45, 1677722  ;;  %v208_v57 = vadd.s32 %v4822_v11, %v5518_v58 }
 0x1d9   :  { %vm3004_vm2 = vcmp.ge.s32.totalorder %v2804_v35, 1677722  ;;  %4002 = vst [vmem:[#allocation7 + $0x380] sm:$0xff] %v3802_v27  ;;  %v3803_v38 = vsel %vm3003_vm1, %v5523_v32, 0.0  ;;  %v2006_v39 = vmul.u32 2221713035, %v1806_v20 }
 0x1da   :  { %v3804_v29 = vsel %vm3004_vm2, %v5536_v26, 0.0  ;;  %vm3005_vm3 = vcmp.ge.s32.totalorder %v2805_v33, 1677722  ;;  %4003 = vst [vmem:[#allocation7 + $0x388] sm:$0xff] %v3803_v38  ;;  %v2007_v46 = vmul.u32 2221713035, %v1807_v16  ;;  %v409_v30 = vadd.s32 %v4800_v3, %v208_v57 }
 0x1db   :  { %4004 = vst [vmem:[#allocation7 + $0x390] sm:$0xff] %v3804_v29  ;;  %v3805_v63 = vsel %vm3005_vm3, %v5542_v34, 0.0  ;;  %v1208_v31 = vmul.u32 2146121005, %v1008_v54  ;;  %v4623_v13 = vshrl.u32 %v2006_v39, 16  ;;  %v3409_v42 = vmax.f32 %v3209_v56, 0.0 }
 0x1dc   :  { %4005 = vst [vmem:[#allocation7 + $0x398] sm:$0xff] %v3805_v63  ;;  %v45_v58 = vadd.s32 120, %v4796_v1  ;;  %v3410_v60 = vmax.f32 %v3210_v19, 0.0  ;;  %v4624_v25 = vshrl.u32 %v2007_v46, 16  ;;  %v4226_v59 = vshrl.u32 %v409_v30, 16  ;;  %v3214_v19 = vld [vmem:[#allocation4 + $0x3e0] sm:$0xff] }
 0x1dd   :  { %v4425_v32 = vshrl.u32 %v1208_v31, 15  ;;  %v3411_v26 = vmax.f32 %v3211_v23, 0.0  ;;  %v2606_v47 = vxor.u32 %v4623_v13, %v2006_v39  ;;  %v5567_v53 = vmul.f32 1.1111112, %v3409_v42 }
 0x1de   :  { %v5569_v43 = vmul.u32 1024, %v45_v58  ;;  %v5571_v34 = vmul.f32 1.1111112, %v3410_v60  ;;  %v2607_v55 = vxor.u32 %v4624_v25, %v2007_v46  ;;  %v1009_v52 = vxor.u32 %v4226_v59, %v409_v30 }
 0x1df   :  { %v1808_v51 = vxor.u32 %v4425_v32, %v1208_v31  ;;  %v5573_v12 = vmul.f32 1.1111112, %v3411_v26  ;;  %v2806_v21 = vand.u32 16777215, %v2606_v47  ;;  %v3412_v54 = vmax.f32 %v3212_v15, 0.0 }
 0x1e0   :  { %v209_v37 = vadd.s32 %v4798_v2, %v5569_v43  ;;  %v210_v44 = vadd.s32 %v4804_v5, %v5569_v43  ;;  %v211_v49 = vadd.s32 %v4807_v6, %v5569_v43  ;;  %v2807_v4 = vand.u32 16777215, %v2607_v55 }
 0x1e1   :  { %v2008_v62 = vmul.u32 2221713035, %v1808_v51  ;;  %v1209_v18 = vmul.u32 2146121005, %v1009_v52  ;;  %v212_v61 = vadd.s32 %v4810_v7, %v5569_v43  ;;  %vm3006_vm4 = vcmp.ge.s32.totalorder %v2806_v21, 1677722 }
 0x1e2   :  { %v410_v48 = vadd.s32 %v4800_v3, %v209_v37  ;;  %v411_v14 = vadd.s32 %v4800_v3, %v210_v44  ;;  %v412_v28 = vadd.s32 %v4800_v3, %v211_v49  ;;  %v3806_v22 = vsel %vm3006_vm4, %v5548_v36, 0.0  ;;  %v3215_v52 = vld [vmem:[#allocation4 + $0x3e8] sm:$0xff] }
 0x1e3   :  { %vm3007_vm5 = vcmp.ge.s32.totalorder %v2807_v4, 1677722  ;;  %v4625_v0 = vshrl.u32 %v2008_v62, 16  ;;  %v4426_v41 = vshrl.u32 %v1209_v18, 15  ;;  %4006 = vst [vmem:[#allocation7 + $0x3a0] sm:$0xff] %v3806_v22  ;;  %v413_v56 = vadd.s32 %v4800_v3, %v212_v61 }
 0x1e4   :  { %v3807_v50 = vsel %vm3007_vm5, %v5551_v24, 0.0  ;;  %v4227_v45 = vshrl.u32 %v410_v48, 16  ;;  %v4228_v35 = vshrl.u32 %v411_v14, 16  ;;  %v4229_v20 = vshrl.u32 %v412_v28, 16 }
 0x1e5   :  { %4007 = vst [vmem:[#allocation7 + $0x3a8] sm:$0xff] %v3807_v50  ;;  %v2608_v33 = vxor.u32 %v4625_v0, %v2008_v62  ;;  %v1809_v16 = vxor.u32 %v4426_v41, %v1209_v18  ;;  %v3413_v23 = vmax.f32 %v3213_v17, 0.0  ;;  %v5589_v39 = vmul.f32 1.1111112, %v3412_v54 }
 0x1e6   :  { %v1010_v27 = vxor.u32 %v4227_v45, %v410_v48  ;;  %v1011_v57 = vxor.u32 %v4228_v35, %v411_v14  ;;  %v1012_v36 = vxor.u32 %v4229_v20, %v412_v28  ;;  %v213_v24 = vadd.s32 %v4813_v8, %v5569_v43  ;;  %v3216_v35 = vld [vmem:[#allocation4 + $0x3f0] sm:$0xff] }
 0x1e7   :  { %v2808_v38 = vand.u32 16777215, %v2608_v33  ;;  %v2009_v29 = vmul.u32 2221713035, %v1809_v16  ;;  %v4230_v31 = vshrl.u32 %v413_v56, 16  ;;  %v3414_v30 = vmax.f32 %v3214_v19, 0.0 }
 0x1e8   :  { %v1210_v63 = vmul.u32 2146121005, %v1010_v27  ;;  %v1211_v46 = vmul.u32 2146121005, %v1011_v57  ;;  %v414_v58 = vadd.s32 %v4800_v3, %v213_v24  ;;  %v5595_v55 = vmul.f32 1.1111112, %v3413_v23 }
 0x1e9   :  { %vm3008_vm6 = vcmp.ge.s32.totalorder %v2808_v38, 1677722  ;;  %v4626_v13 = vshrl.u32 %v2009_v29, 16  ;;  %v1212_v42 = vmul.u32 2146121005, %v1012_v36  ;;  %v1013_v59 = vxor.u32 %v4230_v31, %v413_v56 }
 0x1ea   :  { %v3808_v60 = vsel %vm3008_vm6, %v5557_v40, 0.0  ;;  %v4427_v25 = vshrl.u32 %v1210_v63, 15  ;;  %v4428_v32 = vshrl.u32 %v1211_v46, 15  ;;  %v4231_v51 = vshrl.u32 %v414_v58, 16 }
 0x1eb   :  { %4008 = vst [vmem:[#allocation7 + $0x3b0] sm:$0xff] %v3808_v60  ;;  %v2609_v26 = vxor.u32 %v4626_v13, %v2009_v29  ;;  %v4429_v47 = vshrl.u32 %v1212_v42, 15  ;;  %v1213_v44 = vmul.u32 2146121005, %v1013_v59  ;;  %v5597_v49 = vmul.f32 1.1111112, %v3414_v30 }
 0x1ec   :  { %v1810_v21 = vxor.u32 %v4427_v25, %v1210_v63  ;;  %v1811_v37 = vxor.u32 %v4428_v32, %v1211_v46  ;;  %v1014_v18 = vxor.u32 %v4231_v51, %v414_v58  ;;  %v214_v40 = vadd.s32 %v4816_v9, %v5569_v43  ;;  %v3217_v25 = vld [vmem:[#allocation4 + $0x3f8] sm:$0xff] }
 0x1ed   :  { %v2809_v4 = vand.u32 16777215, %v2609_v26  ;;  %v1812_v62 = vxor.u32 %v4429_v47, %v1212_v42  ;;  %v4430_v14 = vshrl.u32 %v1213_v44, 15  ;;  %v3415_v28 = vmax.f32 %v3215_v52, 0.0 }
 0x1ee   :  { %v2010_v61 = vmul.u32 2221713035, %v1810_v21  ;;  %v2011_v48 = vmul.u32 2221713035, %v1811_v37  ;;  %v415_v0 = vadd.s32 %v4800_v3, %v214_v40  ;;  %v215_v57 = vadd.s32 %v4819_v10, %v5569_v43 }
 0x1ef   :  { %vm3009_vm7 = vcmp.ge.s32.totalorder %v2809_v4, 1677722  ;;  %v2012_v15 = vmul.u32 2221713035, %v1812_v62  ;;  %v1214_v22 = vmul.u32 2146121005, %v1014_v18  ;;  %v1813_v45 = vxor.u32 %v4430_v14, %v1213_v44 }
 0x1f0   :  { %v3809_v41 = vsel %vm3009_vm7, %v5567_v53, 0.0  ;;  %v4627_v17 = vshrl.u32 %v2010_v61, 16  ;;  %v4628_v50 = vshrl.u32 %v2011_v48, 16  ;;  %v4232_v16 = vshrl.u32 %v415_v0, 16  ;;  %v3218_v62 = vld [vmem:[#allocation4 + $0x400] sm:$0xff] }
 0x1f1   :  { %4009 = vst [vmem:[#allocation7 + $0x3b8] sm:$0xff] %v3809_v41  ;;  %v4629_v20 = vshrl.u32 %v2012_v15, 16  ;;  %v4431_v33 = vshrl.u32 %v1214_v22, 15  ;;  %v5603_v54 = vmul.f32 1.1111112, %v3415_v28  ;;  %v3416_v53 = vmax.f32 %v3216_v35, 0.0 }
 0x1f2   :  { %v2610_v56 = vxor.u32 %v4627_v17, %v2010_v61  ;;  %v2611_v19 = vxor.u32 %v4628_v50, %v2011_v48  ;;  %v2013_v27 = vmul.u32 2221713035, %v1813_v45  ;;  %v1015_v38 = vxor.u32 %v4232_v16, %v415_v0  ;;  %v3220_v61 = vld [vmem:[#allocation4 + $0x410] sm:$0xff] }
 0x1f3   :  { %v2612_v36 = vxor.u32 %v4629_v20, %v2012_v15  ;;  %v1814_v23 = vxor.u32 %v4431_v33, %v1214_v22  ;;  %v416_v46 = vadd.s32 %v4800_v3, %v215_v57  ;;  %v216_v42 = vadd.s32 %v4822_v11, %v5569_v43 }
 0x1f4   :  { %v2810_v29 = vand.u32 16777215, %v2610_v56  ;;  %v2811_v24 = vand.u32 16777215, %v2611_v19  ;;  %v4630_v63 = vshrl.u32 %v2013_v27, 16  ;;  %v3417_v4 = vmax.f32 %v3217_v25, 0.0 }
 0x1f5   :  { %v2812_v31 = vand.u32 16777215, %v2612_v36  ;;  %v2014_v30 = vmul.u32 2221713035, %v1814_v23  ;;  %v1215_v13 = vmul.u32 2146121005, %v1015_v38  ;;  %v417_v44 = vadd.s32 %v4800_v3, %v216_v42 }
 0x1f6   :  { %vm3010_vm8 = vcmp.ge.s32.totalorder %v2810_v29, 1677722  ;;  %vm3011_vm9 = vcmp.ge.s32.totalorder %v2811_v24, 1677722  ;;  %v2613_v58 = vxor.u32 %v4630_v63, %v2013_v27  ;;  %v4233_v60 = vshrl.u32 %v416_v46, 16  ;;  %v3221_v38 = vld [vmem:[#allocation4 + $0x418] sm:$0xff] }
 0x1f7   :  { %v3810_v32 = vsel %vm3010_vm8, %v5571_v34, 0.0  ;;  %v3811_v59 = vsel %vm3011_vm9, %v5573_v12, 0.0  ;;  %vm3012_vm10 = vcmp.ge.s32.totalorder %v2812_v31, 1677722  ;;  %v4631_v26 = vshrl.u32 %v2014_v30, 16  ;;  %v3219_v34 = vld [vmem:[#allocation4 + $0x408] sm:$0xff] }
 0x1f8   :  { %4010 = vst [vmem:[#allocation7 + $0x3c0] sm:$0xff] %v3810_v32  ;;  %4011 = vst [vmem:[#allocation7 + $0x3c8] sm:$0xff] %v3811_v59  ;;  %v3812_v47 = vsel %vm3012_vm10, %v5589_v39, 0.0  ;;  %v2813_v51 = vand.u32 16777215, %v2613_v58  ;;  %v4432_v52 = vshrl.u32 %v1215_v13, 15  ;;  %v1016_v21 = vxor.u32 %v4233_v60, %v416_v46 }
 0x1f9   :  { %4012 = vst [vmem:[#allocation7 + $0x3d0] sm:$0xff] %v3812_v47  ;;  %v2614_v43 = vxor.u32 %v4631_v26, %v2014_v30  ;;  %v5613_v37 = vmul.f32 1.1111112, %v3416_v53  ;;  %v46_v40 = vadd.s32 128, %v4796_v1  ;;  %v4234_v14 = vshrl.u32 %v417_v44, 16 }
 0x1fa   :  { %vm3013_vm11 = vcmp.ge.s32.totalorder %v2813_v51, 1677722  ;;  %v1815_v12 = vxor.u32 %v4432_v52, %v1215_v13  ;;  %v1216_v18 = vmul.u32 2146121005, %v1016_v21  ;;  %v5618_v28 = vmul.f32 1.1111112, %v3417_v4 }
 0x1fb   :  { %v3813_v39 = vsel %vm3013_vm11, %v5595_v55, 0.0  ;;  %v2814_v48 = vand.u32 16777215, %v2614_v43  ;;  %v5620_v0 = vmul.u32 1024, %v46_v40  ;;  %v3418_v41 = vmax.f32 %v3218_v62, 0.0 }
 0x1fc   :  { %4013 = vst [vmem:[#allocation7 + $0x3d8] sm:$0xff] %v3813_v39  ;;  %v2015_v15 = vmul.u32 2221713035, %v1815_v12  ;;  %v4433_v22 = vshrl.u32 %v1216_v18, 15  ;;  %v1017_v17 = vxor.u32 %v4234_v14, %v417_v44  ;;  %v3419_v50 = vmax.f32 %v3219_v34, 0.0 }
 0x1fd   :  { %vm3014_vm12 = vcmp.ge.s32.totalorder %v2814_v48, 1677722  ;;  %v3420_v45 = vmax.f32 %v3220_v61, 0.0  ;;  %v217_v55 = vadd.s32 %v4798_v2, %v5620_v0  ;;  %v5625_v56 = vmul.f32 1.1111112, %v3418_v41  ;;  %v3222_v61 = vld [vmem:[#allocation4 + $0x420] sm:$0xff] }
 0x1fe   :  { %v3814_v35 = vsel %vm3014_vm12, %v5597_v49, 0.0  ;;  %v4632_v20 = vshrl.u32 %v2015_v15, 16  ;;  %v1816_v33 = vxor.u32 %v4433_v22, %v1216_v18  ;;  %v1217_v16 = vmul.u32 2146121005, %v1017_v17  ;;  %v3223_v41 = vld [vmem:[#allocation4 + $0x428] sm:$0xff] }
 0x1ff   :  { %4014 = vst [vmem:[#allocation7 + $0x3e0] sm:$0xff] %v3814_v35  ;;  %v218_v19 = vadd.s32 %v4804_v5, %v5620_v0  ;;  %v5629_v27 = vmul.f32 1.1111112, %v3419_v50  ;;  %v418_v23 = vadd.s32 %v4800_v3, %v217_v55  ;;  %v219_v49 = vadd.s32 %v4807_v6, %v5620_v0 }
 0x200   :  { %v2615_v57 = vxor.u32 %v4632_v20, %v2015_v15  ;;  %v2016_v36 = vmul.u32 2221713035, %v1816_v33  ;;  %v4434_v53 = vshrl.u32 %v1217_v16, 15  ;;  %v5635_v24 = vmul.f32 1.1111112, %v3420_v45 }
 0x201   :  { %v419_v29 = vadd.s32 %v4800_v3, %v218_v19  ;;  %v220_v63 = vadd.s32 %v4810_v7, %v5620_v0  ;;  %v4235_v30 = vshrl.u32 %v418_v23, 16  ;;  %v420_v13 = vadd.s32 %v4800_v3, %v219_v49 }
 0x202   :  { %v2815_v46 = vand.u32 16777215, %v2615_v57  ;;  %v4633_v31 = vshrl.u32 %v2016_v36, 16  ;;  %v1817_v42 = vxor.u32 %v4434_v53, %v1217_v16  ;;  %v3421_v25 = vmax.f32 %v3221_v38, 0.0 }
 0x203   :  { %v4236_v58 = vshrl.u32 %v419_v29, 16  ;;  %v421_v60 = vadd.s32 %v4800_v3, %v220_v63  ;;  %v1018_v59 = vxor.u32 %v4235_v30, %v418_v23  ;;  %v4237_v26 = vshrl.u32 %v420_v13, 16 }
 0x204   :  { %vm3015_vm13 = vcmp.ge.s32.totalorder %v2815_v46, 1677722  ;;  %v2616_v32 = vxor.u32 %v4633_v31, %v2016_v36  ;;  %v2017_v51 = vmul.u32 2221713035, %v1817_v42  ;;  %v5642_v62 = vmul.f32 1.1111112, %v3421_v25 }
 0x205   :  { %v3815_v47 = vsel %vm3015_vm13, %v5603_v54, 0.0  ;;  %v1019_v52 = vxor.u32 %v4236_v58, %v419_v29  ;;  %v4238_v21 = vshrl.u32 %v421_v60, 16  ;;  %v1218_v44 = vmul.u32 2146121005, %v1018_v59  ;;  %v3224_v59 = vld [vmem:[#allocation4 + $0x430] sm:$0xff] }
 0x206   :  { %4015 = vst [vmem:[#allocation7 + $0x3e8] sm:$0xff] %v3815_v47  ;;  %v2816_v43 = vand.u32 16777215, %v2616_v32  ;;  %v1020_v4 = vxor.u32 %v4237_v26, %v420_v13  ;;  %v4634_v34 = vshrl.u32 %v2017_v51, 16  ;;  %v221_v40 = vadd.s32 %v4813_v8, %v5620_v0 }
 0x207   :  { %v1219_v12 = vmul.u32 2146121005, %v1019_v52  ;;  %v1021_v18 = vxor.u32 %v4238_v21, %v421_v60  ;;  %v4435_v39 = vshrl.u32 %v1218_v44, 15  ;;  %v3422_v35 = vmax.f32 %v3222_v61, 0.0 }
 0x208   :  { %vm3016_vm14 = vcmp.ge.s32.totalorder %v2816_v43, 1677722  ;;  %v1220_v48 = vmul.u32 2146121005, %v1020_v4  ;;  %v2617_v14 = vxor.u32 %v4634_v34, %v2017_v51  ;;  %v422_v45 = vadd.s32 %v4800_v3, %v221_v40 }
 0x209   :  { %v3816_v54 = vsel %vm3016_vm14, %v5613_v37, 0.0  ;;  %v4436_v15 = vshrl.u32 %v1219_v12, 15  ;;  %v1221_v22 = vmul.u32 2146121005, %v1021_v18  ;;  %v1818_v17 = vxor.u32 %v4435_v39, %v1218_v44 }
 0x20a   :  { %4016 = vst [vmem:[#allocation7 + $0x3f0] sm:$0xff] %v3816_v54  ;;  %v4437_v50 = vshrl.u32 %v1220_v48, 15  ;;  %v2817_v20 = vand.u32 16777215, %v2617_v14  ;;  %v222_v16 = vadd.s32 %v4816_v9, %v5620_v0  ;;  %v4239_v36 = vshrl.u32 %v422_v45, 16 }
 0x20b   :  { %v1819_v33 = vxor.u32 %v4436_v15, %v1219_v12  ;;  %v4438_v55 = vshrl.u32 %v1221_v22, 15  ;;  %v2018_v19 = vmul.u32 2221713035, %v1818_v17  ;;  %v3423_v37 = vmax.f32 %v3223_v41, 0.0 }
 0x20c   :  { %v1820_v57 = vxor.u32 %v4437_v50, %v1220_v48  ;;  %vm3017_vm15 = vcmp.ge.s32.totalorder %v2817_v20, 1677722  ;;  %v423_v38 = vadd.s32 %v4800_v3, %v222_v16  ;;  %v1022_v46 = vxor.u32 %v4239_v36, %v422_v45  ;;  %v3225_v48 = vld [vmem:[#allocation4 + $0x438] sm:$0xff]  ;;  %v3226_v50 = vld [vmem:[#allocation4 + $0x440] sm:$0xff] }
 0x20d   :  { %v2019_v23 = vmul.u32 2221713035, %v1819_v33  ;;  %v1821_v49 = vxor.u32 %v4438_v55, %v1221_v22  ;;  %v3817_v53 = vsel %vm3017_vm15, %v5618_v28, 0.0  ;;  %v4635_v29 = vshrl.u32 %v2018_v19, 16  ;;  %v3227_v33 = vld [vmem:[#allocation4 + $0x448] sm:$0xff] }
 0x20e   :  { %v2020_v63 = vmul.u32 2221713035, %v1820_v57  ;;  %4017 = vst [vmem:[#allocation7 + $0x3f8] sm:$0xff] %v3817_v53  ;;  %v5652_v13 = vmul.f32 1.1111112, %v3422_v35  ;;  %v4240_v42 = vshrl.u32 %v423_v38, 16  ;;  %v223_v32 = vadd.s32 %v4819_v10, %v5620_v0 }
 0x20f   :  { %v4636_v31 = vshrl.u32 %v2019_v23, 16  ;;  %v2021_v30 = vmul.u32 2221713035, %v1821_v49  ;;  %v2618_v58 = vxor.u32 %v4635_v29, %v2018_v19  ;;  %v1222_v25 = vmul.u32 2146121005, %v1022_v46 }
 0x210   :  { %v4637_v60 = vshrl.u32 %v2020_v63, 16  ;;  %v1023_v51 = vxor.u32 %v4240_v42, %v423_v38  ;;  %v5656_v28 = vmul.f32 1.1111112, %v3423_v37  ;;  %v424_v44 = vadd.s32 %v4800_v3, %v223_v32 }
 0x211   :  { %v2619_v26 = vxor.u32 %v4636_v31, %v2019_v23  ;;  %v4638_v47 = vshrl.u32 %v2021_v30, 16  ;;  %v2818_v52 = vand.u32 16777215, %v2618_v58  ;;  %v4439_v43 = vshrl.u32 %v1222_v25, 15 }
 0x212   :  { %v2620_v21 = vxor.u32 %v4637_v60, %v2020_v63  ;;  %v1223_v12 = vmul.u32 2146121005, %v1023_v51  ;;  %v3424_v18 = vmax.f32 %v3224_v59, 0.0  ;;  %v4241_v39 = vshrl.u32 %v424_v44, 16 }
 0x213   :  { %v2819_v4 = vand.u32 16777215, %v2619_v26  ;;  %v2621_v34 = vxor.u32 %v4638_v47, %v2021_v30  ;;  %vm3018_vm0 = vcmp.ge.s32.totalorder %v2818_v52, 1677722  ;;  %v1822_v61 = vxor.u32 %v4439_v43, %v1222_v25 }
 0x214   :  { %v2820_v40 = vand.u32 16777215, %v2620_v21  ;;  %v3818_v54 = vsel %vm3018_vm0, %v5625_v56, 0.0  ;;  %v4440_v15 = vshrl.u32 %v1223_v12, 15  ;;  %v1024_v17 = vxor.u32 %v4241_v39, %v424_v44 }
 0x215   :  { %vm3019_vm1 = vcmp.ge.s32.totalorder %v2819_v4, 1677722  ;;  %v2821_v14 = vand.u32 16777215, %v2621_v34  ;;  %4018 = vst [vmem:[#allocation7 + $0x400] sm:$0xff] %v3818_v54  ;;  %v224_v20 = vadd.s32 %v4822_v11, %v5620_v0  ;;  %v3425_v19 = vmax.f32 %v3225_v48, 0.0 }
 0x216   :  { %v3819_v22 = vsel %vm3019_vm1, %v5629_v27, 0.0  ;;  %vm3020_vm2 = vcmp.ge.s32.totalorder %v2820_v40, 1677722  ;;  %v2022_v41 = vmul.u32 2221713035, %v1822_v61  ;;  %v1823_v35 = vxor.u32 %v4440_v15, %v1223_v12  ;;  %v3230_v15 = vld [vmem:[#allocation4 + $0x460] sm:$0xff] }
 0x217   :  { %4019 = vst [vmem:[#allocation7 + $0x408] sm:$0xff] %v3819_v22  ;;  %v3820_v45 = vsel %vm3020_vm2, %v5635_v24, 0.0  ;;  %vm3021_vm3 = vcmp.ge.s32.totalorder %v2821_v14, 1677722  ;;  %v1224_v16 = vmul.u32 2146121005, %v1024_v17  ;;  %v425_v57 = vadd.s32 %v4800_v3, %v224_v20 }
 0x218   :  { %4020 = vst [vmem:[#allocation7 + $0x410] sm:$0xff] %v3820_v45  ;;  %v3821_v56 = vsel %vm3021_vm3, %v5642_v62, 0.0  ;;  %v4639_v55 = vshrl.u32 %v2022_v41, 16  ;;  %v2023_v27 = vmul.u32 2221713035, %v1823_v35  ;;  %v47_v36 = vadd.s32 136, %v4796_v1 }
 0x219   :  { %4021 = vst [vmem:[#allocation7 + $0x418] sm:$0xff] %v3821_v56  ;;  %v3426_v37 = vmax.f32 %v3226_v50, 0.0  ;;  %v3228_v24 = vld [vmem:[#allocation4 + $0x450] sm:$0xff]  ;;  %v4441_v49 = vshrl.u32 %v1224_v16, 15  ;;  %v3624_v38 = vmul.f32 1.1111112, %v3424_v18 }
 0x21a   :  { %v2622_v23 = vxor.u32 %v4639_v55, %v2022_v41  ;;  %v3427_v53 = vmax.f32 %v3227_v33, 0.0  ;;  %v4640_v0 = vshrl.u32 %v2023_v27, 16  ;;  %v4242_v29 = vshrl.u32 %v425_v57, 16  ;;  %v3229_v18 = vld [vmem:[#allocation4 + $0x458] sm:$0xff] }
 0x21b   :  { %v5667_v63 = vmul.f32 1.1111112, %v3425_v19  ;;  %v5669_v62 = vmul.u32 1024, %v47_v36  ;;  %v1824_v31 = vxor.u32 %v4441_v49, %v1224_v16  ;;  %v5671_v30 = vmul.f32 1.1111112, %v3426_v37 }
 0x21c   :  { %v2822_v46 = vand.u32 16777215, %v2622_v23  ;;  %v3428_v42 = vmax.f32 %v3228_v24, 0.0  ;;  %v2623_v58 = vxor.u32 %v4640_v0, %v2023_v27  ;;  %v1025_v60 = vxor.u32 %v4242_v29, %v425_v57 }
 0x21d   :  { %v225_v25 = vadd.s32 %v4798_v2, %v5669_v62  ;;  %v226_v32 = vadd.s32 %v4804_v5, %v5669_v62  ;;  %v2024_v59 = vmul.u32 2221713035, %v1824_v31  ;;  %v5677_v26 = vmul.f32 1.1111112, %v3427_v53 }
 0x21e   :  { %vm3022_vm4 = vcmp.ge.s32.totalorder %v2822_v46, 1677722  ;;  %v227_v47 = vadd.s32 %v4807_v6, %v5669_v62  ;;  %v2823_v52 = vand.u32 16777215, %v2623_v58  ;;  %v1225_v21 = vmul.u32 2146121005, %v1025_v60 }
 0x21f   :  { %v3822_v51 = vsel %vm3022_vm4, %v5652_v13, 0.0  ;;  %v426_v43 = vadd.s32 %v4800_v3, %v225_v25  ;;  %v4641_v44 = vshrl.u32 %v2024_v59, 16  ;;  %v427_v4 = vadd.s32 %v4800_v3, %v226_v32  ;;  %v3231_v60 = vld [vmem:[#allocation4 + $0x468] sm:$0xff] }
 0x220   :  { %4022 = vst [vmem:[#allocation7 + $0x420] sm:$0xff] %v3822_v51  ;;  %v428_v34 = vadd.s32 %v4800_v3, %v227_v47  ;;  %v228_v12 = vadd.s32 %v4810_v7, %v5669_v62  ;;  %vm3023_vm5 = vcmp.ge.s32.totalorder %v2823_v52, 1677722  ;;  %v4442_v40 = vshrl.u32 %v1225_v21, 15 }
 0x221   :  { %v4243_v61 = vshrl.u32 %v426_v43, 16  ;;  %v5687_v39 = vmul.f32 1.1111112, %v3428_v42  ;;  %v3823_v13 = vsel %vm3023_vm5, %v5656_v28, 0.0  ;;  %v2624_v48 = vxor.u32 %v4641_v44, %v2024_v59 }
 0x222   :  { %v4244_v54 = vshrl.u32 %v427_v4, 16  ;;  %v4245_v14 = vshrl.u32 %v428_v34, 16  ;;  %4023 = vst [vmem:[#allocation7 + $0x428] sm:$0xff] %v3823_v13  ;;  %v1825_v22 = vxor.u32 %v4442_v40, %v1225_v21  ;;  %v429_v17 = vadd.s32 %v4800_v3, %v228_v12 }
 0x223   :  { %v1026_v41 = vxor.u32 %v4243_v61, %v426_v43  ;;  %v3429_v50 = vmax.f32 %v3229_v18, 0.0  ;;  %v2824_v45 = vand.u32 16777215, %v2624_v48  ;;  %v229_v33 = vadd.s32 %v4813_v8, %v5669_v62  ;;  %v3232_v61 = vld [vmem:[#allocation4 + $0x470] sm:$0xff] }
 0x224   :  { %v1027_v35 = vxor.u32 %v4244_v54, %v427_v4  ;;  %v1028_v20 = vxor.u32 %v4245_v14, %v428_v34  ;;  %v2025_v56 = vmul.u32 2221713035, %v1825_v22  ;;  %v4246_v16 = vshrl.u32 %v429_v17, 16 }
 0x225   :  { %v1226_v55 = vmul.u32 2146121005, %v1026_v41  ;;  %v3430_v28 = vmax.f32 %v3230_v15, 0.0  ;;  %vm3024_vm6 = vcmp.ge.s32.totalorder %v2824_v45, 1677722  ;;  %v430_v57 = vadd.s32 %v4800_v3, %v229_v33 }
 0x226   :  { %v1227_v19 = vmul.u32 2146121005, %v1027_v35  ;;  %v1228_v27 = vmul.u32 2146121005, %v1028_v20  ;;  %v3824_v36 = vsel %vm3024_vm6, %v3624_v38, 0.0  ;;  %v4642_v37 = vshrl.u32 %v2025_v56, 16 }
 0x227   :  { %v4443_v24 = vshrl.u32 %v1226_v55, 15  ;;  %v1029_v23 = vxor.u32 %v4246_v16, %v429_v17  ;;  %4024 = vst [vmem:[#allocation7 + $0x430] sm:$0xff] %v3824_v36  ;;  %v5694_v0 = vmul.f32 1.1111112, %v3429_v50  ;;  %v4247_v29 = vshrl.u32 %v430_v57, 16 }
 0x228   :  { %v4444_v49 = vshrl.u32 %v1227_v19, 15  ;;  %v4445_v53 = vshrl.u32 %v1228_v27, 15  ;;  %v2625_v46 = vxor.u32 %v4642_v37, %v2025_v56  ;;  %v230_v58 = vadd.s32 %v4816_v9, %v5669_v62 }
 0x229   :  { %v1826_v31 = vxor.u32 %v4443_v24, %v1226_v55  ;;  %v1229_v42 = vmul.u32 2146121005, %v1029_v23  ;;  %v1030_v59 = vxor.u32 %v4247_v29, %v430_v57  ;;  %v5698_v38 = vmul.f32 1.1111112, %v3430_v28  ;;  %v3233_v24 = vld [vmem:[#allocation4 + $0x478] sm:$0xff] }
 0x22a   :  { %v1827_v25 = vxor.u32 %v4444_v49, %v1227_v19  ;;  %v1828_v32 = vxor.u32 %v4445_v53, %v1228_v27  ;;  %v2825_v47 = vand.u32 16777215, %v2625_v46  ;;  %v431_v21 = vadd.s32 %v4800_v3, %v230_v58 }
 0x22b   :  { %v2026_v51 = vmul.u32 2221713035, %v1826_v31  ;;  %v4446_v52 = vshrl.u32 %v1229_v42, 15  ;;  %v3431_v4 = vmax.f32 %v3231_v60, 0.0  ;;  %v231_v34 = vadd.s32 %v4819_v10, %v5669_v62 }
 0x22c   :  { %v2027_v43 = vmul.u32 2221713035, %v1827_v25  ;;  %v2028_v44 = vmul.u32 2221713035, %v1828_v32  ;;  %vm3025_vm7 = vcmp.ge.s32.totalorder %v2825_v47, 1677722  ;;  %v232_v27 = vadd.s32 %v4822_v11, %v5669_v62 }
 0x22d   :  { %v4643_v12 = vshrl.u32 %v2026_v51, 16  ;;  %v1829_v18 = vxor.u32 %v4446_v52, %v1229_v42  ;;  %v1230_v40 = vmul.u32 2146121005, %v1030_v59  ;;  %v3825_v13 = vsel %vm3025_vm7, %v5667_v63, 0.0  ;;  %v3234_v25 = vld [vmem:[#allocation4 + $0x480] sm:$0xff]  ;;  %v3235_v47 = vld [vmem:[#allocation4 + $0x488] sm:$0xff] }
 0x22e   :  { %v4644_v48 = vshrl.u32 %v2027_v43, 16  ;;  %v4645_v54 = vshrl.u32 %v2028_v44, 16  ;;  %v4248_v14 = vshrl.u32 %v431_v21, 16  ;;  %4025 = vst [vmem:[#allocation7 + $0x438] sm:$0xff] %v3825_v13  ;;  %v432_v17 = vadd.s32 %v4800_v3, %v231_v34 }
 0x22f   :  { %v2626_v15 = vxor.u32 %v4643_v12, %v2026_v51  ;;  %v2029_v22 = vmul.u32 2221713035, %v1829_v18  ;;  %v4447_v41 = vshrl.u32 %v1230_v40, 15  ;;  %v3432_v20 = vmax.f32 %v3232_v61, 0.0 }
 0x230   :  { %v2627_v50 = vxor.u32 %v4644_v48, %v2027_v43  ;;  %v2628_v45 = vxor.u32 %v4645_v54, %v2028_v44  ;;  %v1031_v35 = vxor.u32 %v4248_v14, %v431_v21  ;;  %v4249_v16 = vshrl.u32 %v432_v17, 16 }
 0x231   :  { %v2826_v33 = vand.u32 16777215, %v2626_v15  ;;  %v4646_v56 = vshrl.u32 %v2029_v22, 16  ;;  %v1830_v55 = vxor.u32 %v4447_v41, %v1230_v40  ;;  %v3631_v42 = vmul.f32 1.1111112, %v3431_v4 }
 0x232   :  { %v2827_v28 = vand.u32 16777215, %v2627_v50  ;;  %v2828_v19 = vand.u32 16777215, %v2628_v45  ;;  %v1231_v63 = vmul.u32 2146121005, %v1031_v35  ;;  %v1032_v37 = vxor.u32 %v4249_v16, %v432_v17 }
 0x233   :  { %vm3026_vm8 = vcmp.ge.s32.totalorder %v2826_v33, 1677722  ;;  %v2629_v57 = vxor.u32 %v4646_v56, %v2029_v22  ;;  %v2030_v36 = vmul.u32 2221713035, %v1830_v55  ;;  %v433_v60 = vadd.s32 %v4800_v3, %v232_v27  ;;  %v3236_v45 = vld [vmem:[#allocation4 + $0x490] sm:$0xff] }
 0x234   :  { %v3826_v23 = vsel %vm3026_vm8, %v5671_v30, 0.0  ;;  %vm3027_vm9 = vcmp.ge.s32.totalorder %v2827_v28, 1677722  ;;  %vm3028_vm10 = vcmp.ge.s32.totalorder %v2828_v19, 1677722  ;;  %v4448_v49 = vshrl.u32 %v1231_v63, 15 }
 0x235   :  { %4026 = vst [vmem:[#allocation7 + $0x440] sm:$0xff] %v3826_v23  ;;  %v3827_v53 = vsel %vm3027_vm9, %v5677_v26, 0.0  ;;  %v3828_v29 = vsel %vm3028_vm10, %v5687_v39, 0.0  ;;  %v2829_v46 = vand.u32 16777215, %v2629_v57  ;;  %v4647_v31 = vshrl.u32 %v2030_v36, 16 }
 0x236   :  { %4027 = vst [vmem:[#allocation7 + $0x448] sm:$0xff] %v3827_v53  ;;  %4028 = vst [vmem:[#allocation7 + $0x450] sm:$0xff] %v3828_v29  ;;  %v1831_v62 = vxor.u32 %v4448_v49, %v1231_v63  ;;  %v1232_v58 = vmul.u32 2146121005, %v1032_v37  ;;  %v3433_v32 = vmax.f32 %v3233_v24, 0.0  ;;  %v48_v59 = vadd.s32 144, %v4796_v1 }
 0x237   :  { %vm3029_vm11 = vcmp.ge.s32.totalorder %v2829_v46, 1677722  ;;  %v2630_v30 = vxor.u32 %v4647_v31, %v2030_v36  ;;  %v4250_v52 = vshrl.u32 %v433_v60, 16  ;;  %v3632_v43 = vmul.f32 1.1111112, %v3432_v20  ;;  %v3237_v19 = vld [vmem:[#allocation4 + $0x498] sm:$0xff] }
 0x238   :  { %v3829_v26 = vsel %vm3029_vm11, %v5694_v0, 0.0  ;;  %v2031_v51 = vmul.u32 2221713035, %v1831_v62  ;;  %v4449_v39 = vshrl.u32 %v1232_v58, 15  ;;  %v5713_v44 = vmul.u32 1024, %v48_v59 }
 0x239   :  { %4029 = vst [vmem:[#allocation7 + $0x458] sm:$0xff] %v3829_v26  ;;  %v2830_v21 = vand.u32 16777215, %v2630_v30  ;;  %v3434_v4 = vmax.f32 %v3234_v25, 0.0  ;;  %v1033_v18 = vxor.u32 %v4250_v52, %v433_v60  ;;  %v3435_v40 = vmax.f32 %v3235_v47, 0.0 }
 0x23a   :  { %v4648_v34 = vshrl.u32 %v2031_v51, 16  ;;  %v1832_v12 = vxor.u32 %v4449_v39, %v1232_v58  ;;  %v5715_v61 = vmul.f32 1.1111112, %v3433_v32  ;;  %v233_v13 = vadd.s32 %v4798_v2, %v5713_v44 }
 0x23b   :  { %vm3030_vm12 = vcmp.ge.s32.totalorder %v2830_v21, 1677722  ;;  %v234_v0 = vadd.s32 %v4804_v5, %v5713_v44  ;;  %v1233_v15 = vmul.u32 2146121005, %v1033_v18  ;;  %v5723_v41 = vmul.f32 1.1111112, %v3434_v4 }
 0x23c   :  { %v3830_v48 = vsel %vm3030_vm12, %v5698_v38, 0.0  ;;  %v2631_v54 = vxor.u32 %v4648_v34, %v2031_v51  ;;  %v2032_v14 = vmul.u32 2221713035, %v1832_v12  ;;  %v434_v22 = vadd.s32 %v4800_v3, %v233_v13  ;;  %v3238_v51 = vld [vmem:[#allocation4 + $0x4a0] sm:$0xff]  ;;  %v3239_v34 = vld [vmem:[#allocation4 + $0x4a8] sm:$0xff] }
 0x23d   :  { %4030 = vst [vmem:[#allocation7 + $0x460] sm:$0xff] %v3830_v48  ;;  %v435_v17 = vadd.s32 %v4800_v3, %v234_v0  ;;  %v235_v50 = vadd.s32 %v4807_v6, %v5713_v44  ;;  %v4450_v33 = vshrl.u32 %v1233_v15, 15  ;;  %v5728_v56 = vmul.f32 1.1111112, %v3435_v40 }
 0x23e   :  { %v2831_v35 = vand.u32 16777215, %v2631_v54  ;;  %v4649_v20 = vshrl.u32 %v2032_v14, 16  ;;  %v4251_v38 = vshrl.u32 %v434_v22, 16  ;;  %v236_v28 = vadd.s32 %v4810_v7, %v5713_v44 }
 0x23f   :  { %v4252_v55 = vshrl.u32 %v435_v17, 16  ;;  %v436_v16 = vadd.s32 %v4800_v3, %v235_v50  ;;  %v1833_v27 = vxor.u32 %v4450_v33, %v1233_v15  ;;  %v3436_v57 = vmax.f32 %v3236_v45, 0.0 }
 0x240   :  { %vm3031_vm13 = vcmp.ge.s32.totalorder %v2831_v35, 1677722  ;;  %v2632_v63 = vxor.u32 %v4649_v20, %v2032_v14  ;;  %v1034_v37 = vxor.u32 %v4251_v38, %v434_v22  ;;  %v437_v29 = vadd.s32 %v4800_v3, %v236_v28 }
 0x241   :  { %v3831_v36 = vsel %vm3031_vm13, %v3631_v42, 0.0  ;;  %v1035_v24 = vxor.u32 %v4252_v55, %v435_v17  ;;  %v4253_v23 = vshrl.u32 %v436_v16, 16  ;;  %v2033_v53 = vmul.u32 2221713035, %v1833_v27 }
 0x242   :  { %4031 = vst [vmem:[#allocation7 + $0x468] sm:$0xff] %v3831_v36  ;;  %v2832_v49 = vand.u32 16777215, %v2632_v63  ;;  %v3437_v46 = vmax.f32 %v3237_v19, 0.0  ;;  %v1234_v31 = vmul.u32 2146121005, %v1034_v37  ;;  %v237_v60 = vadd.s32 %v4813_v8, %v5713_v44 }
 0x243   :  { %v1235_v62 = vmul.u32 2146121005, %v1035_v24  ;;  %v1036_v58 = vxor.u32 %v4253_v23, %v436_v16  ;;  %v4650_v25 = vshrl.u32 %v2033_v53, 16  ;;  %v5736_v30 = vmul.f32 1.1111112, %v3436_v57  ;;  %v3240_v24 = vld [vmem:[#allocation4 + $0x4b0] sm:$0xff] }
 0x244   :  { %vm3032_vm14 = vcmp.ge.s32.totalorder %v2832_v49, 1677722  ;;  %v4254_v42 = vshrl.u32 %v437_v29, 16  ;;  %v4451_v59 = vshrl.u32 %v1234_v31, 15  ;;  %v5738_v21 = vmul.f32 1.1111112, %v3437_v46 }
 0x245   :  { %v3832_v32 = vsel %vm3032_vm14, %v3632_v43, 0.0  ;;  %v4452_v47 = vshrl.u32 %v1235_v62, 15  ;;  %v1236_v26 = vmul.u32 2146121005, %v1036_v58  ;;  %v2633_v39 = vxor.u32 %v4650_v25, %v2033_v53 }
 0x246   :  { %4032 = vst [vmem:[#allocation7 + $0x470] sm:$0xff] %v3832_v32  ;;  %v1037_v52 = vxor.u32 %v4254_v42, %v437_v29  ;;  %v438_v4 = vadd.s32 %v4800_v3, %v237_v60  ;;  %v1834_v12 = vxor.u32 %v4451_v59, %v1234_v31  ;;  %v238_v13 = vadd.s32 %v4816_v9, %v5713_v44  ;;  %v3241_v32 = vld [vmem:[#allocation4 + $0x4b8] sm:$0xff] }
 0x247   :  { %v1835_v18 = vxor.u32 %v4452_v47, %v1235_v62  ;;  %v4453_v40 = vshrl.u32 %v1236_v26, 15  ;;  %v2833_v0 = vand.u32 16777215, %v2633_v39  ;;  %v3438_v54 = vmax.f32 %v3238_v51, 0.0 }
 0x248   :  { %v1237_v43 = vmul.u32 2146121005, %v1037_v52  ;;  %v4255_v48 = vshrl.u32 %v438_v4, 16  ;;  %v2034_v14 = vmul.u32 2221713035, %v1834_v12  ;;  %v3439_v17 = vmax.f32 %v3239_v34, 0.0 }
 0x249   :  { %v2035_v15 = vmul.u32 2221713035, %v1835_v18  ;;  %v1836_v22 = vxor.u32 %v4453_v40, %v1236_v26  ;;  %vm3033_vm15 = vcmp.ge.s32.totalorder %v2833_v0, 1677722  ;;  %v439_v35 = vadd.s32 %v4800_v3, %v238_v13  ;;  %v3242_v18 = vld [vmem:[#allocation4 + $0x4c0] sm:$0xff] }
 0x24a   :  { %v4454_v50 = vshrl.u32 %v1237_v43, 15  ;;  %v1038_v45 = vxor.u32 %v4255_v48, %v438_v4  ;;  %v3833_v20 = vsel %vm3033_vm15, %v5715_v61, 0.0  ;;  %v4651_v33 = vshrl.u32 %v2034_v14, 16 }
 0x24b   :  { %v4652_v38 = vshrl.u32 %v2035_v15, 16  ;;  %v2036_v55 = vmul.u32 2221713035, %v1836_v22  ;;  %4033 = vst [vmem:[#allocation7 + $0x478] sm:$0xff] %v3833_v20  ;;  %v5745_v19 = vmul.f32 1.1111112, %v3438_v54  ;;  %v239_v37 = vadd.s32 %v4819_v10, %v5713_v44 }
 0x24c   :  { %v1837_v16 = vxor.u32 %v4454_v50, %v1237_v43  ;;  %v1238_v28 = vmul.u32 2146121005, %v1038_v45  ;;  %v4256_v63 = vshrl.u32 %v439_v35, 16  ;;  %v2634_v27 = vxor.u32 %v4651_v33, %v2034_v14  ;;  %v3243_v54 = vld [vmem:[#allocation4 + $0x4c8] sm:$0xff] }
 0x24d   :  { %v2635_v57 = vxor.u32 %v4652_v38, %v2035_v15  ;;  %v4653_v36 = vshrl.u32 %v2036_v55, 16  ;;  %v5749_v61 = vmul.f32 1.1111112, %v3439_v17  ;;  %v440_v62 = vadd.s32 %v4800_v3, %v239_v37 }
 0x24e   :  { %v2037_v23 = vmul.u32 2221713035, %v1837_v16  ;;  %v4455_v49 = vshrl.u32 %v1238_v28, 15  ;;  %v1039_v53 = vxor.u32 %v4256_v63, %v439_v35  ;;  %v2834_v29 = vand.u32 16777215, %v2634_v27  ;;  %v3244_v35 = vld [vmem:[#allocation4 + $0x4d0] sm:$0xff] }
 0x24f   :  { %v2835_v46 = vand.u32 16777215, %v2635_v57  ;;  %v2636_v31 = vxor.u32 %v4653_v36, %v2036_v55  ;;  %v3440_v42 = vmax.f32 %v3240_v24, 0.0  ;;  %v240_v47 = vadd.s32 %v4822_v11, %v5713_v44 }
 0x250   :  { %v4654_v58 = vshrl.u32 %v2037_v23, 16  ;;  %v1838_v60 = vxor.u32 %v4455_v49, %v1238_v28  ;;  %v1239_v25 = vmul.u32 2146121005, %v1039_v53  ;;  %vm3034_vm0 = vcmp.ge.s32.totalorder %v2834_v29, 1677722 }
 0x251   :  { %vm3035_vm1 = vcmp.ge.s32.totalorder %v2835_v46, 1677722  ;;  %v2836_v59 = vand.u32 16777215, %v2636_v31  ;;  %v3834_v26 = vsel %vm3034_vm0, %v5723_v41, 0.0  ;;  %v4257_v34 = vshrl.u32 %v440_v62, 16 }
 0x252   :  { %v3835_v51 = vsel %vm3035_vm1, %v5728_v56, 0.0  ;;  %v2637_v39 = vxor.u32 %v4654_v58, %v2037_v23  ;;  %v2038_v52 = vmul.u32 2221713035, %v1838_v60  ;;  %4034 = vst [vmem:[#allocation7 + $0x480] sm:$0xff] %v3834_v26  ;;  %v4456_v4 = vshrl.u32 %v1239_v25, 15 }
 0x253   :  { %4035 = vst [vmem:[#allocation7 + $0x488] sm:$0xff] %v3835_v51  ;;  %vm3036_vm2 = vcmp.ge.s32.totalorder %v2836_v59, 1677722  ;;  %v441_v12 = vadd.s32 %v4800_v3, %v240_v47  ;;  %v3441_v43 = vmax.f32 %v3241_v32, 0.0  ;;  %v1040_v41 = vxor.u32 %v4257_v34, %v440_v62  ;;  %v3245_v47 = vld [vmem:[#allocation4 + $0x4d8] sm:$0xff] }
 0x254   :  { %v3836_v40 = vsel %vm3036_vm2, %v5736_v30, 0.0  ;;  %v2837_v13 = vand.u32 16777215, %v2637_v39  ;;  %v4655_v0 = vshrl.u32 %v2038_v52, 16  ;;  %v1839_v44 = vxor.u32 %v4456_v4, %v1239_v25 }
 0x255   :  { %4036 = vst [vmem:[#allocation7 + $0x490] sm:$0xff] %v3836_v40  ;;  %v4258_v48 = vshrl.u32 %v441_v12, 16  ;;  %v49_v56 = vadd.s32 152, %v4796_v1  ;;  %v5759_v15 = vmul.f32 1.1111112, %v3440_v42  ;;  %v3442_v22 = vmax.f32 %v3242_v18, 0.0 }
 0x256   :  { %vm3037_vm3 = vcmp.ge.s32.totalorder %v2837_v13, 1677722  ;;  %v2638_v14 = vxor.u32 %v4655_v0, %v2038_v52  ;;  %v2039_v50 = vmul.u32 2221713035, %v1839_v44  ;;  %v1240_v45 = vmul.u32 2146121005, %v1040_v41 }
 0x257   :  { %v3837_v17 = vsel %vm3037_vm3, %v5738_v21, 0.0  ;;  %v1041_v30 = vxor.u32 %v4258_v48, %v441_v12  ;;  %v5762_v33 = vmul.f32 1.1111112, %v3441_v43  ;;  %v5764_v38 = vmul.u32 1024, %v49_v56  ;;  %v3246_v18 = vld [vmem:[#allocation4 + $0x4e0] sm:$0xff] }
 0x258   :  { %4037 = vst [vmem:[#allocation7 + $0x498] sm:$0xff] %v3837_v17  ;;  %v2838_v20 = vand.u32 16777215, %v2638_v14  ;;  %v3443_v55 = vmax.f32 %v3243_v54, 0.0  ;;  %v4656_v16 = vshrl.u32 %v2039_v50, 16  ;;  %v4457_v28 = vshrl.u32 %v1240_v45, 15 }
 0x259   :  { %v1241_v63 = vmul.u32 2146121005, %v1041_v30  ;;  %v5766_v27 = vmul.f32 1.1111112, %v3442_v22  ;;  %v241_v21 = vadd.s32 %v4798_v2, %v5764_v38  ;;  %v242_v57 = vadd.s32 %v4804_v5, %v5764_v38 }
 0x25a   :  { %vm3038_vm4 = vcmp.ge.s32.totalorder %v2838_v20, 1677722  ;;  %v3444_v36 = vmax.f32 %v3244_v35, 0.0  ;;  %v2639_v24 = vxor.u32 %v4656_v16, %v2039_v50  ;;  %v1840_v23 = vxor.u32 %v4457_v28, %v1240_v45 }
 0x25b   :  { %v3838_v37 = vsel %vm3038_vm4, %v5745_v19, 0.0  ;;  %v4458_v49 = vshrl.u32 %v1241_v63, 15  ;;  %v442_v53 = vadd.s32 %v4800_v3, %v241_v21  ;;  %v443_v29 = vadd.s32 %v4800_v3, %v242_v57 }
 0x25c   :  { %4038 = vst [vmem:[#allocation7 + $0x4a0] sm:$0xff] %v3838_v37  ;;  %v5775_v46 = vmul.f32 1.1111112, %v3443_v55  ;;  %v243_v31 = vadd.s32 %v4807_v6, %v5764_v38  ;;  %v2839_v62 = vand.u32 16777215, %v2639_v24  ;;  %v244_v25 = vadd.s32 %v4810_v7, %v5764_v38 }
 0x25d   :  { %v2040_v58 = vmul.u32 2221713035, %v1840_v23  ;;  %v1841_v60 = vxor.u32 %v4458_v49, %v1241_v63  ;;  %v4259_v19 = vshrl.u32 %v442_v53, 16  ;;  %v4260_v42 = vshrl.u32 %v443_v29, 16 }
 0x25e   :  { %v444_v32 = vadd.s32 %v4800_v3, %v243_v31  ;;  %v5782_v59 = vmul.f32 1.1111112, %v3444_v36  ;;  %vm3039_vm5 = vcmp.ge.s32.totalorder %v2839_v62, 1677722  ;;  %v445_v39 = vadd.s32 %v4800_v3, %v244_v25 }
 0x25f   :  { %v4657_v26 = vshrl.u32 %v2040_v58, 16  ;;  %v2041_v51 = vmul.u32 2221713035, %v1841_v60  ;;  %v3839_v52 = vsel %vm3039_vm5, %v5749_v61, 0.0  ;;  %v1042_v4 = vxor.u32 %v4259_v19, %v442_v53 }
 0x260   :  { %v1043_v34 = vxor.u32 %v4260_v42, %v443_v29  ;;  %v4261_v12 = vshrl.u32 %v444_v32, 16  ;;  %4039 = vst [vmem:[#allocation7 + $0x4a8] sm:$0xff] %v3839_v52  ;;  %v4262_v0 = vshrl.u32 %v445_v39, 16  ;;  %v3445_v43 = vmax.f32 %v3245_v47, 0.0 }
 0x261   :  { %v2640_v40 = vxor.u32 %v4657_v26, %v2040_v58  ;;  %v4658_v13 = vshrl.u32 %v2041_v51, 16  ;;  %v1242_v44 = vmul.u32 2146121005, %v1042_v4  ;;  %v245_v56 = vadd.s32 %v4813_v8, %v5764_v38  ;;  %v3247_v58 = vld [vmem:[#allocation4 + $0x4e8] sm:$0xff]  ;;  %v3248_v26 = vld [vmem:[#allocation4 + $0x4f0] sm:$0xff] }
 0x262   :  { %v1243_v41 = vmul.u32 2146121005, %v1043_v34  ;;  %v1044_v48 = vxor.u32 %v4261_v12, %v444_v32  ;;  %v1045_v22 = vxor.u32 %v4262_v0, %v445_v39  ;;  %v3446_v17 = vmax.f32 %v3246_v18, 0.0 }
 0x263   :  { %v2840_v54 = vand.u32 16777215, %v2640_v40  ;;  %v2641_v14 = vxor.u32 %v4658_v13, %v2041_v51  ;;  %v4459_v61 = vshrl.u32 %v1242_v44, 15  ;;  %v446_v30 = vadd.s32 %v4800_v3, %v245_v56 }
 0x264   :  { %v4460_v50 = vshrl.u32 %v1243_v41, 15  ;;  %v1244_v45 = vmul.u32 2146121005, %v1044_v48  ;;  %v1245_v20 = vmul.u32 2146121005, %v1045_v22  ;;  %v246_v55 = vadd.s32 %v4816_v9, %v5764_v38 }
 0x265   :  { %vm3040_vm6 = vcmp.ge.s32.totalorder %v2840_v54, 1677722  ;;  %v2841_v35 = vand.u32 16777215, %v2641_v14  ;;  %v1842_v28 = vxor.u32 %v4459_v61, %v1242_v44  ;;  %v3645_v36 = vmul.f32 1.1111112, %v3445_v43 }
 0x266   :  { %v3840_v16 = vsel %vm3040_vm6, %v5759_v15, 0.0  ;;  %v1843_v63 = vxor.u32 %v4460_v50, %v1243_v41  ;;  %v4461_v21 = vshrl.u32 %v1244_v45, 15  ;;  %v4462_v57 = vshrl.u32 %v1245_v20, 15  ;;  %v3249_v14 = vld [vmem:[#allocation4 + $0x4f8] sm:$0xff] }
 0x267   :  { %4040 = vst [vmem:[#allocation7 + $0x4b0] sm:$0xff] %v3840_v16  ;;  %vm3041_vm7 = vcmp.ge.s32.totalorder %v2841_v35, 1677722  ;;  %v4263_v37 = vshrl.u32 %v446_v30, 16  ;;  %v2042_v23 = vmul.u32 2221713035, %v1842_v28  ;;  %v447_v15 = vadd.s32 %v4800_v3, %v246_v55 }
 0x268   :  { %v3841_v24 = vsel %vm3041_vm7, %v5762_v33, 0.0  ;;  %v2043_v49 = vmul.u32 2221713035, %v1843_v63  ;;  %v1844_v53 = vxor.u32 %v4461_v21, %v1244_v45  ;;  %v1845_v29 = vxor.u32 %v4462_v57, %v1245_v20  ;;  %v3250_v16 = vld [vmem:[#allocation4 + $0x500] sm:$0xff] }
 0x269   :  { %4041 = vst [vmem:[#allocation7 + $0x4b8] sm:$0xff] %v3841_v24  ;;  %v1046_v31 = vxor.u32 %v4263_v37, %v446_v30  ;;  %v5793_v62 = vmul.f32 1.1111112, %v3446_v17  ;;  %v4659_v60 = vshrl.u32 %v2042_v23, 16  ;;  %v247_v42 = vadd.s32 %v4819_v10, %v5764_v38  ;;  %v3251_v37 = vld [vmem:[#allocation4 + $0x508] sm:$0xff] }
 0x26a   :  { %v4660_v25 = vshrl.u32 %v2043_v49, 16  ;;  %v2044_v19 = vmul.u32 2221713035, %v1844_v53  ;;  %v2045_v32 = vmul.u32 2221713035, %v1845_v29  ;;  %v4264_v33 = vshrl.u32 %v447_v15, 16 }
 0x26b   :  { %v1246_v47 = vmul.u32 2146121005, %v1046_v31  ;;  %v2642_v51 = vxor.u32 %v4659_v60, %v2042_v23  ;;  %v3447_v4 = vmax.f32 %v3247_v58, 0.0  ;;  %v448_v40 = vadd.s32 %v4800_v3, %v247_v42 }
 0x26c   :  { %v2643_v39 = vxor.u32 %v4660_v25, %v2043_v49  ;;  %v4661_v52 = vshrl.u32 %v2044_v19, 16  ;;  %v4662_v34 = vshrl.u32 %v2045_v32, 16  ;;  %v1047_v18 = vxor.u32 %v4264_v33, %v447_v15  ;;  %v3252_v33 = vld [vmem:[#allocation4 + $0x510] sm:$0xff] }
 0x26d   :  { %v4463_v12 = vshrl.u32 %v1246_v47, 15  ;;  %v2842_v13 = vand.u32 16777215, %v2642_v51  ;;  %v3448_v44 = vmax.f32 %v3248_v26, 0.0  ;;  %v4265_v54 = vshrl.u32 %v448_v40, 16 }
 0x26e   :  { %v2843_v0 = vand.u32 16777215, %v2643_v39  ;;  %v2644_v43 = vxor.u32 %v4661_v52, %v2044_v19  ;;  %v2645_v41 = vxor.u32 %v4662_v34, %v2045_v32  ;;  %v1247_v56 = vmul.u32 2146121005, %v1047_v18 }
 0x26f   :  { %v1846_v48 = vxor.u32 %v4463_v12, %v1246_v47  ;;  %vm3042_vm8 = vcmp.ge.s32.totalorder %v2842_v13, 1677722  ;;  %v248_v17 = vadd.s32 %v4822_v11, %v5764_v38  ;;  %v1048_v20 = vxor.u32 %v4265_v54, %v448_v40 }
 0x270   :  { %vm3043_vm9 = vcmp.ge.s32.totalorder %v2843_v0, 1677722  ;;  %v2844_v22 = vand.u32 16777215, %v2644_v43  ;;  %v3842_v61 = vsel %vm3042_vm8, %v5766_v27, 0.0  ;;  %v4464_v35 = vshrl.u32 %v1247_v56, 15 }
 0x271   :  { %v3843_v50 = vsel %vm3043_vm9, %v5775_v46, 0.0  ;;  %v2845_v45 = vand.u32 16777215, %v2645_v41  ;;  %v2046_v30 = vmul.u32 2221713035, %v1846_v48  ;;  %4042 = vst [vmem:[#allocation7 + $0x4c0] sm:$0xff] %v3842_v61  ;;  %v449_v55 = vadd.s32 %v4800_v3, %v248_v17 }
 0x272   :  { %4043 = vst [vmem:[#allocation7 + $0x4c8] sm:$0xff] %v3843_v50  ;;  %vm3044_vm10 = vcmp.ge.s32.totalorder %v2844_v22, 1677722  ;;  %v3449_v21 = vmax.f32 %v3249_v14, 0.0  ;;  %v1847_v27 = vxor.u32 %v4464_v35, %v1247_v56  ;;  %v1248_v57 = vmul.u32 2146121005, %v1048_v20 }
 0x273   :  { %v3844_v28 = vsel %vm3044_vm10, %v5782_v59, 0.0  ;;  %vm3045_vm11 = vcmp.ge.s32.totalorder %v2845_v45, 1677722  ;;  %v4663_v63 = vshrl.u32 %v2046_v30, 16  ;;  %v4266_v46 = vshrl.u32 %v449_v55, 16  ;;  %v3253_v50 = vld [vmem:[#allocation4 + $0x518] sm:$0xff] }
 0x274   :  { %4044 = vst [vmem:[#allocation7 + $0x4d0] sm:$0xff] %v3844_v28  ;;  %v3845_v38 = vsel %vm3045_vm11, %v3645_v36, 0.0  ;;  %v3647_v23 = vmul.f32 1.1111112, %v3447_v4  ;;  %v50_v49 = vadd.s32 160, %v4796_v1  ;;  %v3450_v53 = vmax.f32 %v3250_v16, 0.0 }
 0x275   :  { %4045 = vst [vmem:[#allocation7 + $0x4d8] sm:$0xff] %v3845_v38  ;;  %v2646_v24 = vxor.u32 %v4663_v63, %v2046_v30  ;;  %v2047_v29 = vmul.u32 2221713035, %v1847_v27  ;;  %v4465_v31 = vshrl.u32 %v1248_v57, 15  ;;  %v3648_v15 = vmul.f32 1.1111112, %v3448_v44 }
 0x276   :  { %v1049_v58 = vxor.u32 %v4266_v46, %v449_v55  ;;  %v5806_v60 = vmul.f32 1.1111112, %v3449_v21  ;;  %v5808_v25 = vmul.u32 1024, %v50_v49  ;;  %v3451_v36 = vmax.f32 %v3251_v37, 0.0 }
 0x277   :  { %v2846_v59 = vand.u32 16777215, %v2646_v24  ;;  %v4664_v19 = vshrl.u32 %v2047_v29, 16  ;;  %v1848_v42 = vxor.u32 %v4465_v31, %v1248_v57  ;;  %v5810_v47 = vmul.f32 1.1111112, %v3450_v53 }
 0x278   :  { %v1249_v32 = vmul.u32 2146121005, %v1049_v58  ;;  %v249_v26 = vadd.s32 %v4798_v2, %v5808_v25  ;;  %v250_v51 = vadd.s32 %v4804_v5, %v5808_v25  ;;  %v251_v39 = vadd.s32 %v4807_v6, %v5808_v25 }
 0x279   :  { %vm3046_vm12 = vcmp.ge.s32.totalorder %v2846_v59, 1677722  ;;  %v2647_v4 = vxor.u32 %v4664_v19, %v2047_v29  ;;  %v2048_v34 = vmul.u32 2221713035, %v1848_v42  ;;  %v3452_v0 = vmax.f32 %v3252_v33, 0.0 }
 0x27a   :  { %v3846_v52 = vsel %vm3046_vm12, %v5793_v62, 0.0  ;;  %v4466_v12 = vshrl.u32 %v1249_v32, 15  ;;  %v450_v18 = vadd.s32 %v4800_v3, %v249_v26  ;;  %v451_v40 = vadd.s32 %v4800_v3, %v250_v51 }
 0x27b   :  { %4046 = vst [vmem:[#allocation7 + $0x4e0] sm:$0xff] %v3846_v52  ;;  %v452_v13 = vadd.s32 %v4800_v3, %v251_v39  ;;  %v2847_v43 = vand.u32 16777215, %v2647_v4  ;;  %v4665_v44 = vshrl.u32 %v2048_v34, 16  ;;  %v252_v48 = vadd.s32 %v4810_v7, %v5808_v25 }
 0x27c   :  { %v1849_v41 = vxor.u32 %v4466_v12, %v1249_v32  ;;  %v4267_v56 = vshrl.u32 %v450_v18, 16  ;;  %v4268_v54 = vshrl.u32 %v451_v40, 16  ;;  %v5824_v62 = vmul.f32 1.1111112, %v3451_v36 }
 0x27d   :  { %v4269_v14 = vshrl.u32 %v452_v13, 16  ;;  %vm3047_vm13 = vcmp.ge.s32.totalorder %v2847_v43, 1677722  ;;  %v2648_v22 = vxor.u32 %v4665_v44, %v2048_v34  ;;  %v453_v61 = vadd.s32 %v4800_v3, %v252_v48  ;;  %v3255_v48 = vld [vmem:[#allocation4 + $0x528] sm:$0xff] }
 0x27e   :  { %v2049_v17 = vmul.u32 2221713035, %v1849_v41  ;;  %v3847_v45 = vsel %vm3047_vm13, %v3647_v23, 0.0  ;;  %v1050_v30 = vxor.u32 %v4267_v56, %v450_v18  ;;  %v1051_v35 = vxor.u32 %v4268_v54, %v451_v40  ;;  %v3254_v23 = vld [vmem:[#allocation4 + $0x520] sm:$0xff] }
 0x27f   :  { %v1052_v20 = vxor.u32 %v4269_v14, %v452_v13  ;;  %4047 = vst [vmem:[#allocation7 + $0x4e8] sm:$0xff] %v3847_v45  ;;  %v2848_v55 = vand.u32 16777215, %v2648_v22  ;;  %v5827_v28 = vmul.f32 1.1111112, %v3452_v0  ;;  %v4270_v63 = vshrl.u32 %v453_v61, 16 }
 0x280   :  { %v4666_v16 = vshrl.u32 %v2049_v17, 16  ;;  %v1250_v21 = vmul.u32 2146121005, %v1050_v30  ;;  %v1251_v38 = vmul.u32 2146121005, %v1051_v35  ;;  %v3453_v27 = vmax.f32 %v3253_v50, 0.0 }
 0x281   :  { %v253_v57 = vadd.s32 %v4813_v8, %v5808_v25  ;;  %vm3048_vm14 = vcmp.ge.s32.totalorder %v2848_v55, 1677722  ;;  %v1252_v37 = vmul.u32 2146121005, %v1052_v20  ;;  %v1053_v24 = vxor.u32 %v4270_v63, %v453_v61  ;;  %v3256_v30 = vld [vmem:[#allocation4 + $0x530] sm:$0xff] }
 0x282   :  { %v2649_v46 = vxor.u32 %v4666_v16, %v2049_v17  ;;  %v3848_v49 = vsel %vm3048_vm14, %v3648_v15, 0.0  ;;  %v4467_v53 = vshrl.u32 %v1250_v21, 15  ;;  %v4468_v29 = vshrl.u32 %v1251_v38, 15 }
 0x283   :  { %v454_v31 = vadd.s32 %v4800_v3, %v253_v57  ;;  %4048 = vst [vmem:[#allocation7 + $0x4f0] sm:$0xff] %v3848_v49  ;;  %v4469_v59 = vshrl.u32 %v1252_v37, 15  ;;  %v1253_v36 = vmul.u32 2146121005, %v1053_v24  ;;  %v254_v19 = vadd.s32 %v4816_v9, %v5808_v25 }
 0x284   :  { %v2849_v58 = vand.u32 16777215, %v2649_v46  ;;  %v1850_v42 = vxor.u32 %v4467_v53, %v1250_v21  ;;  %v1851_v32 = vxor.u32 %v4468_v29, %v1251_v38  ;;  %v3454_v26 = vmax.f32 %v3254_v23, 0.0  ;;  %v3257_v23 = vld [vmem:[#allocation4 + $0x538] sm:$0xff] }
 0x285   :  { %v4271_v33 = vshrl.u32 %v454_v31, 16  ;;  %v1852_v51 = vxor.u32 %v4469_v59, %v1252_v37  ;;  %v4470_v39 = vshrl.u32 %v1253_v36, 15  ;;  %v455_v15 = vadd.s32 %v4800_v3, %v254_v19 }
 0x286   :  { %vm3049_vm15 = vcmp.ge.s32.totalorder %v2849_v58, 1677722  ;;  %v2050_v4 = vmul.u32 2221713035, %v1850_v42  ;;  %v2051_v34 = vmul.u32 2221713035, %v1851_v32  ;;  %v255_v56 = vadd.s32 %v4819_v10, %v5808_v25 }
 0x287   :  { %v3849_v52 = vsel %vm3049_vm15, %v5806_v60, 0.0  ;;  %v1054_v12 = vxor.u32 %v4271_v33, %v454_v31  ;;  %v2052_v18 = vmul.u32 2221713035, %v1852_v51  ;;  %v1853_v40 = vxor.u32 %v4470_v39, %v1253_v36 }
 0x288   :  { %4049 = vst [vmem:[#allocation7 + $0x4f8] sm:$0xff] %v3849_v52  ;;  %v3653_v13 = vmul.f32 1.1111112, %v3453_v27  ;;  %v4272_v0 = vshrl.u32 %v455_v15, 16  ;;  %v4667_v43 = vshrl.u32 %v2050_v4, 16  ;;  %v4668_v44 = vshrl.u32 %v2051_v34, 16 }
 0x289   :  { %v1254_v41 = vmul.u32 2146121005, %v1054_v12  ;;  %v4669_v54 = vshrl.u32 %v2052_v18, 16  ;;  %v2053_v14 = vmul.u32 2221713035, %v1853_v40  ;;  %v456_v45 = vadd.s32 %v4800_v3, %v255_v56  ;;  %v3259_v12 = vld [vmem:[#allocation4 + $0x548] sm:$0xff] }
 0x28a   :  { %v5838_v22 = vmul.f32 1.1111112, %v3454_v26  ;;  %v1055_v60 = vxor.u32 %v4272_v0, %v455_v15  ;;  %v2650_v17 = vxor.u32 %v4667_v43, %v2050_v4  ;;  %v2651_v61 = vxor.u32 %v4668_v44, %v2051_v34 }
 0x28b   :  { %v4471_v50 = vshrl.u32 %v1254_v41, 15  ;;  %v2652_v35 = vxor.u32 %v4669_v54, %v2052_v18  ;;  %v4670_v20 = vshrl.u32 %v2053_v14, 16  ;;  %v3455_v16 = vmax.f32 %v3255_v48, 0.0 }
 0x28c   :  { %v1255_v55 = vmul.u32 2146121005, %v1055_v60  ;;  %v2850_v63 = vand.u32 16777215, %v2650_v17  ;;  %v2851_v21 = vand.u32 16777215, %v2651_v61  ;;  %v256_v32 = vadd.s32 %v4822_v11, %v5808_v25 }
 0x28d   :  { %v1854_v38 = vxor.u32 %v4471_v50, %v1254_v41  ;;  %v4273_v27 = vshrl.u32 %v456_v45, 16  ;;  %v2852_v57 = vand.u32 16777215, %v2652_v35  ;;  %v2653_v46 = vxor.u32 %v4670_v20, %v2053_v14  ;;  %v3260_v50 = vld [vmem:[#allocation4 + $0x550] sm:$0xff] }
 0x28e   :  { %v4472_v37 = vshrl.u32 %v1255_v55, 15  ;;  %v3456_v24 = vmax.f32 %v3256_v30, 0.0  ;;  %vm3050_vm0 = vcmp.ge.s32.totalorder %v2850_v63, 1677722  ;;  %vm3051_vm1 = vcmp.ge.s32.totalorder %v2851_v21, 1677722 }
 0x28f   :  { %v2054_v49 = vmul.u32 2221713035, %v1854_v38  ;;  %v1056_v53 = vxor.u32 %v4273_v27, %v456_v45  ;;  %v3850_v29 = vsel %vm3050_vm0, %v5810_v47, 0.0  ;;  %v3851_v31 = vsel %vm3051_vm1, %v5824_v62, 0.0  ;;  %v3258_v47 = vld [vmem:[#allocation4 + $0x540] sm:$0xff] }
 0x290   :  { %vm3052_vm2 = vcmp.ge.s32.totalorder %v2852_v57, 1677722  ;;  %v2853_v58 = vand.u32 16777215, %v2653_v46  ;;  %4050 = vst [vmem:[#allocation7 + $0x500] sm:$0xff] %v3850_v29  ;;  %4051 = vst [vmem:[#allocation7 + $0x508] sm:$0xff] %v3851_v31  ;;  %v1855_v19 = vxor.u32 %v4472_v37, %v1255_v55 }
 0x291   :  { %v3852_v59 = vsel %vm3052_vm2, %v5827_v28, 0.0  ;;  %v4671_v36 = vshrl.u32 %v2054_v49, 16  ;;  %v1256_v42 = vmul.u32 2146121005, %v1056_v53  ;;  %v3457_v33 = vmax.f32 %v3257_v23, 0.0 }
 0x292   :  { %4052 = vst [vmem:[#allocation7 + $0x510] sm:$0xff] %v3852_v59  ;;  %vm3053_vm3 = vcmp.ge.s32.totalorder %v2853_v58, 1677722  ;;  %v51_v26 = vadd.s32 168, %v4796_v1  ;;  %v2055_v39 = vmul.u32 2221713035, %v1855_v19  ;;  %v457_v28 = vadd.s32 %v4800_v3, %v256_v32 }
 0x293   :  { %v3853_v51 = vsel %vm3053_vm3, %v3653_v13, 0.0  ;;  %v2654_v62 = vxor.u32 %v4671_v36, %v2054_v49  ;;  %v4473_v15 = vshrl.u32 %v1256_v42, 15  ;;  %v3655_v52 = vmul.f32 1.1111112, %v3455_v16  ;;  %v3261_v36 = vld [vmem:[#allocation4 + $0x558] sm:$0xff] }
 0x294   :  { %4053 = vst [vmem:[#allocation7 + $0x518] sm:$0xff] %v3853_v51  ;;  %v3656_v4 = vmul.f32 1.1111112, %v3456_v24  ;;  %v5848_v34 = vmul.u32 1024, %v51_v26  ;;  %v4672_v40 = vshrl.u32 %v2055_v39, 16  ;;  %v3458_v25 = vmax.f32 %v3258_v47, 0.0 }
 0x295   :  { %v2854_v18 = vand.u32 16777215, %v2654_v62  ;;  %v1856_v0 = vxor.u32 %v4473_v15, %v1256_v42  ;;  %v4274_v43 = vshrl.u32 %v457_v28, 16  ;;  %v5850_v44 = vmul.f32 1.1111112, %v3457_v33 }
 0x296   :  { %v257_v13 = vadd.s32 %v4798_v2, %v5848_v34  ;;  %v258_v41 = vadd.s32 %v4804_v5, %v5848_v34  ;;  %v2655_v48 = vxor.u32 %v4672_v40, %v2055_v39  ;;  %v3459_v54 = vmax.f32 %v3259_v12, 0.0  ;;  %v3262_v39 = vld [vmem:[#allocation4 + $0x560] sm:$0xff] }
 0x297   :  { %vm3054_vm4 = vcmp.ge.s32.totalorder %v2854_v18, 1677722  ;;  %v2056_v56 = vmul.u32 2221713035, %v1856_v0  ;;  %v1057_v60 = vxor.u32 %v4274_v43, %v457_v28  ;;  %v5859_v35 = vmul.f32 1.1111112, %v3458_v25 }
 0x298   :  { %v3854_v14 = vsel %vm3054_vm4, %v5838_v22, 0.0  ;;  %v458_v17 = vadd.s32 %v4800_v3, %v257_v13  ;;  %v459_v61 = vadd.s32 %v4800_v3, %v258_v41  ;;  %v2855_v45 = vand.u32 16777215, %v2655_v48 }
 0x299   :  { %4054 = vst [vmem:[#allocation7 + $0x520] sm:$0xff] %v3854_v14  ;;  %v4673_v30 = vshrl.u32 %v2056_v56, 16  ;;  %v259_v20 = vadd.s32 %v4807_v6, %v5848_v34  ;;  %v1257_v55 = vmul.u32 2146121005, %v1057_v60  ;;  %v260_v22 = vadd.s32 %v4810_v7, %v5848_v34 }
 0x29a   :  { %v4275_v16 = vshrl.u32 %v458_v17, 16  ;;  %v4276_v63 = vshrl.u32 %v459_v61, 16  ;;  %vm3055_vm5 = vcmp.ge.s32.totalorder %v2855_v45, 1677722  ;;  %v3460_v27 = vmax.f32 %v3260_v50, 0.0 }
 0x29b   :  { %v2656_v21 = vxor.u32 %v4673_v30, %v2056_v56  ;;  %v460_v38 = vadd.s32 %v4800_v3, %v259_v20  ;;  %v3855_v57 = vsel %vm3055_vm5, %v3655_v52, 0.0  ;;  %v4474_v46 = vshrl.u32 %v1257_v55, 15 }
 0x29c   :  { %v1058_v37 = vxor.u32 %v4275_v16, %v458_v17  ;;  %v1059_v24 = vxor.u32 %v4276_v63, %v459_v61  ;;  %4055 = vst [vmem:[#allocation7 + $0x528] sm:$0xff] %v3855_v57  ;;  %v5866_v49 = vmul.f32 1.1111112, %v3459_v54  ;;  %v461_v29 = vadd.s32 %v4800_v3, %v260_v22 }
 0x29d   :  { %v2856_v23 = vand.u32 16777215, %v2656_v21  ;;  %v4277_v53 = vshrl.u32 %v460_v38, 16  ;;  %v1857_v31 = vxor.u32 %v4474_v46, %v1257_v55  ;;  %v261_v19 = vadd.s32 %v4813_v8, %v5848_v34  ;;  %v3263_v46 = vld [vmem:[#allocation4 + $0x568] sm:$0xff] }
 0x29e   :  { %v1258_v58 = vmul.u32 2146121005, %v1058_v37  ;;  %v1259_v59 = vmul.u32 2146121005, %v1059_v24  ;;  %v5871_v32 = vmul.f32 1.1111112, %v3460_v27  ;;  %v262_v25 = vadd.s32 %v4816_v9, %v5848_v34 }
 0x29f   :  { %vm3056_vm6 = vcmp.ge.s32.totalorder %v2856_v23, 1677722  ;;  %v1060_v42 = vxor.u32 %v4277_v53, %v460_v38  ;;  %v4278_v33 = vshrl.u32 %v461_v29, 16  ;;  %v2057_v47 = vmul.u32 2221713035, %v1857_v31 }
 0x2a0   :  { %v3856_v26 = vsel %vm3056_vm6, %v3656_v4, 0.0  ;;  %v4475_v51 = vshrl.u32 %v1258_v58, 15  ;;  %v4476_v62 = vshrl.u32 %v1259_v59, 15  ;;  %v3461_v28 = vmax.f32 %v3261_v36, 0.0 }
 0x2a1   :  { %4056 = vst [vmem:[#allocation7 + $0x530] sm:$0xff] %v3856_v26  ;;  %v1260_v15 = vmul.u32 2146121005, %v1060_v42  ;;  %v1061_v52 = vxor.u32 %v4278_v33, %v461_v29  ;;  %v462_v12 = vadd.s32 %v4800_v3, %v261_v19  ;;  %v4674_v18 = vshrl.u32 %v2057_v47, 16  ;;  %v3264_v26 = vld [vmem:[#allocation4 + $0x570] sm:$0xff] }
 0x2a2   :  { %v1858_v40 = vxor.u32 %v4475_v51, %v1258_v58  ;;  %v1859_v0 = vxor.u32 %v4476_v62, %v1259_v59  ;;  %v3462_v4 = vmax.f32 %v3262_v39, 0.0  ;;  %v463_v14 = vadd.s32 %v4800_v3, %v262_v25  ;;  %v3265_v51 = vld [vmem:[#allocation4 + $0x578] sm:$0xff] }
 0x2a3   :  { %v4477_v43 = vshrl.u32 %v1260_v15, 15  ;;  %v1261_v13 = vmul.u32 2146121005, %v1061_v52  ;;  %v4279_v41 = vshrl.u32 %v462_v12, 16  ;;  %v2657_v48 = vxor.u32 %v4674_v18, %v2057_v47 }
 0x2a4   :  { %v2058_v56 = vmul.u32 2221713035, %v1858_v40  ;;  %v2059_v54 = vmul.u32 2221713035, %v1859_v0  ;;  %v5877_v61 = vmul.f32 1.1111112, %v3461_v28  ;;  %v263_v59 = vadd.s32 %v4819_v10, %v5848_v34 }
 0x2a5   :  { %v1860_v60 = vxor.u32 %v4477_v43, %v1260_v15  ;;  %v4478_v17 = vshrl.u32 %v1261_v13, 15  ;;  %v1062_v50 = vxor.u32 %v4279_v41, %v462_v12  ;;  %v2857_v45 = vand.u32 16777215, %v2657_v48 }
 0x2a6   :  { %v4675_v30 = vshrl.u32 %v2058_v56, 16  ;;  %v4676_v20 = vshrl.u32 %v2059_v54, 16  ;;  %v4280_v55 = vshrl.u32 %v463_v14, 16  ;;  %v5879_v21 = vmul.f32 1.1111112, %v3462_v4 }
 0x2a7   :  { %v2060_v16 = vmul.u32 2221713035, %v1860_v60  ;;  %v1861_v63 = vxor.u32 %v4478_v17, %v1261_v13  ;;  %v1262_v22 = vmul.u32 2146121005, %v1062_v50  ;;  %vm3057_vm7 = vcmp.ge.s32.totalorder %v2857_v45, 1677722 }
 0x2a8   :  { %v2658_v38 = vxor.u32 %v4675_v30, %v2058_v56  ;;  %v2659_v27 = vxor.u32 %v4676_v20, %v2059_v54  ;;  %v1063_v57 = vxor.u32 %v4280_v55, %v463_v14  ;;  %v3857_v37 = vsel %vm3057_vm7, %v5850_v44, 0.0  ;;  %v3266_v54 = vld [vmem:[#allocation4 + $0x580] sm:$0xff]  ;;  %v3268_v45 = vld [vmem:[#allocation4 + $0x590] sm:$0xff] }
 0x2a9   :  { %v4677_v24 = vshrl.u32 %v2060_v16, 16  ;;  %v2061_v23 = vmul.u32 2221713035, %v1861_v63  ;;  %v4479_v53 = vshrl.u32 %v1262_v22, 15  ;;  %4057 = vst [vmem:[#allocation7 + $0x538] sm:$0xff] %v3857_v37  ;;  %v3463_v33 = vmax.f32 %v3263_v46, 0.0 }
 0x2aa   :  { %v2858_v29 = vand.u32 16777215, %v2658_v38  ;;  %v2859_v31 = vand.u32 16777215, %v2659_v27  ;;  %v1263_v58 = vmul.u32 2146121005, %v1063_v57  ;;  %v464_v44 = vadd.s32 %v4800_v3, %v263_v59 }
 0x2ab   :  { %v2660_v36 = vxor.u32 %v4677_v24, %v2060_v16  ;;  %v4678_v19 = vshrl.u32 %v2061_v23, 16  ;;  %v1862_v42 = vxor.u32 %v4479_v53, %v1262_v22  ;;  %v3464_v40 = vmax.f32 %v3264_v26, 0.0 }
 0x2ac   :  { %vm3058_vm8 = vcmp.ge.s32.totalorder %v2858_v29, 1677722  ;;  %vm3059_vm9 = vcmp.ge.s32.totalorder %v2859_v31, 1677722  ;;  %v4480_v47 = vshrl.u32 %v1263_v58, 15  ;;  %v4281_v18 = vshrl.u32 %v464_v44, 16 }
 0x2ad   :  { %v3858_v62 = vsel %vm3058_vm8, %v5859_v35, 0.0  ;;  %v3859_v39 = vsel %vm3059_vm9, %v5866_v49, 0.0  ;;  %v2860_v15 = vand.u32 16777215, %v2660_v36  ;;  %v2661_v52 = vxor.u32 %v4678_v19, %v2061_v23 }
 0x2ae   :  { %4058 = vst [vmem:[#allocation7 + $0x540] sm:$0xff] %v3858_v62  ;;  %4059 = vst [vmem:[#allocation7 + $0x548] sm:$0xff] %v3859_v39  ;;  %v2062_v28 = vmul.u32 2221713035, %v1862_v42  ;;  %v1863_v12 = vxor.u32 %v4480_v47, %v1263_v58  ;;  %v264_v25 = vadd.s32 %v4822_v11, %v5848_v34  ;;  %v3465_v43 = vmax.f32 %v3265_v51, 0.0  ;;  %v3267_v34 = vld [vmem:[#allocation4 + $0x588] sm:$0xff] }
 0x2af   :  { %vm3060_vm10 = vcmp.ge.s32.totalorder %v2860_v15, 1677722  ;;  %v2861_v0 = vand.u32 16777215, %v2661_v52  ;;  %v1064_v4 = vxor.u32 %v4281_v18, %v464_v44  ;;  %v3663_v49 = vmul.f32 1.1111112, %v3463_v33 }
 0x2b0   :  { %v3860_v13 = vsel %vm3060_vm10, %v5871_v32, 0.0  ;;  %v4679_v41 = vshrl.u32 %v2062_v28, 16  ;;  %v2063_v35 = vmul.u32 2221713035, %v1863_v12  ;;  %v465_v48 = vadd.s32 %v4800_v3, %v264_v25  ;;  %v3269_v39 = vld [vmem:[#allocation4 + $0x598] sm:$0xff] }
 0x2b1   :  { %4060 = vst [vmem:[#allocation7 + $0x550] sm:$0xff] %v3860_v13  ;;  %vm3061_vm11 = vcmp.ge.s32.totalorder %v2861_v0, 1677722  ;;  %v52_v56 = vadd.s32 176, %v4796_v1  ;;  %v1264_v50 = vmul.u32 2146121005, %v1064_v4 }
 0x2b2   :  { %v3861_v14 = vsel %vm3061_vm11, %v5877_v61, 0.0  ;;  %v2662_v60 = vxor.u32 %v4679_v41, %v2062_v28  ;;  %v4680_v17 = vshrl.u32 %v2063_v35, 16  ;;  %v5893_v32 = vmul.f32 1.1111112, %v3464_v40 }
 0x2b3   :  { %4061 = vst [vmem:[#allocation7 + $0x558] sm:$0xff] %v3861_v14  ;;  %v4282_v30 = vshrl.u32 %v465_v48, 16  ;;  %v5895_v20 = vmul.f32 1.1111112, %v3465_v43  ;;  %v5897_v55 = vmul.u32 1024, %v52_v56  ;;  %v4481_v22 = vshrl.u32 %v1264_v50, 15 }
 0x2b4   :  { %v2862_v16 = vand.u32 16777215, %v2662_v60  ;;  %v2663_v63 = vxor.u32 %v4680_v17, %v2063_v35  ;;  %v3466_v38 = vmax.f32 %v3266_v54, 0.0  ;;  %v3467_v46 = vmax.f32 %v3267_v34, 0.0  ;;  %v3270_v43 = vld [vmem:[#allocation4 + $0x5a0] sm:$0xff] }
 0x2b5   :  { %v1065_v27 = vxor.u32 %v4282_v30, %v465_v48  ;;  %v265_v61 = vadd.s32 %v4798_v2, %v5897_v55  ;;  %v266_v57 = vadd.s32 %v4804_v5, %v5897_v55  ;;  %v1864_v24 = vxor.u32 %v4481_v22, %v1264_v50 }
 0x2b6   :  { %vm3062_vm12 = vcmp.ge.s32.totalorder %v2862_v16, 1677722  ;;  %v2863_v37 = vand.u32 16777215, %v2663_v63  ;;  %v3468_v23 = vmax.f32 %v3268_v45, 0.0  ;;  %v267_v19 = vadd.s32 %v4807_v6, %v5897_v55 }
 0x2b7   :  { %v3862_v53 = vsel %vm3062_vm12, %v5879_v21, 0.0  ;;  %v1265_v29 = vmul.u32 2146121005, %v1065_v27  ;;  %v466_v31 = vadd.s32 %v4800_v3, %v265_v61  ;;  %v467_v58 = vadd.s32 %v4800_v3, %v266_v57 }
 0x2b8   :  { %4062 = vst [vmem:[#allocation7 + $0x560] sm:$0xff] %v3862_v53  ;;  %vm3063_vm13 = vcmp.ge.s32.totalorder %v2863_v37, 1677722  ;;  %v2064_v59 = vmul.u32 2221713035, %v1864_v24  ;;  %v468_v51 = vadd.s32 %v4800_v3, %v267_v19  ;;  %v268_v62 = vadd.s32 %v4810_v7, %v5897_v55 }
 0x2b9   :  { %v5906_v36 = vmul.f32 1.1111112, %v3466_v38  ;;  %v3863_v42 = vsel %vm3063_vm13, %v3663_v49, 0.0  ;;  %v4482_v33 = vshrl.u32 %v1265_v29, 15  ;;  %v4283_v26 = vshrl.u32 %v466_v31, 16 }
 0x2ba   :  { %v4284_v47 = vshrl.u32 %v467_v58, 16  ;;  %4063 = vst [vmem:[#allocation7 + $0x568] sm:$0xff] %v3863_v42  ;;  %v4681_v44 = vshrl.u32 %v2064_v59, 16  ;;  %v5910_v21 = vmul.f32 1.1111112, %v3467_v46  ;;  %v269_v12 = vadd.s32 %v4813_v8, %v5897_v55 }
 0x2bb   :  { %v1865_v15 = vxor.u32 %v4482_v33, %v1265_v29  ;;  %v1066_v52 = vxor.u32 %v4283_v26, %v466_v31  ;;  %v4285_v40 = vshrl.u32 %v468_v51, 16  ;;  %v5917_v0 = vmul.f32 1.1111112, %v3468_v23 }
 0x2bc   :  { %v1067_v28 = vxor.u32 %v4284_v47, %v467_v58  ;;  %v2664_v18 = vxor.u32 %v4681_v44, %v2064_v59  ;;  %v469_v25 = vadd.s32 %v4800_v3, %v268_v62  ;;  %v3469_v35 = vmax.f32 %v3269_v39, 0.0 }
 0x2bd   :  { %v2065_v13 = vmul.u32 2221713035, %v1865_v15  ;;  %v1266_v41 = vmul.u32 2146121005, %v1066_v52  ;;  %v470_v4 = vadd.s32 %v4800_v3, %v269_v12  ;;  %v1068_v56 = vxor.u32 %v4285_v40, %v468_v51  ;;  %v3271_v51 = vld [vmem:[#allocation4 + $0x5a8] sm:$0xff] }
 0x2be   :  { %v2864_v49 = vand.u32 16777215, %v2664_v18  ;;  %v1267_v48 = vmul.u32 2146121005, %v1067_v28  ;;  %v4286_v54 = vshrl.u32 %v469_v25, 16  ;;  %v3470_v50 = vmax.f32 %v3270_v43, 0.0 }
 0x2bf   :  { %v4682_v14 = vshrl.u32 %v2065_v13, 16  ;;  %v4483_v60 = vshrl.u32 %v1266_v41, 15  ;;  %v4287_v17 = vshrl.u32 %v470_v4, 16  ;;  %v1268_v45 = vmul.u32 2146121005, %v1068_v56 }
 0x2c0   :  { %vm3064_vm14 = vcmp.ge.s32.totalorder %v2864_v49, 1677722  ;;  %v4484_v34 = vshrl.u32 %v1267_v48, 15  ;;  %v1069_v30 = vxor.u32 %v4286_v54, %v469_v25  ;;  %v270_v46 = vadd.s32 %v4816_v9, %v5897_v55  ;;  %v3272_v54 = vld [vmem:[#allocation4 + $0x5b0] sm:$0xff] }
 0x2c1   :  { %v3864_v16 = vsel %vm3064_vm14, %v5893_v32, 0.0  ;;  %v2665_v63 = vxor.u32 %v4682_v14, %v2065_v13  ;;  %v1866_v22 = vxor.u32 %v4483_v60, %v1266_v41  ;;  %v1070_v38 = vxor.u32 %v4287_v17, %v470_v4 }
 0x2c2   :  { %4064 = vst [vmem:[#allocation7 + $0x570] sm:$0xff] %v3864_v16  ;;  %v1867_v27 = vxor.u32 %v4484_v34, %v1267_v48  ;;  %v4485_v61 = vshrl.u32 %v1268_v45, 15  ;;  %v1269_v57 = vmul.u32 2146121005, %v1069_v30  ;;  %v271_v53 = vadd.s32 %v4819_v10, %v5897_v55 }
 0x2c3   :  { %v2865_v37 = vand.u32 16777215, %v2665_v63  ;;  %v2066_v24 = vmul.u32 2221713035, %v1866_v22  ;;  %v1270_v23 = vmul.u32 2146121005, %v1070_v38  ;;  %v471_v32 = vadd.s32 %v4800_v3, %v270_v46 }
 0x2c4   :  { %v2067_v29 = vmul.u32 2221713035, %v1867_v27  ;;  %v1868_v31 = vxor.u32 %v4485_v61, %v1268_v45  ;;  %v4486_v58 = vshrl.u32 %v1269_v57, 15  ;;  %v3669_v19 = vmul.f32 1.1111112, %v3469_v35  ;;  %v3273_v63 = vld [vmem:[#allocation4 + $0x5b8] sm:$0xff] }
 0x2c5   :  { %vm3065_vm15 = vcmp.ge.s32.totalorder %v2865_v37, 1677722  ;;  %v4683_v59 = vshrl.u32 %v2066_v24, 16  ;;  %v4487_v42 = vshrl.u32 %v1270_v23, 15  ;;  %v3670_v15 = vmul.f32 1.1111112, %v3470_v50 }
 0x2c6   :  { %v3865_v33 = vsel %vm3065_vm15, %v5895_v20, 0.0  ;;  %v4684_v26 = vshrl.u32 %v2067_v29, 16  ;;  %v2068_v47 = vmul.u32 2221713035, %v1868_v31  ;;  %v1869_v44 = vxor.u32 %v4486_v58, %v1269_v57 }
 0x2c7   :  { %4065 = vst [vmem:[#allocation7 + $0x578] sm:$0xff] %v3865_v33  ;;  %v2666_v62 = vxor.u32 %v4683_v59, %v2066_v24  ;;  %v1870_v39 = vxor.u32 %v4487_v42, %v1270_v23  ;;  %v4288_v52 = vshrl.u32 %v471_v32, 16  ;;  %v472_v40 = vadd.s32 %v4800_v3, %v271_v53 }
 0x2c8   :  { %v2667_v28 = vxor.u32 %v4684_v26, %v2067_v29  ;;  %v4685_v12 = vshrl.u32 %v2068_v47, 16  ;;  %v2069_v18 = vmul.u32 2221713035, %v1869_v44  ;;  %v3471_v41 = vmax.f32 %v3271_v51, 0.0  ;;  %v3275_v44 = vld [vmem:[#allocation4 + $0x5c8] sm:$0xff] }
 0x2c9   :  { %v2866_v25 = vand.u32 16777215, %v2666_v62  ;;  %v2070_v43 = vmul.u32 2221713035, %v1870_v39  ;;  %v1071_v13 = vxor.u32 %v4288_v52, %v471_v32  ;;  %v4289_v49 = vshrl.u32 %v472_v40, 16  ;;  %v3274_v32 = vld [vmem:[#allocation4 + $0x5c0] sm:$0xff] }
 0x2ca   :  { %v2867_v35 = vand.u32 16777215, %v2667_v28  ;;  %v2668_v20 = vxor.u32 %v4685_v12, %v2068_v47  ;;  %v4686_v4 = vshrl.u32 %v2069_v18, 16  ;;  %v272_v14 = vadd.s32 %v4822_v11, %v5897_v55 }
 0x2cb   :  { %vm3066_vm0 = vcmp.ge.s32.totalorder %v2866_v25, 1677722  ;;  %v4687_v48 = vshrl.u32 %v2070_v43, 16  ;;  %v1271_v56 = vmul.u32 2146121005, %v1071_v13  ;;  %v1072_v16 = vxor.u32 %v4289_v49, %v472_v40 }
 0x2cc   :  { %v3866_v60 = vsel %vm3066_vm0, %v5906_v36, 0.0  ;;  %vm3067_vm1 = vcmp.ge.s32.totalorder %v2867_v35, 1677722  ;;  %v2868_v17 = vand.u32 16777215, %v2668_v20  ;;  %v2669_v50 = vxor.u32 %v4686_v4, %v2069_v18 }
 0x2cd   :  { %4066 = vst [vmem:[#allocation7 + $0x580] sm:$0xff] %v3866_v60  ;;  %v3867_v34 = vsel %vm3067_vm1, %v5910_v21, 0.0  ;;  %v2670_v45 = vxor.u32 %v4687_v48, %v2070_v43  ;;  %v4488_v30 = vshrl.u32 %v1271_v56, 15  ;;  %v3472_v38 = vmax.f32 %v3272_v54, 0.0 }
 0x2ce   :  { %4067 = vst [vmem:[#allocation7 + $0x588] sm:$0xff] %v3867_v34  ;;  %vm3068_vm2 = vcmp.ge.s32.totalorder %v2868_v17, 1677722  ;;  %v2869_v22 = vand.u32 16777215, %v2669_v50  ;;  %v473_v27 = vadd.s32 %v4800_v3, %v272_v14  ;;  %v3473_v37 = vmax.f32 %v3273_v63, 0.0 }
 0x2cf   :  { %v3868_v55 = vsel %vm3068_vm2, %v5917_v0, 0.0  ;;  %v2870_v61 = vand.u32 16777215, %v2670_v45  ;;  %v1871_v36 = vxor.u32 %v4488_v30, %v1271_v56  ;;  %v1272_v57 = vmul.u32 2146121005, %v1072_v16  ;;  %v3276_v34 = vld [vmem:[#allocation4 + $0x5d0] sm:$0xff] }
 0x2d0   :  { %4068 = vst [vmem:[#allocation7 + $0x590] sm:$0xff] %v3868_v55  ;;  %vm3069_vm3 = vcmp.ge.s32.totalorder %v2869_v22, 1677722  ;;  %v4290_v46 = vshrl.u32 %v473_v27, 16  ;;  %v53_v21 = vadd.s32 184, %v4796_v1  ;;  %v3474_v52 = vmax.f32 %v3274_v32, 0.0 }
 0x2d1   :  { %v3869_v24 = vsel %vm3069_vm3, %v3669_v19, 0.0  ;;  %vm3070_vm4 = vcmp.ge.s32.totalorder %v2870_v61, 1677722  ;;  %v2071_v23 = vmul.u32 2221713035, %v1871_v36  ;;  %v4489_v53 = vshrl.u32 %v1272_v57, 15 }
 0x2d2   :  { %4069 = vst [vmem:[#allocation7 + $0x598] sm:$0xff] %v3869_v24  ;;  %v3870_v29 = vsel %vm3070_vm4, %v3670_v15, 0.0  ;;  %v1073_v31 = vxor.u32 %v4290_v46, %v473_v27  ;;  %v5936_v58 = vmul.u32 1024, %v53_v21  ;;  %v3671_v59 = vmul.f32 1.1111112, %v3471_v41  ;;  %v3277_v55 = vld [vmem:[#allocation4 + $0x5d8] sm:$0xff] }
 0x2d3   :  { %4070 = vst [vmem:[#allocation7 + $0x5a0] sm:$0xff] %v3870_v29  ;;  %v4688_v0 = vshrl.u32 %v2071_v23, 16  ;;  %v1872_v42 = vxor.u32 %v4489_v53, %v1272_v57  ;;  %v3672_v33 = vmul.f32 1.1111112, %v3472_v38  ;;  %v5944_v15 = vmul.f32 1.1111112, %v3473_v37 }
 0x2d4   :  { %v1273_v26 = vmul.u32 2146121005, %v1073_v31  ;;  %v273_v47 = vadd.s32 %v4798_v2, %v5936_v58  ;;  %v274_v19 = vadd.s32 %v4804_v5, %v5936_v58  ;;  %v275_v51 = vadd.s32 %v4807_v6, %v5936_v58 }
 0x2d5   :  { %v2671_v62 = vxor.u32 %v4688_v0, %v2071_v23  ;;  %v2072_v39 = vmul.u32 2221713035, %v1872_v42  ;;  %v3475_v13 = vmax.f32 %v3275_v44, 0.0  ;;  %v276_v41 = vadd.s32 %v4810_v7, %v5936_v58 }
 0x2d6   :  { %v4490_v28 = vshrl.u32 %v1273_v26, 15  ;;  %v474_v12 = vadd.s32 %v4800_v3, %v273_v47  ;;  %v475_v18 = vadd.s32 %v4800_v3, %v274_v19  ;;  %v476_v40 = vadd.s32 %v4800_v3, %v275_v51 }
 0x2d7   :  { %v2871_v25 = vand.u32 16777215, %v2671_v62  ;;  %v4689_v43 = vshrl.u32 %v2072_v39, 16  ;;  %v5951_v56 = vmul.f32 1.1111112, %v3474_v52  ;;  %v477_v54 = vadd.s32 %v4800_v3, %v276_v41 }
 0x2d8   :  { %v1873_v35 = vxor.u32 %v4490_v28, %v1273_v26  ;;  %v4291_v20 = vshrl.u32 %v474_v12, 16  ;;  %v4292_v4 = vshrl.u32 %v475_v18, 16  ;;  %v4293_v49 = vshrl.u32 %v476_v40, 16 }
 0x2d9   :  { %vm3071_vm5 = vcmp.ge.s32.totalorder %v2871_v25, 1677722  ;;  %v2672_v48 = vxor.u32 %v4689_v43, %v2072_v39  ;;  %v5954_v30 = vmul.f32 1.1111112, %v3475_v13  ;;  %v4294_v63 = vshrl.u32 %v477_v54, 16 }
 0x2da   :  { %v3871_v14 = vsel %vm3071_vm5, %v3671_v59, 0.0  ;;  %v2073_v60 = vmul.u32 2221713035, %v1873_v35  ;;  %v1074_v17 = vxor.u32 %v4291_v20, %v474_v12  ;;  %v1075_v50 = vxor.u32 %v4292_v4, %v475_v18 }
 0x2db   :  { %4071 = vst [vmem:[#allocation7 + $0x5a8] sm:$0xff] %v3871_v14  ;;  %v2872_v45 = vand.u32 16777215, %v2672_v48  ;;  %v1076_v16 = vxor.u32 %v4293_v49, %v476_v40  ;;  %v277_v61 = vadd.s32 %v4813_v8, %v5936_v58  ;;  %v3476_v57 = vmax.f32 %v3276_v34, 0.0  ;;  %v3278_v40 = vld [vmem:[#allocation4 + $0x5e0] sm:$0xff]  ;;  %v3279_v34 = vld [vmem:[#allocation4 + $0x5e8] sm:$0xff] }
 0x2dc   :  { %v4690_v22 = vshrl.u32 %v2073_v60, 16  ;;  %v1274_v38 = vmul.u32 2146121005, %v1074_v17  ;;  %v1275_v27 = vmul.u32 2146121005, %v1075_v50  ;;  %v1077_v46 = vxor.u32 %v4294_v63, %v477_v54 }
 0x2dd   :  { %vm3072_vm6 = vcmp.ge.s32.totalorder %v2872_v45, 1677722  ;;  %v1276_v36 = vmul.u32 2146121005, %v1076_v16  ;;  %v3477_v31 = vmax.f32 %v3277_v55, 0.0  ;;  %v478_v32 = vadd.s32 %v4800_v3, %v277_v61 }
 0x2de   :  { %v3872_v37 = vsel %vm3072_vm6, %v3672_v33, 0.0  ;;  %v2673_v21 = vxor.u32 %v4690_v22, %v2073_v60  ;;  %v4491_v24 = vshrl.u32 %v1274_v38, 15  ;;  %v4492_v23 = vshrl.u32 %v1275_v27, 15 }
 0x2df   :  { %4072 = vst [vmem:[#allocation7 + $0x5b0] sm:$0xff] %v3872_v37  ;;  %v4493_v53 = vshrl.u32 %v1276_v36, 15  ;;  %v1277_v29 = vmul.u32 2146121005, %v1077_v46  ;;  %v278_v26 = vadd.s32 %v4816_v9, %v5936_v58  ;;  %v3676_v19 = vmul.f32 1.1111112, %v3476_v57 }
 0x2e0   :  { %v2873_v0 = vand.u32 16777215, %v2673_v21  ;;  %v1874_v59 = vxor.u32 %v4491_v24, %v1274_v38  ;;  %v1875_v42 = vxor.u32 %v4492_v23, %v1275_v27  ;;  %v4295_v51 = vshrl.u32 %v478_v32, 16  ;;  %v3280_v57 = vld [vmem:[#allocation4 + $0x5f0] sm:$0xff]  ;;  %v3281_v46 = vld [vmem:[#allocation4 + $0x5f8] sm:$0xff] }
 0x2e1   :  { %v1876_v47 = vxor.u32 %v4493_v53, %v1276_v36  ;;  %v4494_v44 = vshrl.u32 %v1277_v29, 15  ;;  %v479_v39 = vadd.s32 %v4800_v3, %v278_v26  ;;  %v3677_v13 = vmul.f32 1.1111112, %v3477_v31 }
 0x2e2   :  { %vm3073_vm7 = vcmp.ge.s32.totalorder %v2873_v0, 1677722  ;;  %v2074_v33 = vmul.u32 2221713035, %v1874_v59  ;;  %v2075_v62 = vmul.u32 2221713035, %v1875_v42  ;;  %v1078_v18 = vxor.u32 %v4295_v51, %v478_v32 }
 0x2e3   :  { %v3873_v52 = vsel %vm3073_vm7, %v5944_v15, 0.0  ;;  %v2076_v28 = vmul.u32 2221713035, %v1876_v47  ;;  %v1877_v12 = vxor.u32 %v4494_v44, %v1277_v29  ;;  %v4296_v41 = vshrl.u32 %v479_v39, 16 }
 0x2e4   :  { %4073 = vst [vmem:[#allocation7 + $0x5b8] sm:$0xff] %v3873_v52  ;;  %v4691_v25 = vshrl.u32 %v2074_v33, 16  ;;  %v4692_v43 = vshrl.u32 %v2075_v62, 16  ;;  %v1278_v4 = vmul.u32 2146121005, %v1078_v18  ;;  %v279_v49 = vadd.s32 %v4819_v10, %v5936_v58 }
 0x2e5   :  { %v4693_v35 = vshrl.u32 %v2076_v28, 16  ;;  %v2077_v20 = vmul.u32 2221713035, %v1877_v12  ;;  %v3478_v14 = vmax.f32 %v3278_v40, 0.0  ;;  %v1079_v60 = vxor.u32 %v4296_v41, %v479_v39 }
 0x2e6   :  { %v2674_v48 = vxor.u32 %v4691_v25, %v2074_v33  ;;  %v2675_v54 = vxor.u32 %v4692_v43, %v2075_v62  ;;  %v4495_v50 = vshrl.u32 %v1278_v4, 15  ;;  %v480_v45 = vadd.s32 %v4800_v3, %v279_v49  ;;  %v3282_v62 = vld [vmem:[#allocation4 + $0x600] sm:$0xf]  ;;  %v3283_v49 = vld [vmem:[#allocation4 + $0x608] sm:$0xf] }
 0x2e7   :  { %v2676_v15 = vxor.u32 %v4693_v35, %v2076_v28  ;;  %v4694_v17 = vshrl.u32 %v2077_v20, 16  ;;  %v1279_v22 = vmul.u32 2146121005, %v1079_v60  ;;  %v280_v38 = vadd.s32 %v4822_v11, %v5936_v58 }
 0x2e8   :  { %v2874_v16 = vand.u32 16777215, %v2674_v48  ;;  %v2875_v63 = vand.u32 16777215, %v2675_v54  ;;  %v1878_v61 = vxor.u32 %v4495_v50, %v1278_v4  ;;  %v4297_v36 = vshrl.u32 %v480_v45, 16 }
 0x2e9   :  { %v2876_v27 = vand.u32 16777215, %v2676_v15  ;;  %v2677_v55 = vxor.u32 %v4694_v17, %v2077_v20  ;;  %v4496_v37 = vshrl.u32 %v1279_v22, 15  ;;  %v3479_v21 = vmax.f32 %v3279_v34, 0.0 }
 0x2ea   :  { %vm3074_vm8 = vcmp.ge.s32.totalorder %v2874_v16, 1677722  ;;  %vm3075_vm9 = vcmp.ge.s32.totalorder %v2875_v63, 1677722  ;;  %v2078_v58 = vmul.u32 2221713035, %v1878_v61  ;;  %v1080_v32 = vxor.u32 %v4297_v36, %v480_v45 }
 0x2eb   :  { %v3874_v24 = vsel %vm3074_vm8, %v5951_v56, 0.0  ;;  %v3875_v23 = vsel %vm3075_vm9, %v5954_v30, 0.0  ;;  %vm3076_vm10 = vcmp.ge.s32.totalorder %v2876_v27, 1677722  ;;  %v2877_v53 = vand.u32 16777215, %v2677_v55 }
 0x2ec   :  { %4074 = vst [vmem:[#allocation7 + $0x5c0] sm:$0xff] %v3874_v24  ;;  %4075 = vst [vmem:[#allocation7 + $0x5c8] sm:$0xff] %v3875_v23  ;;  %v3876_v29 = vsel %vm3076_vm10, %v3676_v19, 0.0  ;;  %v1879_v31 = vxor.u32 %v4496_v37, %v1279_v22  ;;  %v3480_v0 = vmax.f32 %v3280_v57, 0.0  ;;  %v481_v59 = vadd.s32 %v4800_v3, %v280_v38  ;;  %v3284_v38 = vld [vmem:[#allocation4 + $0x610] sm:$0xf] }
 0x2ed   :  { %4076 = vst [vmem:[#allocation7 + $0x5d0] sm:$0xff] %v3876_v29  ;;  %vm3077_vm11 = vcmp.ge.s32.totalorder %v2877_v53, 1677722  ;;  %v3481_v42 = vmax.f32 %v3281_v46, 0.0  ;;  %v4695_v47 = vshrl.u32 %v2078_v58, 16  ;;  %v54_v33 = vadd.s32 192, %v4796_v1 }
 0x2ee   :  { %v3877_v26 = vsel %vm3077_vm11, %v3677_v13, 0.0  ;;  %v2079_v44 = vmul.u32 2221713035, %v1879_v31  ;;  %v1280_v56 = vmul.u32 2146121005, %v1080_v32  ;;  %v4298_v51 = vshrl.u32 %v481_v59, 16 }
 0x2ef   :  { %4077 = vst [vmem:[#allocation7 + $0x5d8] sm:$0xff] %v3877_v26  ;;  %v3678_v30 = vmul.f32 1.1111112, %v3478_v14  ;;  %v2678_v19 = vxor.u32 %v4695_v47, %v2078_v58  ;;  %v3679_v52 = vmul.f32 1.1111112, %v3479_v21  ;;  %v5974_v25 = vmul.u32 1024, %v54_v33 }
 0x2f0   :  { %v4696_v39 = vshrl.u32 %v2079_v44, 16  ;;  %v4497_v28 = vshrl.u32 %v1280_v56, 15  ;;  %v3680_v12 = vmul.f32 1.1111112, %v3480_v0  ;;  %v1081_v18 = vxor.u32 %v4298_v51, %v481_v59  ;;  %v3285_v29 = vld [vmem:[#allocation4 + $0x618] sm:$0xf] }
 0x2f1   :  { %v5972_v40 = vmul.f32 1.1111112, %v3481_v42  ;;  %v2878_v43 = vand.u32 16777215, %v2678_v19  ;;  %v3482_v35 = vmax.f32 %v3282_v62, 0.0  ;;  %v281_v4 = vadd.s32 %v4798_v2, %v5974_v25 }
 0x2f2   :  { %v2679_v13 = vxor.u32 %v4696_v39, %v2079_v44  ;;  %v1880_v41 = vxor.u32 %v4497_v28, %v1280_v56  ;;  %v1281_v20 = vmul.u32 2146121005, %v1081_v18  ;;  %v282_v1 = vadd.s32 %v4804_v5, %v5974_v25 }
 0x2f3   :  { %v283_v48 = vadd.s32 %v4807_v6, %v5974_v25  ;;  %vm3078_vm12 = vcmp.ge.s32.totalorder %v2878_v43, 1677722  ;;  %v284_v60 = vadd.s32 %v4810_v7, %v5974_v25  ;;  %v482_v50 = vadd.s32 %v4800_v3, %v281_v4 }
 0x2f4   :  { %v2879_v54 = vand.u32 16777215, %v2679_v13  ;;  %v2080_v14 = vmul.u32 2221713035, %v1880_v41  ;;  %v3878_v15 = vsel %vm3078_vm12, %v3678_v30, 0.0  ;;  %v4498_v17 = vshrl.u32 %v1281_v20, 15 }
 0x2f5   :  { %v483_v34 = vadd.s32 %v4800_v3, %v282_v1  ;;  %4078 = vst [vmem:[#allocation7 + $0x5e0] sm:$0xff] %v3878_v15  ;;  %v3483_v5 = vmax.f32 %v3283_v49, 0.0  ;;  %v484_v45 = vadd.s32 %v4800_v3, %v283_v48  ;;  %v4299_v63 = vshrl.u32 %v482_v50, 16 }
 0x2f6   :  { %vm3079_vm13 = vcmp.ge.s32.totalorder %v2879_v54, 1677722  ;;  %v4697_v2 = vshrl.u32 %v2080_v14, 16  ;;  %v1881_v6 = vxor.u32 %v4498_v17, %v1281_v20  ;;  %v5987_v7 = vmul.f32 1.1111112, %v3482_v35 }
 0x2f7   :  { %v3879_v16 = vsel %vm3079_vm13, %v3679_v52, 0.0  ;;  %v4300_v22 = vshrl.u32 %v483_v34, 16  ;;  %v4301_v55 = vshrl.u32 %v484_v45, 16  ;;  %v485_v61 = vadd.s32 %v4800_v3, %v284_v60  ;;  %v3286_v35 = vld [vmem:[#allocation4 + $0x620] sm:$0xf] }
 0x2f8   :  { %4079 = vst [vmem:[#allocation7 + $0x5e8] sm:$0xff] %v3879_v16  ;;  %v2680_v27 = vxor.u32 %v4697_v2, %v2080_v14  ;;  %v2081_v36 = vmul.u32 2221713035, %v1881_v6  ;;  %v1082_v57 = vxor.u32 %v4299_v63, %v482_v50  ;;  %v285_v37 = vadd.s32 %v4813_v8, %v5974_v25 }
 0x2f9   :  { %v1083_v46 = vxor.u32 %v4300_v22, %v483_v34  ;;  %v1084_v24 = vxor.u32 %v4301_v55, %v484_v45  ;;  %v3484_v23 = vmax.f32 %v3284_v38, 0.0  ;;  %v4302_v53 = vshrl.u32 %v485_v61, 16 }
 0x2fa   :  { %v2880_v21 = vand.u32 16777215, %v2680_v27  ;;  %v4698_v58 = vshrl.u32 %v2081_v36, 16  ;;  %v1282_v31 = vmul.u32 2146121005, %v1082_v57  ;;  %v486_v0 = vadd.s32 %v4800_v3, %v285_v37 }
 0x2fb   :  { %v1283_v32 = vmul.u32 2146121005, %v1083_v46  ;;  %v5993_v59 = vmul.f32 1.1111112, %v3483_v5  ;;  %v1284_v42 = vmul.u32 2146121005, %v1084_v24  ;;  %v1085_v26 = vxor.u32 %v4302_v53, %v485_v61 }
 0x2fc   :  { %vm3080_vm14 = vcmp.ge.s32.totalorder %v2880_v21, 1677722  ;;  %v2681_v44 = vxor.u32 %v4698_v58, %v2081_v36  ;;  %v4499_v56 = vshrl.u32 %v1282_v31, 15  ;;  %v3485_v33 = vmax.f32 %v3285_v29, 0.0 }
 0x2fd   :  { %v3880_v47 = vsel %vm3080_vm14, %v3680_v12, 0.0  ;;  %v4500_v30 = vshrl.u32 %v1283_v32, 15  ;;  %v4501_v8 = vshrl.u32 %v1284_v42, 15  ;;  %v1285_v51 = vmul.u32 2146121005, %v1085_v26 }
 0x2fe   :  { %4080 = vst [vmem:[#allocation7 + $0x5f0] sm:$0xff] %v3880_v47  ;;  %v4303_v62 = vshrl.u32 %v486_v0, 16  ;;  %v2881_v19 = vand.u32 16777215, %v2681_v44  ;;  %v1882_v39 = vxor.u32 %v4499_v56, %v1282_v31  ;;  %v286_v28 = vadd.s32 %v4816_v9, %v5974_v25 }
 0x2ff   :  { %v1883_v52 = vxor.u32 %v4500_v30, %v1283_v32  ;;  %v1884_v18 = vxor.u32 %v4501_v8, %v1284_v42  ;;  %v3684_v43 = vmul.f32 1.1111112, %v3484_v23  ;;  %v4502_v13 = vshrl.u32 %v1285_v51, 15 }
 0x300   :  { %v1086_v41 = vxor.u32 %v4303_v62, %v486_v0  ;;  %vm3081_vm15 = vcmp.ge.s32.totalorder %v2881_v19, 1677722  ;;  %v2082_v12 = vmul.u32 2221713035, %v1882_v39  ;;  %v487_v4 = vadd.s32 %v4800_v3, %v286_v28  ;;  %v3288_v19 = vld [vmem:[#allocation4 + $0x630] sm:$0xf] }
 0x301   :  { %v2083_v20 = vmul.u32 2221713035, %v1883_v52  ;;  %v3881_v1 = vsel %vm3081_vm15, %v5972_v40, 0.0  ;;  %v2084_v49 = vmul.u32 2221713035, %v1884_v18  ;;  %v1885_v48 = vxor.u32 %v4502_v13, %v1285_v51 }
 0x302   :  { %v1286_v54 = vmul.u32 2146121005, %v1086_v41  ;;  %4081 = vst [vmem:[#allocation7 + $0x5f8] sm:$0xff] %v3881_v1  ;;  %v4699_v14 = vshrl.u32 %v2082_v12, 16  ;;  %v3685_v15 = vmul.f32 1.1111112, %v3485_v33  ;;  %v287_v2 = vadd.s32 %v4819_v10, %v5974_v25 }
 0x303   :  { %v4700_v60 = vshrl.u32 %v2083_v20, 16  ;;  %v4304_v9 = vshrl.u32 %v487_v4, 16  ;;  %v4701_v17 = vshrl.u32 %v2084_v49, 16  ;;  %v2085_v50 = vmul.u32 2221713035, %v1885_v48 }
 0x304   :  { %v4503_v34 = vshrl.u32 %v1286_v54, 15  ;;  %v2682_v5 = vxor.u32 %v4699_v14, %v2082_v12  ;;  %v3486_v16 = vmax.f32 %v3286_v35, 0.0  ;;  %v488_v38 = vadd.s32 %v4800_v3, %v287_v2  ;;  %v3289_v35 = vld [vmem:[#allocation4 + $0x638] sm:$0xf] }
 0x305   :  { %v2683_v45 = vxor.u32 %v4700_v60, %v2083_v20  ;;  %v1087_v6 = vxor.u32 %v4304_v9, %v487_v4  ;;  %v2684_v63 = vxor.u32 %v4701_v17, %v2084_v49  ;;  %v4702_v40 = vshrl.u32 %v2085_v50, 16 }
 0x306   :  { %v1886_v22 = vxor.u32 %v4503_v34, %v1286_v54  ;;  %v2882_v27 = vand.u32 16777215, %v2682_v5  ;;  %v288_v36 = vadd.s32 %v4822_v11, %v5974_v25  ;;  %v4305_v21 = vshrl.u32 %v488_v38, 16  ;;  %v3287_v25 = vld [vmem:[#allocation4 + $0x628] sm:$0xf] }
 0x307   :  { %v2883_v55 = vand.u32 16777215, %v2683_v45  ;;  %v1287_v61 = vmul.u32 2146121005, %v1087_v6  ;;  %v2884_v57 = vand.u32 16777215, %v2684_v63  ;;  %v2685_v46 = vxor.u32 %v4702_v40, %v2085_v50 }
 0x308   :  { %v2086_v37 = vmul.u32 2221713035, %v1886_v22  ;;  %vm3082_vm0 = vcmp.ge.s32.totalorder %v2882_v27, 1677722  ;;  %v489_v24 = vadd.s32 %v4800_v3, %v288_v36  ;;  %v1088_v32 = vxor.u32 %v4305_v21, %v488_v38 }
 0x309   :  { %vm3083_vm1 = vcmp.ge.s32.totalorder %v2883_v55, 1677722  ;;  %v4504_v10 = vshrl.u32 %v1287_v61, 15  ;;  %v3882_v23 = vsel %vm3082_vm0, %v5987_v7, 0.0  ;;  %vm3084_vm2 = vcmp.ge.s32.totalorder %v2884_v57, 1677722 }
 0x30a   :  { %v3883_v53 = vsel %vm3083_vm1, %v5993_v59, 0.0  ;;  %v2885_v29 = vand.u32 16777215, %v2685_v46  ;;  %4082 = vst [vmem:[#allocation7 + $0x600] sm:$0xf] %v3882_v23  ;;  %v3884_v58 = vsel %vm3084_vm2, %v3684_v43, 0.0 }
 0x30b   :  { %4083 = vst [vmem:[#allocation7 + $0x608] sm:$0xf] %v3883_v53  ;;  %v4703_v31 = vshrl.u32 %v2086_v37, 16  ;;  %v1887_v11 = vxor.u32 %v4504_v10, %v1287_v61  ;;  %4084 = vst [vmem:[#allocation7 + $0x610] sm:$0xf] %v3884_v58  ;;  %v4306_v0 = vshrl.u32 %v489_v24, 16 }
 0x30c   :  { %vm3085_vm3 = vcmp.ge.s32.totalorder %v2885_v29, 1677722  ;;  %v1288_v3 = vmul.u32 2146121005, %v1088_v32  ;;  %v3686_v7 = vmul.f32 1.1111112, %v3486_v16 }
 0x30d   :  { %v3885_v42 = vsel %vm3085_vm3, %v3685_v15, 0.0  ;;  %v2686_v26 = vxor.u32 %v4703_v31, %v2086_v37  ;;  %v2087_v47 = vmul.u32 2221713035, %v1887_v11  ;;  %v3487_v44 = vmax.f32 %v3287_v25, 0.0 }
 0x30e   :  { %4085 = vst [vmem:[#allocation7 + $0x618] sm:$0xf] %v3885_v42  ;;  %v1089_v59 = vxor.u32 %v4306_v0, %v489_v24  ;;  %v4505_v8 = vshrl.u32 %v1288_v3, 15  ;;  %v3488_v13 = vmax.f32 %v3288_v19, 0.0  ;;  %v3489_v49 = vmax.f32 %v3289_v35, 0.0 }
 0x30f   :  { %v2886_v56 = vand.u32 16777215, %v2686_v26  ;;  %v4704_v30 = vshrl.u32 %v2087_v47, 16  ;;  %v3687_v52 = vmul.f32 1.1111112, %v3487_v44 }
 0x310   :  { %v1289_v51 = vmul.u32 2146121005, %v1089_v59  ;;  %v1888_v62 = vxor.u32 %v4505_v8, %v1288_v3  ;;  %v3688_v48 = vmul.f32 1.1111112, %v3488_v13  ;;  %v3689_v15 = vmul.f32 1.1111112, %v3489_v49 }
 0x311   :  { %vm3086_vm4 = vcmp.ge.s32.totalorder %v2886_v56, 1677722  ;;  %v2687_v33 = vxor.u32 %v4704_v30, %v2087_v47 }
 0x312   :  { %v3886_v39 = vsel %vm3086_vm4, %v3686_v7, 0.0  ;;  %v4506_v28 = vshrl.u32 %v1289_v51, 15  ;;  %v2088_v43 = vmul.u32 2221713035, %v1888_v62 }
 0x313   :  { %4086 = vst [vmem:[#allocation7 + $0x620] sm:$0xf] %v3886_v39  ;;  %v2887_v18 = vand.u32 16777215, %v2687_v33 }
 0x314   :  { %v1889_v41 = vxor.u32 %v4506_v28, %v1289_v51  ;;  %v4705_v12 = vshrl.u32 %v2088_v43, 16 }
 0x315   :  { %vm3087_vm5 = vcmp.ge.s32.totalorder %v2887_v18, 1677722 }
 0x316   :  { %v3887_v20 = vsel %vm3087_vm5, %v3687_v52, 0.0  ;;  %v2089_v4 = vmul.u32 2221713035, %v1889_v41  ;;  %v2688_v1 = vxor.u32 %v4705_v12, %v2088_v43 }
 0x317   :  { %4087 = vst [vmem:[#allocation7 + $0x628] sm:$0xf] %v3887_v20 }
 0x318   :  { %v4706_v54 = vshrl.u32 %v2089_v4, 16  ;;  %v2888_v14 = vand.u32 16777215, %v2688_v1 }
 0x31a   :  { %v2689_v60 = vxor.u32 %v4706_v54, %v2089_v4  ;;  %vm3088_vm6 = vcmp.ge.s32.totalorder %v2888_v14, 1677722 }
 0x31b   :  { %v3888_v9 = vsel %vm3088_vm6, %v3688_v48, 0.0 }
 0x31c   :  { %v2889_v17 = vand.u32 16777215, %v2689_v60  ;;  %4088 = vst [vmem:[#allocation7 + $0x630] sm:$0xf] %v3888_v9 }
 0x31e   :  { %vm3089_vm7 = vcmp.ge.s32.totalorder %v2889_v17, 1677722 }
 0x31f   :  { %v3889_v50 = vsel %vm3089_vm7, %v3689_v15, 0.0 }
 0x320   :  { %4089 = vst [vmem:[#allocation7 + $0x638] sm:$0xf] %v3889_v50 }
 0x321   :  { %4744 = shalt.err (!%p4741_p12)
}
 0x322   :  { %s4745_s29 = scalar_lea.hbm %s6024_s2, 25600 }
 0x323   :  { %p4746_p13 = scmp.ne.s32.totalorder %s6024_s2, %s4745_s29  ;;  %p4749_p0 = scmp.lt.u32.totalorder %s4745_s29, %s6024_s2 }
 0x325   :  { %p4751_p1 = pnand %p4749_p0, %p4746_p13 }
 0x327   :  { %4754 = shalt.err (!%p4751_p1)
}
 0x328   :  { %4101 = dma.vmem_to_hbm [thread:$0]  %s4096_s1, 25600, %s6024_s2, [#allocation6], %s4760_s19, %s4760_s19, %s4761_s20  }
 0x329   :  { %4757 = dma.done.wait [#allocation6], 25600  }
 0x32a   :  { %4758 = vsyncadd [#allocation6], 4294941696 }
 0x32b   :  { %4105 = vsyncpa [#allocation5], 1 }
 0x32c   :  { %4106 = vsyncpa [#allocation6], 1 }

</bundles_post_ra>
